<compile_context>
chip_gen: v6e
topology: v6e:2x2x1
jax: 0.10.0
libtpu: 0.0.40
codegen_flags: <defaults>
</compile_context>

<pallas_src>
import jax
import jax.numpy as jnp
from jax.experimental import pallas as pl
from jax.experimental.pallas import tpu as pltpu


PATCH = 8            # synthetic encoders: Conv2d(kernel=stride=8) patch embedding
FEAT = 64            # feature channels of the synthetic encoders
G7 = 7               # 7x7 feature grid (matches AvgPool2d(7) and the 49-way softmax)
NP = G7 * G7         # 49 spatial positions
PP = PATCH * PATCH   # 64 pixels per patch per channel


# ------------------------------ fused kernel ------------------------------

def _gazenet_kernel(
    # --- per-batch activations (rows = 49 patches, lanes = features) ---
    hl_img_ref,                     # (56, 56)  raw headloc mask (maxpool chain)
    face_p_ref,                     # (49, 192) 8x8 patches of `face`
    gvs0_ref, gvs1_ref, gvs2_ref,   # (49, 64)  per-channel patches of gaze_vector_space
    simg_p_ref,                     # (49, 192) 8x8 patches of `simg`
    hl_p_ref,                       # (49, 64)  8x8 patches of `headloc`
    # --- head encoder ---
    w_head_ref, b_head_ref,
    # --- gaze encoder (conv weight split per input channel group) ---
    w_gz_g0_ref, w_gz_g1_ref, w_gz_g2_ref, w_gz_face_ref, w_gz_hl_ref, b_gz_ref,
    # --- scene (saliency) encoder ---
    w_sal_img_ref, w_sal_heat_ref, w_sal_hl_ref, b_sal_ref,
    # --- attFace linear ---
    w_att_hf_ref, w_att_hl_ref, b_att_ref,
    # --- coarse / fine decoders (weight rows = outputs -> VPU matvec) ---
    w_coarse_ref, b_coarse_ref,
    w_fine_sal_ref, w_fine_gaze_ref, w_fine_head_ref, b_fine_ref,
    # --- heatmap decoder (1x1 conv) ---
    w_hm_sal_ref, w_hm_head_ref, b_hm_ref,
    # --- outputs ---
    hm_out_ref,                     # (1, 49)   lane-dense heatmap row
    fine_out_ref,                   # (3, 1)    fine gaze direction
):
    f32 = jnp.float32

    # ---- head encoder: Conv2d(k=8, s=8) + ReLU ------------------------------------
    head_feats = jnp.maximum(
        jnp.dot(face_p_ref[...], w_head_ref[...], preferred_element_type=f32)
        + b_head_ref[...], 0.0)                                         # (49, 64)
    # AvgPool2d(kernel=7) on the 7x7 map == mean over the 49 patch rows
    head_pool = jnp.mean(head_feats, axis=0, keepdims=True)             # (1, 64)

    # ---- headloc_reduced: 3 x MaxPool2d(3, stride=2, padding=1) --------------------
    # Composition of the three stages (56->28->14->7) == one 15x15 max window with
    # stride 8 / padding 7 (clipped).  Done fully in VMEM via mask + reduce; the
    # result is assembled directly as a lane-dense (1,49) row in i*7+j order.
    hl_img = hl_img_ref[...]                                            # (56, 56)
    hh, ww = hl_img_ref.shape
    neg_inf = -jnp.inf
    row_idx = jax.lax.broadcasted_iota(jnp.int32, (hh, 1), 0)
    col_idx = jax.lax.broadcasted_iota(jnp.int32, (1, ww), 1)
    out_lane = jax.lax.broadcasted_iota(jnp.int32, (1, NP), 1)
    hl_row = jnp.zeros((1, NP), f32)
    m = 0
    for i in range(G7):
        hlo, hhi = max(0, 8 * i - 7), min(hh, 8 * i + 8)
        hmask = (row_idx >= hlo) & (row_idx < hhi)
        rmax = jnp.max(jnp.where(hmask, hl_img, neg_inf),
                       axis=0, keepdims=True)                           # (1, 56)
        for j in range(G7):
            wlo, whi = max(0, 8 * j - 7), min(ww, 8 * j + 8)
            wmask = (col_idx >= wlo) & (col_idx < whi)
            v = jnp.max(jnp.where(wmask, rmax, neg_inf),
                        axis=1, keepdims=True)                          # (1, 1)
            hl_row = jnp.where(out_lane == m, v, hl_row)                # lane i*7+j
            m += 1

    # ---- attFace linear + softmax over the 49 positions ----------------------------
    logits = (jnp.dot(head_pool, w_att_hf_ref[...], preferred_element_type=f32)
              + jnp.dot(hl_row, w_att_hl_ref[...], preferred_element_type=f32)
              + b_att_ref[...])                                         # (1, 49)
    logits = logits - jnp.max(logits, axis=1, keepdims=True)
    expv = jnp.exp(logits)
    alpha_row = expv * pl.reciprocal(
        jnp.sum(expv, axis=1, keepdims=True), approx=True)              # (1, 49)

    # (1,49) row -> (49,1) column via a diagonal mask (no in-kernel reshape/transpose)
    ii = jax.lax.broadcasted_iota(jnp.int32, (NP, NP), 0)
    jj = jax.lax.broadcasted_iota(jnp.int32, (NP, NP), 1)
    eye = ii == jj
    alpha_col = jnp.sum(jnp.where(eye, alpha_row, 0.0),
                        axis=1, keepdims=True)                          # (49, 1)

    # ---- gaze encoder on [gaze_vector_space | face | headloc.detach()] -------------
    gaze_feats = jnp.maximum(
        jnp.dot(gvs0_ref[...], w_gz_g0_ref[...], preferred_element_type=f32)
        + jnp.dot(gvs1_ref[...], w_gz_g1_ref[...], preferred_element_type=f32)
        + jnp.dot(gvs2_ref[...], w_gz_g2_ref[...], preferred_element_type=f32)
        + jnp.dot(face_p_ref[...], w_gz_face_ref[...], preferred_element_type=f32)
        + jnp.dot(hl_p_ref[...], w_gz_hl_ref[...], preferred_element_type=f32)
        + b_gz_ref[...], 0.0)                                           # (49, 64)
    gaze_pool = jnp.mean(gaze_feats, axis=0, keepdims=True)             # (1, 64)

    # ---- coarse decoder (global pool + Linear(64 -> 3)) as VPU matvec ---------------
    c0 = jnp.sum(w_coarse_ref[0:1, :] * gaze_pool, axis=1, keepdims=True) + b_coarse_ref[0:1, :]
    c1 = jnp.sum(w_coarse_ref[1:2, :] * gaze_pool, axis=1, keepdims=True) + b_coarse_ref[1:2, :]
    c2 = jnp.sum(w_coarse_ref[2:3, :] * gaze_pool, axis=1, keepdims=True) + b_coarse_ref[2:3, :]

    # gaze_vector_space_heatmap = <gvs, coarse_dir>, built directly in patch layout
    heat_p = (c0 * gvs0_ref[...] + c1 * gvs1_ref[...] + c2 * gvs2_ref[...])   # (49, 64)

    # ---- scene (saliency) encoder on [simg | heatmap | headloc] ---------------------
    sal_feats = jnp.maximum(
        jnp.dot(simg_p_ref[...], w_sal_img_ref[...], preferred_element_type=f32)
        + jnp.dot(heat_p, w_sal_heat_ref[...], preferred_element_type=f32)
        + jnp.dot(hl_p_ref[...], w_sal_hl_ref[...], preferred_element_type=f32)
        + b_sal_ref[...], 0.0)                                          # (49, 64)
    sal_pool = jnp.mean(sal_feats, axis=0, keepdims=True)               # (1, 64)

    # ---- attention fusion + heatmap decoder (1x1 conv) as a VPU lane reduction ------
    sal_att = alpha_col * sal_feats                                     # (49, 64)
    hm_col = (jnp.sum(sal_att * w_hm_sal_ref[...], axis=1, keepdims=True)
              + jnp.sum(head_feats * w_hm_head_ref[...], axis=1, keepdims=True)
              + b_hm_ref[...])                                          # (49, 1)
    # lane-dense (1,49) store instead of a masked (49,1) column store
    hm_out_ref[...] = jnp.sum(jnp.where(eye, hm_col, 0.0), axis=0, keepdims=True)

    # ---- fine decoder: pooled [saliency | gaze | head] -> Linear(192 -> 3), VPU -----
    fine_out_ref[...] = (
        jnp.sum(w_fine_sal_ref[...] * sal_pool, axis=1, keepdims=True)
        + jnp.sum(w_fine_gaze_ref[...] * gaze_pool, axis=1, keepdims=True)
        + jnp.sum(w_fine_head_ref[...] * head_pool, axis=1, keepdims=True)
        + b_fine_ref[...])                                              # (3, 1)


# ------------------------------ wrapper / glue ------------------------------

def _patchify_nchw(x, p):
    """(B, C, H, W) -> (B, (H/p)*(W/p), C*p*p); pixels flattened in (c, u, v) order."""
    b, c, h, w = x.shape
    hp, wp = h // p, w // p
    x = x.reshape(b, c, hp, p, wp, p)
    x = jnp.transpose(x, (0, 2, 4, 1, 3, 5))        # (B, Hp, Wp, C, p, p)
    return x.reshape(b, hp * wp, c * p * p)


def gazenet_forward(params, simg, gaze_vector_space, face, headloc):
    B, _, H, W = simg.shape
    hp, wp = H // PATCH, W // PATCH
    assert hp == G7 and wp == G7, "stand-in encoders assume a 56x56 input -> 7x7 grid"
    f32 = jnp.float32

    # --- one-time layout glue: patch extraction (one transpose per input) ---
    face_p = _patchify_nchw(face, PATCH)                                  # (B, 49, 192)
    simg_p = _patchify_nchw(simg, PATCH)                                  # (B, 49, 192)
    hl_p = _patchify_nchw(headloc, PATCH)                                 # (B, 49, 64)
    gvs_p = _patchify_nchw(
        jnp.transpose(gaze_vector_space, (0, 3, 1, 2)), PATCH)            # (B, 49, 192)
    gvs0 = gvs_p[..., 0:PP]
    gvs1 = gvs_p[..., PP:2 * PP]
    gvs2 = gvs_p[..., 2 * PP:3 * PP]
    hl_img = headloc.reshape(B, H, W)

    # --- weight plumbing (tiny reshapes / splits, once in XLA) ---
    def cw(w):  # (Cout, Cin, P, P) -> (Cin*P*P, Cout)
        return w.reshape(w.shape[0], -1).T

    w_head = cw(params["head_w"])
    b_head = params["head_b"].reshape(1, -1)

    gw = params["gaze_w"]        # (64, 7, 8, 8): [gvs(3) | face(3) | headloc(1)]
    w_gz_g0, w_gz_g1, w_gz_g2 = cw(gw[:, 0:1]), cw(gw[:, 1:2]), cw(gw[:, 2:3])
    w_gz_face, w_gz_hl = cw(gw[:, 3:6]), cw(gw[:, 6:7])
    b_gz = params["gaze_b"].reshape(1, -1)

    sw = params["sal_w"]         # (64, 5, 8, 8): [simg(3) | heatmap(1) | headloc(1)]
    w_sal_img, w_sal_heat, w_sal_hl = cw(sw[:, 0:3]), cw(sw[:, 3:4]), cw(sw[:, 4:5])
    b_sal = params["sal_b"].reshape(1, -1)

    aw = params["attface_w"]     # (49, 64 + 49)
    w_att_hf = aw[:, :FEAT].T    # (64, 49)
    w_att_hl = aw[:, FEAT:].T    # (49, 49)
    b_att = params["attface_b"].reshape(1, -1)

    w_coarse = params["coarse_w"]                  # (3, 64), rows = outputs
    b_coarse = params["coarse_b"].reshape(3, 1)
    fw = params["fine_w"]                          # (3, 192): [sal | gaze | head]
    w_fine_sal = fw[:, :FEAT]
    w_fine_gaze = fw[:, FEAT:2 * FEAT]
    w_fine_head = fw[:, 2 * FEAT:]
    b_fine = params["fine_b"].reshape(3, 1)

    hmw = params["hm_w"].reshape(1, 2 * FEAT)      # (1, 128): [sal_att(64) | head(64)]
    w_hm_sal, w_hm_head = hmw[:, :FEAT], hmw[:, FEAT:]
    b_hm = params["hm_b"].reshape(1, 1)

    # --- block specs: grid over batch; weight blocks identical every step ---
    def per_batch(shape):
        nd = len(shape)
        return pl.BlockSpec((None,) + shape, lambda b, _nd=nd: (b,) + (0,) * _nd)

    def full(arr):
        nd = arr.ndim
        return pl.BlockSpec(arr.shape, lambda b, _nd=nd: (0,) * _nd)

    weights = (w_head, b_head,
               w_gz_g0, w_gz_g1, w_gz_g2, w_gz_face, w_gz_hl, b_gz,
               w_sal_img, w_sal_heat, w_sal_hl, b_sal,
               w_att_hf, w_att_hl, b_att,
               w_coarse, b_coarse,
               w_fine_sal, w_fine_gaze, w_fine_head, b_fine,
               w_hm_sal, w_hm_head, b_hm)

    in_specs = ([per_batch((H, W)),
                 per_batch((NP, 3 * PP)),
                 per_batch((NP, PP)), per_batch((NP, PP)), per_batch((NP, PP)),
                 per_batch((NP, 3 * PP)),
                 per_batch((NP, PP))]
                + [full(w) for w in weights])

    out_specs = [per_batch((1, NP)),   # gaze heatmap, lane-dense row per batch
                 per_batch((3, 1))]    # fine direction
    out_shape = [jax.ShapeDtypeStruct((B, 1, NP), f32),
                 jax.ShapeDtypeStruct((B, 3, 1), f32)]

    hm, fine = pl.pallas_call(
        _gazenet_kernel,
        grid=(B,),
        in_specs=in_specs,
        out_specs=out_specs,
        out_shape=out_shape,
        compiler_params=pltpu.CompilerParams(
            # one batch element per grid step; lets v7x's two TensorCores split the
            # batch (no effect on single-core v5e/v6e).
            dimension_semantics=("parallel",)),
    )(hl_img, face_p, gvs0, gvs1, gvs2, simg_p, hl_p, *weights)

    gaze_heatmap = hm.reshape(B, 1, G7, G7)
    fine_dir_xyz = fine.reshape(B, 3)      # == fine_dir_xyz.squeeze() for B > 1
    return gaze_heatmap, fine_dir_xyz


# ------------------------------ main ------------------------------

if __name__ == "__main__":
    key = jax.random.PRNGKey(0)
    ks = jax.random.split(key, 20)

    B, H, W = 2, 56, 56          # 3x maxpool(3,2,1): 56->28->14->7 ; 56/8 = 7x7 feats
    CF = FEAT

    def init(k, shape, scale=0.05):
        return scale * jax.random.normal(k, shape, dtype=jnp.float32)

    params = {
        "head_w":    init(ks[0], (CF, 3, PATCH, PATCH)),
        "head_b":    init(ks[1], (CF,)),
        "gaze_w":    init(ks[2], (CF, 7, PATCH, PATCH)),
        "gaze_b":    init(ks[3], (CF,)),
        "sal_w":     init(ks[4], (CF, 5, PATCH, PATCH)),
        "sal_b":     init(ks[5], (CF,)),
        "attface_w": init(ks[6], (49, CF + 49)),   # nn.Linear(1024+784, 49) scaled down
        "attface_b": init(ks[7], (49,)),
        "coarse_w":  init(ks[8], (3, CF)),
        "coarse_b":  init(ks[9], (3,)),
        "fine_w":    init(ks[10], (3, 3 * CF)),
        "fine_b":    init(ks[11], (3,)),
        "hm_w":      init(ks[12], (1, 2 * CF, 1, 1)),
        "hm_b":      init(ks[13], (1,)),
    }

    simg = init(ks[14], (B, 3, H, W), scale=1.0)
    gaze_vector_space = init(ks[15], (B, H, W, 3), scale=1.0)
    face = init(ks[16], (B, 3, H, W), scale=1.0)
    headloc = init(ks[17], (B, 1, H, W), scale=1.0)

    fwd = jax.jit(gazenet_forward)
    gaze_heatmap, fine_dir_xyz = fwd(params, simg, gaze_vector_space, face, headloc)
    jax.block_until_ready((gaze_heatmap, fine_dir_xyz))

    assert gaze_heatmap.shape == (B, 1, 7, 7)
    assert fine_dir_xyz.shape == (B, 3)
    print("KERNEL_OK")
</pallas_src>

<mosaic_0001>
module attributes {stable_mosaic.version = 11 : i64} {
  func.func @_gazenet_kernel(%arg0: i32, %arg1: memref<1x56x56xf32, #tpu.memory_space<vmem>>, %arg2: memref<1x49x192xf32, #tpu.memory_space<vmem>>, %arg3: memref<1x49x64xf32, #tpu.memory_space<vmem>>, %arg4: memref<1x49x64xf32, #tpu.memory_space<vmem>>, %arg5: memref<1x49x64xf32, #tpu.memory_space<vmem>>, %arg6: memref<1x49x192xf32, #tpu.memory_space<vmem>>, %arg7: memref<1x49x64xf32, #tpu.memory_space<vmem>>, %arg8: memref<192x64xf32, #tpu.memory_space<vmem>>, %arg9: memref<1x64xf32, #tpu.memory_space<vmem>>, %arg10: memref<64x64xf32, #tpu.memory_space<vmem>>, %arg11: memref<64x64xf32, #tpu.memory_space<vmem>>, %arg12: memref<64x64xf32, #tpu.memory_space<vmem>>, %arg13: memref<192x64xf32, #tpu.memory_space<vmem>>, %arg14: memref<64x64xf32, #tpu.memory_space<vmem>>, %arg15: memref<1x64xf32, #tpu.memory_space<vmem>>, %arg16: memref<192x64xf32, #tpu.memory_space<vmem>>, %arg17: memref<64x64xf32, #tpu.memory_space<vmem>>, %arg18: memref<64x64xf32, #tpu.memory_space<vmem>>, %arg19: memref<1x64xf32, #tpu.memory_space<vmem>>, %arg20: memref<64x49xf32, #tpu.memory_space<vmem>>, %arg21: memref<49x49xf32, #tpu.memory_space<vmem>>, %arg22: memref<1x49xf32, #tpu.memory_space<vmem>>, %arg23: memref<3x64xf32, #tpu.memory_space<vmem>>, %arg24: memref<3x1xf32, #tpu.memory_space<vmem>>, %arg25: memref<3x64xf32, #tpu.memory_space<vmem>>, %arg26: memref<3x64xf32, #tpu.memory_space<vmem>>, %arg27: memref<3x64xf32, #tpu.memory_space<vmem>>, %arg28: memref<3x1xf32, #tpu.memory_space<vmem>>, %arg29: memref<1x64xf32, #tpu.memory_space<vmem>>, %arg30: memref<1x64xf32, #tpu.memory_space<vmem>>, %arg31: memref<1x1xf32, #tpu.memory_space<vmem>>, %arg32: memref<1x1x49xf32, #tpu.memory_space<vmem>>, %arg33: memref<1x3x1xf32, #tpu.memory_space<vmem>>) attributes {dimension_semantics = [#tpu.dimension_semantics<parallel>], iteration_bounds = array<i64: 2>, scalar_prefetch = 0 : i64, scratch_operands = 0 : i64, tpu.core_type = #tpu.core_type<tc>, window_params = [{transform_indices = @transform_0, window_bounds = array<i64: 1, 56, 56>}, {transform_indices = @transform_1, window_bounds = array<i64: 1, 49, 192>}, {transform_indices = @transform_2, window_bounds = array<i64: 1, 49, 64>}, {transform_indices = @transform_3, window_bounds = array<i64: 1, 49, 64>}, {transform_indices = @transform_4, window_bounds = array<i64: 1, 49, 64>}, {transform_indices = @transform_5, window_bounds = array<i64: 1, 49, 192>}, {transform_indices = @transform_6, window_bounds = array<i64: 1, 49, 64>}, {pipeline_mode = #tpu.pipeline_mode<synchronous>, transform_indices = @transform_7, window_bounds = array<i64: 192, 64>}, {pipeline_mode = #tpu.pipeline_mode<synchronous>, transform_indices = @transform_8, window_bounds = array<i64: 1, 64>}, {pipeline_mode = #tpu.pipeline_mode<synchronous>, transform_indices = @transform_9, window_bounds = array<i64: 64, 64>}, {pipeline_mode = #tpu.pipeline_mode<synchronous>, transform_indices = @transform_10, window_bounds = array<i64: 64, 64>}, {pipeline_mode = #tpu.pipeline_mode<synchronous>, transform_indices = @transform_11, window_bounds = array<i64: 64, 64>}, {pipeline_mode = #tpu.pipeline_mode<synchronous>, transform_indices = @transform_12, window_bounds = array<i64: 192, 64>}, {pipeline_mode = #tpu.pipeline_mode<synchronous>, transform_indices = @transform_13, window_bounds = array<i64: 64, 64>}, {pipeline_mode = #tpu.pipeline_mode<synchronous>, transform_indices = @transform_14, window_bounds = array<i64: 1, 64>}, {pipeline_mode = #tpu.pipeline_mode<synchronous>, transform_indices = @transform_15, window_bounds = array<i64: 192, 64>}, {pipeline_mode = #tpu.pipeline_mode<synchronous>, transform_indices = @transform_16, window_bounds = array<i64: 64, 64>}, {pipeline_mode = #tpu.pipeline_mode<synchronous>, transform_indices = @transform_17, window_bounds = array<i64: 64, 64>}, {pipeline_mode = #tpu.pipeline_mode<synchronous>, transform_indices = @transform_18, window_bounds = array<i64: 1, 64>}, {pipeline_mode = #tpu.pipeline_mode<synchronous>, transform_indices = @transform_19, window_bounds = array<i64: 64, 49>}, {pipeline_mode = #tpu.pipeline_mode<synchronous>, transform_indices = @transform_20, window_bounds = array<i64: 49, 49>}, {pipeline_mode = #tpu.pipeline_mode<synchronous>, transform_indices = @transform_21, window_bounds = array<i64: 1, 49>}, {pipeline_mode = #tpu.pipeline_mode<synchronous>, transform_indices = @transform_22, window_bounds = array<i64: 3, 64>}, {pipeline_mode = #tpu.pipeline_mode<synchronous>, transform_indices = @transform_23, window_bounds = array<i64: 3, 1>}, {pipeline_mode = #tpu.pipeline_mode<synchronous>, transform_indices = @transform_24, window_bounds = array<i64: 3, 64>}, {pipeline_mode = #tpu.pipeline_mode<synchronous>, transform_indices = @transform_25, window_bounds = array<i64: 3, 64>}, {pipeline_mode = #tpu.pipeline_mode<synchronous>, transform_indices = @transform_26, window_bounds = array<i64: 3, 64>}, {pipeline_mode = #tpu.pipeline_mode<synchronous>, transform_indices = @transform_27, window_bounds = array<i64: 3, 1>}, {pipeline_mode = #tpu.pipeline_mode<synchronous>, transform_indices = @transform_28, window_bounds = array<i64: 1, 64>}, {pipeline_mode = #tpu.pipeline_mode<synchronous>, transform_indices = @transform_29, window_bounds = array<i64: 1, 64>}, {pipeline_mode = #tpu.pipeline_mode<synchronous>, transform_indices = @transform_30, window_bounds = array<i64: 1, 1>}, {transform_indices = @transform_31, window_bounds = array<i64: 1, 1, 49>}, {transform_indices = @transform_32, window_bounds = array<i64: 1, 3, 1>}]} {
    %c0 = arith.constant 0 : index
    %c0_0 = arith.constant 0 : index
    %c0_1 = arith.constant 0 : index
    %0 = vector.load %arg2[%c0, %c0_0, %c0_1] : memref<1x49x192xf32, #tpu.memory_space<vmem>>, vector<1x49x192xf32>
    %1 = vector.shape_cast %0 : vector<1x49x192xf32> to vector<49x192xf32>
    %c0_2 = arith.constant 0 : index
    %c0_3 = arith.constant 0 : index
    %2 = vector.load %arg8[%c0_2, %c0_3] : memref<192x64xf32, #tpu.memory_space<vmem>>, vector<192x64xf32>
    %cst = arith.constant dense<0.000000e+00> : vector<49x64xf32>
    %3 = tpu.matmul %1, %2, %cst {dimension_numbers = #tpu.dot_dimension_numbers<[1], [0], [0], [1], [0, 0, 1, 1], [], []>} : vector<49x192xf32>, vector<192x64xf32>, vector<49x64xf32> -> vector<49x64xf32>
    %c0_4 = arith.constant 0 : index
    %c0_5 = arith.constant 0 : index
    %4 = vector.load %arg9[%c0_4, %c0_5] : memref<1x64xf32, #tpu.memory_space<vmem>>, vector<1x64xf32>
    %5 = vector.broadcast %4 : vector<1x64xf32> to vector<49x64xf32>
    %6 = arith.addf %3, %5 : vector<49x64xf32>
    %cst_6 = arith.constant 0.000000e+00 : f32
    %7 = vector.broadcast %cst_6 : f32 to vector<49x64xf32>
    %8 = arith.maximumf %6, %7 : vector<49x64xf32>
    %cst_7 = arith.constant dense<0.000000e+00> : vector<64xf32>
    %9 = vector.multi_reduction <add>, %8, %cst_7 [0] : vector<49x64xf32> to vector<64xf32>
    %10 = vector.shape_cast %9 : vector<64xf32> to vector<1x64xf32>
    %cst_8 = arith.constant 4.900000e+01 : f32
    %11 = vector.broadcast %cst_8 : f32 to vector<1x64xf32>
    %12 = arith.divf %10, %11 : vector<1x64xf32>
    %c0_9 = arith.constant 0 : index
    %c0_10 = arith.constant 0 : index
    %c0_11 = arith.constant 0 : index
    %13 = vector.load %arg1[%c0_9, %c0_10, %c0_11] : memref<1x56x56xf32, #tpu.memory_space<vmem>>, vector<1x56x56xf32>
    %14 = vector.shape_cast %13 : vector<1x56x56xf32> to vector<56x56xf32>
    %15 = tpu.iota {dimensions = array<i32: 0>} : vector<56x1xi32>
    %16 = tpu.iota {dimensions = array<i32: 1>} : vector<1x56xi32>
    %17 = tpu.iota {dimensions = array<i32: 1>} : vector<1x49xi32>
    %cst_12 = arith.constant 0.000000e+00 : f32
    %18 = vector.broadcast %cst_12 : f32 to vector<1x49xf32>
    %c0_i32 = arith.constant 0 : i32
    %19 = vector.broadcast %c0_i32 : i32 to vector<56x1xi32>
    %20 = arith.cmpi sge, %15, %19 : vector<56x1xi32>
    %c8_i32 = arith.constant 8 : i32
    %21 = vector.broadcast %c8_i32 : i32 to vector<56x1xi32>
    %22 = arith.cmpi slt, %15, %21 : vector<56x1xi32>
    %23 = arith.andi %20, %22 : vector<56x1xi1>
    %cst_13 = arith.constant 0xFF800000 : f32
    %24 = vector.shape_cast %23 : vector<56x1xi1> to vector<56x1xi1>
    %25 = vector.broadcast %24 : vector<56x1xi1> to vector<56x56xi1>
    %26 = vector.broadcast %cst_13 : f32 to vector<56x56xf32>
    %27 = arith.select %25, %14, %26 : vector<56x56xi1>, vector<56x56xf32>
    %cst_14 = arith.constant dense<0xFF800000> : vector<56xf32>
    %28 = vector.multi_reduction <maximumf>, %27, %cst_14 [0] : vector<56x56xf32> to vector<56xf32>
    %29 = vector.shape_cast %28 : vector<56xf32> to vector<1x56xf32>
    %c0_i32_15 = arith.constant 0 : i32
    %30 = vector.broadcast %c0_i32_15 : i32 to vector<1x56xi32>
    %31 = arith.cmpi sge, %16, %30 : vector<1x56xi32>
    %c8_i32_16 = arith.constant 8 : i32
    %32 = vector.broadcast %c8_i32_16 : i32 to vector<1x56xi32>
    %33 = arith.cmpi slt, %16, %32 : vector<1x56xi32>
    %34 = arith.andi %31, %33 : vector<1x56xi1>
    %cst_17 = arith.constant 0xFF800000 : f32
    %35 = vector.broadcast %cst_17 : f32 to vector<1x56xf32>
    %36 = arith.select %34, %29, %35 : vector<1x56xi1>, vector<1x56xf32>
    %cst_18 = arith.constant dense<0xFF800000> : vector<1xf32>
    %37 = vector.multi_reduction <maximumf>, %36, %cst_18 [1] : vector<1x56xf32> to vector<1xf32>
    %38 = vector.shape_cast %37 : vector<1xf32> to vector<1x1xf32>
    %c0_i32_19 = arith.constant 0 : i32
    %39 = vector.broadcast %c0_i32_19 : i32 to vector<1x49xi32>
    %40 = arith.cmpi eq, %17, %39 : vector<1x49xi32>
    %41 = vector.shape_cast %38 : vector<1x1xf32> to vector<1x1xf32>
    %42 = vector.broadcast %41 : vector<1x1xf32> to vector<1x49xf32>
    %43 = arith.select %40, %42, %18 : vector<1x49xi1>, vector<1x49xf32>
    %c1_i32 = arith.constant 1 : i32
    %44 = vector.broadcast %c1_i32 : i32 to vector<1x56xi32>
    %45 = arith.cmpi sge, %16, %44 : vector<1x56xi32>
    %c16_i32 = arith.constant 16 : i32
    %46 = vector.broadcast %c16_i32 : i32 to vector<1x56xi32>
    %47 = arith.cmpi slt, %16, %46 : vector<1x56xi32>
    %48 = arith.andi %45, %47 : vector<1x56xi1>
    %cst_20 = arith.constant 0xFF800000 : f32
    %49 = vector.broadcast %cst_20 : f32 to vector<1x56xf32>
    %50 = arith.select %48, %29, %49 : vector<1x56xi1>, vector<1x56xf32>
    %cst_21 = arith.constant dense<0xFF800000> : vector<1xf32>
    %51 = vector.multi_reduction <maximumf>, %50, %cst_21 [1] : vector<1x56xf32> to vector<1xf32>
    %52 = vector.shape_cast %51 : vector<1xf32> to vector<1x1xf32>
    %c1_i32_22 = arith.constant 1 : i32
    %53 = vector.broadcast %c1_i32_22 : i32 to vector<1x49xi32>
    %54 = arith.cmpi eq, %17, %53 : vector<1x49xi32>
    %55 = vector.shape_cast %52 : vector<1x1xf32> to vector<1x1xf32>
    %56 = vector.broadcast %55 : vector<1x1xf32> to vector<1x49xf32>
    %57 = arith.select %54, %56, %43 : vector<1x49xi1>, vector<1x49xf32>
    %c9_i32 = arith.constant 9 : i32
    %58 = vector.broadcast %c9_i32 : i32 to vector<1x56xi32>
    %59 = arith.cmpi sge, %16, %58 : vector<1x56xi32>
    %c24_i32 = arith.constant 24 : i32
    %60 = vector.broadcast %c24_i32 : i32 to vector<1x56xi32>
    %61 = arith.cmpi slt, %16, %60 : vector<1x56xi32>
    %62 = arith.andi %59, %61 : vector<1x56xi1>
    %cst_23 = arith.constant 0xFF800000 : f32
    %63 = vector.broadcast %cst_23 : f32 to vector<1x56xf32>
    %64 = arith.select %62, %29, %63 : vector<1x56xi1>, vector<1x56xf32>
    %cst_24 = arith.constant dense<0xFF800000> : vector<1xf32>
    %65 = vector.multi_reduction <maximumf>, %64, %cst_24 [1] : vector<1x56xf32> to vector<1xf32>
    %66 = vector.shape_cast %65 : vector<1xf32> to vector<1x1xf32>
    %c2_i32 = arith.constant 2 : i32
    %67 = vector.broadcast %c2_i32 : i32 to vector<1x49xi32>
    %68 = arith.cmpi eq, %17, %67 : vector<1x49xi32>
    %69 = vector.shape_cast %66 : vector<1x1xf32> to vector<1x1xf32>
    %70 = vector.broadcast %69 : vector<1x1xf32> to vector<1x49xf32>
    %71 = arith.select %68, %70, %57 : vector<1x49xi1>, vector<1x49xf32>
    %c17_i32 = arith.constant 17 : i32
    %72 = vector.broadcast %c17_i32 : i32 to vector<1x56xi32>
    %73 = arith.cmpi sge, %16, %72 : vector<1x56xi32>
    %c32_i32 = arith.constant 32 : i32
    %74 = vector.broadcast %c32_i32 : i32 to vector<1x56xi32>
    %75 = arith.cmpi slt, %16, %74 : vector<1x56xi32>
    %76 = arith.andi %73, %75 : vector<1x56xi1>
    %cst_25 = arith.constant 0xFF800000 : f32
    %77 = vector.broadcast %cst_25 : f32 to vector<1x56xf32>
    %78 = arith.select %76, %29, %77 : vector<1x56xi1>, vector<1x56xf32>
    %cst_26 = arith.constant dense<0xFF800000> : vector<1xf32>
    %79 = vector.multi_reduction <maximumf>, %78, %cst_26 [1] : vector<1x56xf32> to vector<1xf32>
    %80 = vector.shape_cast %79 : vector<1xf32> to vector<1x1xf32>
    %c3_i32 = arith.constant 3 : i32
    %81 = vector.broadcast %c3_i32 : i32 to vector<1x49xi32>
    %82 = arith.cmpi eq, %17, %81 : vector<1x49xi32>
    %83 = vector.shape_cast %80 : vector<1x1xf32> to vector<1x1xf32>
    %84 = vector.broadcast %83 : vector<1x1xf32> to vector<1x49xf32>
    %85 = arith.select %82, %84, %71 : vector<1x49xi1>, vector<1x49xf32>
    %c25_i32 = arith.constant 25 : i32
    %86 = vector.broadcast %c25_i32 : i32 to vector<1x56xi32>
    %87 = arith.cmpi sge, %16, %86 : vector<1x56xi32>
    %c40_i32 = arith.constant 40 : i32
    %88 = vector.broadcast %c40_i32 : i32 to vector<1x56xi32>
    %89 = arith.cmpi slt, %16, %88 : vector<1x56xi32>
    %90 = arith.andi %87, %89 : vector<1x56xi1>
    %cst_27 = arith.constant 0xFF800000 : f32
    %91 = vector.broadcast %cst_27 : f32 to vector<1x56xf32>
    %92 = arith.select %90, %29, %91 : vector<1x56xi1>, vector<1x56xf32>
    %cst_28 = arith.constant dense<0xFF800000> : vector<1xf32>
    %93 = vector.multi_reduction <maximumf>, %92, %cst_28 [1] : vector<1x56xf32> to vector<1xf32>
    %94 = vector.shape_cast %93 : vector<1xf32> to vector<1x1xf32>
    %c4_i32 = arith.constant 4 : i32
    %95 = vector.broadcast %c4_i32 : i32 to vector<1x49xi32>
    %96 = arith.cmpi eq, %17, %95 : vector<1x49xi32>
    %97 = vector.shape_cast %94 : vector<1x1xf32> to vector<1x1xf32>
    %98 = vector.broadcast %97 : vector<1x1xf32> to vector<1x49xf32>
    %99 = arith.select %96, %98, %85 : vector<1x49xi1>, vector<1x49xf32>
    %c33_i32 = arith.constant 33 : i32
    %100 = vector.broadcast %c33_i32 : i32 to vector<1x56xi32>
    %101 = arith.cmpi sge, %16, %100 : vector<1x56xi32>
    %c48_i32 = arith.constant 48 : i32
    %102 = vector.broadcast %c48_i32 : i32 to vector<1x56xi32>
    %103 = arith.cmpi slt, %16, %102 : vector<1x56xi32>
    %104 = arith.andi %101, %103 : vector<1x56xi1>
    %cst_29 = arith.constant 0xFF800000 : f32
    %105 = vector.broadcast %cst_29 : f32 to vector<1x56xf32>
    %106 = arith.select %104, %29, %105 : vector<1x56xi1>, vector<1x56xf32>
    %cst_30 = arith.constant dense<0xFF800000> : vector<1xf32>
    %107 = vector.multi_reduction <maximumf>, %106, %cst_30 [1] : vector<1x56xf32> to vector<1xf32>
    %108 = vector.shape_cast %107 : vector<1xf32> to vector<1x1xf32>
    %c5_i32 = arith.constant 5 : i32
    %109 = vector.broadcast %c5_i32 : i32 to vector<1x49xi32>
    %110 = arith.cmpi eq, %17, %109 : vector<1x49xi32>
    %111 = vector.shape_cast %108 : vector<1x1xf32> to vector<1x1xf32>
    %112 = vector.broadcast %111 : vector<1x1xf32> to vector<1x49xf32>
    %113 = arith.select %110, %112, %99 : vector<1x49xi1>, vector<1x49xf32>
    %c41_i32 = arith.constant 41 : i32
    %114 = vector.broadcast %c41_i32 : i32 to vector<1x56xi32>
    %115 = arith.cmpi sge, %16, %114 : vector<1x56xi32>
    %c56_i32 = arith.constant 56 : i32
    %116 = vector.broadcast %c56_i32 : i32 to vector<1x56xi32>
    %117 = arith.cmpi slt, %16, %116 : vector<1x56xi32>
    %118 = arith.andi %115, %117 : vector<1x56xi1>
    %cst_31 = arith.constant 0xFF800000 : f32
    %119 = vector.broadcast %cst_31 : f32 to vector<1x56xf32>
    %120 = arith.select %118, %29, %119 : vector<1x56xi1>, vector<1x56xf32>
    %cst_32 = arith.constant dense<0xFF800000> : vector<1xf32>
    %121 = vector.multi_reduction <maximumf>, %120, %cst_32 [1] : vector<1x56xf32> to vector<1xf32>
    %122 = vector.shape_cast %121 : vector<1xf32> to vector<1x1xf32>
    %c6_i32 = arith.constant 6 : i32
    %123 = vector.broadcast %c6_i32 : i32 to vector<1x49xi32>
    %124 = arith.cmpi eq, %17, %123 : vector<1x49xi32>
    %125 = vector.shape_cast %122 : vector<1x1xf32> to vector<1x1xf32>
    %126 = vector.broadcast %125 : vector<1x1xf32> to vector<1x49xf32>
    %127 = arith.select %124, %126, %113 : vector<1x49xi1>, vector<1x49xf32>
    %c1_i32_33 = arith.constant 1 : i32
    %128 = vector.broadcast %c1_i32_33 : i32 to vector<56x1xi32>
    %129 = arith.cmpi sge, %15, %128 : vector<56x1xi32>
    %c16_i32_34 = arith.constant 16 : i32
    %130 = vector.broadcast %c16_i32_34 : i32 to vector<56x1xi32>
    %131 = arith.cmpi slt, %15, %130 : vector<56x1xi32>
    %132 = arith.andi %129, %131 : vector<56x1xi1>
    %cst_35 = arith.constant 0xFF800000 : f32
    %133 = vector.shape_cast %132 : vector<56x1xi1> to vector<56x1xi1>
    %134 = vector.broadcast %133 : vector<56x1xi1> to vector<56x56xi1>
    %135 = vector.broadcast %cst_35 : f32 to vector<56x56xf32>
    %136 = arith.select %134, %14, %135 : vector<56x56xi1>, vector<56x56xf32>
    %cst_36 = arith.constant dense<0xFF800000> : vector<56xf32>
    %137 = vector.multi_reduction <maximumf>, %136, %cst_36 [0] : vector<56x56xf32> to vector<56xf32>
    %138 = vector.shape_cast %137 : vector<56xf32> to vector<1x56xf32>
    %c0_i32_37 = arith.constant 0 : i32
    %139 = vector.broadcast %c0_i32_37 : i32 to vector<1x56xi32>
    %140 = arith.cmpi sge, %16, %139 : vector<1x56xi32>
    %c8_i32_38 = arith.constant 8 : i32
    %141 = vector.broadcast %c8_i32_38 : i32 to vector<1x56xi32>
    %142 = arith.cmpi slt, %16, %141 : vector<1x56xi32>
    %143 = arith.andi %140, %142 : vector<1x56xi1>
    %cst_39 = arith.constant 0xFF800000 : f32
    %144 = vector.broadcast %cst_39 : f32 to vector<1x56xf32>
    %145 = arith.select %143, %138, %144 : vector<1x56xi1>, vector<1x56xf32>
    %cst_40 = arith.constant dense<0xFF800000> : vector<1xf32>
    %146 = vector.multi_reduction <maximumf>, %145, %cst_40 [1] : vector<1x56xf32> to vector<1xf32>
    %147 = vector.shape_cast %146 : vector<1xf32> to vector<1x1xf32>
    %c7_i32 = arith.constant 7 : i32
    %148 = vector.broadcast %c7_i32 : i32 to vector<1x49xi32>
    %149 = arith.cmpi eq, %17, %148 : vector<1x49xi32>
    %150 = vector.shape_cast %147 : vector<1x1xf32> to vector<1x1xf32>
    %151 = vector.broadcast %150 : vector<1x1xf32> to vector<1x49xf32>
    %152 = arith.select %149, %151, %127 : vector<1x49xi1>, vector<1x49xf32>
    %c1_i32_41 = arith.constant 1 : i32
    %153 = vector.broadcast %c1_i32_41 : i32 to vector<1x56xi32>
    %154 = arith.cmpi sge, %16, %153 : vector<1x56xi32>
    %c16_i32_42 = arith.constant 16 : i32
    %155 = vector.broadcast %c16_i32_42 : i32 to vector<1x56xi32>
    %156 = arith.cmpi slt, %16, %155 : vector<1x56xi32>
    %157 = arith.andi %154, %156 : vector<1x56xi1>
    %cst_43 = arith.constant 0xFF800000 : f32
    %158 = vector.broadcast %cst_43 : f32 to vector<1x56xf32>
    %159 = arith.select %157, %138, %158 : vector<1x56xi1>, vector<1x56xf32>
    %cst_44 = arith.constant dense<0xFF800000> : vector<1xf32>
    %160 = vector.multi_reduction <maximumf>, %159, %cst_44 [1] : vector<1x56xf32> to vector<1xf32>
    %161 = vector.shape_cast %160 : vector<1xf32> to vector<1x1xf32>
    %c8_i32_45 = arith.constant 8 : i32
    %162 = vector.broadcast %c8_i32_45 : i32 to vector<1x49xi32>
    %163 = arith.cmpi eq, %17, %162 : vector<1x49xi32>
    %164 = vector.shape_cast %161 : vector<1x1xf32> to vector<1x1xf32>
    %165 = vector.broadcast %164 : vector<1x1xf32> to vector<1x49xf32>
    %166 = arith.select %163, %165, %152 : vector<1x49xi1>, vector<1x49xf32>
    %c9_i32_46 = arith.constant 9 : i32
    %167 = vector.broadcast %c9_i32_46 : i32 to vector<1x56xi32>
    %168 = arith.cmpi sge, %16, %167 : vector<1x56xi32>
    %c24_i32_47 = arith.constant 24 : i32
    %169 = vector.broadcast %c24_i32_47 : i32 to vector<1x56xi32>
    %170 = arith.cmpi slt, %16, %169 : vector<1x56xi32>
    %171 = arith.andi %168, %170 : vector<1x56xi1>
    %cst_48 = arith.constant 0xFF800000 : f32
    %172 = vector.broadcast %cst_48 : f32 to vector<1x56xf32>
    %173 = arith.select %171, %138, %172 : vector<1x56xi1>, vector<1x56xf32>
    %cst_49 = arith.constant dense<0xFF800000> : vector<1xf32>
    %174 = vector.multi_reduction <maximumf>, %173, %cst_49 [1] : vector<1x56xf32> to vector<1xf32>
    %175 = vector.shape_cast %174 : vector<1xf32> to vector<1x1xf32>
    %c9_i32_50 = arith.constant 9 : i32
    %176 = vector.broadcast %c9_i32_50 : i32 to vector<1x49xi32>
    %177 = arith.cmpi eq, %17, %176 : vector<1x49xi32>
    %178 = vector.shape_cast %175 : vector<1x1xf32> to vector<1x1xf32>
    %179 = vector.broadcast %178 : vector<1x1xf32> to vector<1x49xf32>
    %180 = arith.select %177, %179, %166 : vector<1x49xi1>, vector<1x49xf32>
    %c17_i32_51 = arith.constant 17 : i32
    %181 = vector.broadcast %c17_i32_51 : i32 to vector<1x56xi32>
    %182 = arith.cmpi sge, %16, %181 : vector<1x56xi32>
    %c32_i32_52 = arith.constant 32 : i32
    %183 = vector.broadcast %c32_i32_52 : i32 to vector<1x56xi32>
    %184 = arith.cmpi slt, %16, %183 : vector<1x56xi32>
    %185 = arith.andi %182, %184 : vector<1x56xi1>
    %cst_53 = arith.constant 0xFF800000 : f32
    %186 = vector.broadcast %cst_53 : f32 to vector<1x56xf32>
    %187 = arith.select %185, %138, %186 : vector<1x56xi1>, vector<1x56xf32>
    %cst_54 = arith.constant dense<0xFF800000> : vector<1xf32>
    %188 = vector.multi_reduction <maximumf>, %187, %cst_54 [1] : vector<1x56xf32> to vector<1xf32>
    %189 = vector.shape_cast %188 : vector<1xf32> to vector<1x1xf32>
    %c10_i32 = arith.constant 10 : i32
    %190 = vector.broadcast %c10_i32 : i32 to vector<1x49xi32>
    %191 = arith.cmpi eq, %17, %190 : vector<1x49xi32>
    %192 = vector.shape_cast %189 : vector<1x1xf32> to vector<1x1xf32>
    %193 = vector.broadcast %192 : vector<1x1xf32> to vector<1x49xf32>
    %194 = arith.select %191, %193, %180 : vector<1x49xi1>, vector<1x49xf32>
    %c25_i32_55 = arith.constant 25 : i32
    %195 = vector.broadcast %c25_i32_55 : i32 to vector<1x56xi32>
    %196 = arith.cmpi sge, %16, %195 : vector<1x56xi32>
    %c40_i32_56 = arith.constant 40 : i32
    %197 = vector.broadcast %c40_i32_56 : i32 to vector<1x56xi32>
    %198 = arith.cmpi slt, %16, %197 : vector<1x56xi32>
    %199 = arith.andi %196, %198 : vector<1x56xi1>
    %cst_57 = arith.constant 0xFF800000 : f32
    %200 = vector.broadcast %cst_57 : f32 to vector<1x56xf32>
    %201 = arith.select %199, %138, %200 : vector<1x56xi1>, vector<1x56xf32>
    %cst_58 = arith.constant dense<0xFF800000> : vector<1xf32>
    %202 = vector.multi_reduction <maximumf>, %201, %cst_58 [1] : vector<1x56xf32> to vector<1xf32>
    %203 = vector.shape_cast %202 : vector<1xf32> to vector<1x1xf32>
    %c11_i32 = arith.constant 11 : i32
    %204 = vector.broadcast %c11_i32 : i32 to vector<1x49xi32>
    %205 = arith.cmpi eq, %17, %204 : vector<1x49xi32>
    %206 = vector.shape_cast %203 : vector<1x1xf32> to vector<1x1xf32>
    %207 = vector.broadcast %206 : vector<1x1xf32> to vector<1x49xf32>
    %208 = arith.select %205, %207, %194 : vector<1x49xi1>, vector<1x49xf32>
    %c33_i32_59 = arith.constant 33 : i32
    %209 = vector.broadcast %c33_i32_59 : i32 to vector<1x56xi32>
    %210 = arith.cmpi sge, %16, %209 : vector<1x56xi32>
    %c48_i32_60 = arith.constant 48 : i32
    %211 = vector.broadcast %c48_i32_60 : i32 to vector<1x56xi32>
    %212 = arith.cmpi slt, %16, %211 : vector<1x56xi32>
    %213 = arith.andi %210, %212 : vector<1x56xi1>
    %cst_61 = arith.constant 0xFF800000 : f32
    %214 = vector.broadcast %cst_61 : f32 to vector<1x56xf32>
    %215 = arith.select %213, %138, %214 : vector<1x56xi1>, vector<1x56xf32>
    %cst_62 = arith.constant dense<0xFF800000> : vector<1xf32>
    %216 = vector.multi_reduction <maximumf>, %215, %cst_62 [1] : vector<1x56xf32> to vector<1xf32>
    %217 = vector.shape_cast %216 : vector<1xf32> to vector<1x1xf32>
    %c12_i32 = arith.constant 12 : i32
    %218 = vector.broadcast %c12_i32 : i32 to vector<1x49xi32>
    %219 = arith.cmpi eq, %17, %218 : vector<1x49xi32>
    %220 = vector.shape_cast %217 : vector<1x1xf32> to vector<1x1xf32>
    %221 = vector.broadcast %220 : vector<1x1xf32> to vector<1x49xf32>
    %222 = arith.select %219, %221, %208 : vector<1x49xi1>, vector<1x49xf32>
    %c41_i32_63 = arith.constant 41 : i32
    %223 = vector.broadcast %c41_i32_63 : i32 to vector<1x56xi32>
    %224 = arith.cmpi sge, %16, %223 : vector<1x56xi32>
    %c56_i32_64 = arith.constant 56 : i32
    %225 = vector.broadcast %c56_i32_64 : i32 to vector<1x56xi32>
    %226 = arith.cmpi slt, %16, %225 : vector<1x56xi32>
    %227 = arith.andi %224, %226 : vector<1x56xi1>
    %cst_65 = arith.constant 0xFF800000 : f32
    %228 = vector.broadcast %cst_65 : f32 to vector<1x56xf32>
    %229 = arith.select %227, %138, %228 : vector<1x56xi1>, vector<1x56xf32>
    %cst_66 = arith.constant dense<0xFF800000> : vector<1xf32>
    %230 = vector.multi_reduction <maximumf>, %229, %cst_66 [1] : vector<1x56xf32> to vector<1xf32>
    %231 = vector.shape_cast %230 : vector<1xf32> to vector<1x1xf32>
    %c13_i32 = arith.constant 13 : i32
    %232 = vector.broadcast %c13_i32 : i32 to vector<1x49xi32>
    %233 = arith.cmpi eq, %17, %232 : vector<1x49xi32>
    %234 = vector.shape_cast %231 : vector<1x1xf32> to vector<1x1xf32>
    %235 = vector.broadcast %234 : vector<1x1xf32> to vector<1x49xf32>
    %236 = arith.select %233, %235, %222 : vector<1x49xi1>, vector<1x49xf32>
    %c9_i32_67 = arith.constant 9 : i32
    %237 = vector.broadcast %c9_i32_67 : i32 to vector<56x1xi32>
    %238 = arith.cmpi sge, %15, %237 : vector<56x1xi32>
    %c24_i32_68 = arith.constant 24 : i32
    %239 = vector.broadcast %c24_i32_68 : i32 to vector<56x1xi32>
    %240 = arith.cmpi slt, %15, %239 : vector<56x1xi32>
    %241 = arith.andi %238, %240 : vector<56x1xi1>
    %cst_69 = arith.constant 0xFF800000 : f32
    %242 = vector.shape_cast %241 : vector<56x1xi1> to vector<56x1xi1>
    %243 = vector.broadcast %242 : vector<56x1xi1> to vector<56x56xi1>
    %244 = vector.broadcast %cst_69 : f32 to vector<56x56xf32>
    %245 = arith.select %243, %14, %244 : vector<56x56xi1>, vector<56x56xf32>
    %cst_70 = arith.constant dense<0xFF800000> : vector<56xf32>
    %246 = vector.multi_reduction <maximumf>, %245, %cst_70 [0] : vector<56x56xf32> to vector<56xf32>
    %247 = vector.shape_cast %246 : vector<56xf32> to vector<1x56xf32>
    %c0_i32_71 = arith.constant 0 : i32
    %248 = vector.broadcast %c0_i32_71 : i32 to vector<1x56xi32>
    %249 = arith.cmpi sge, %16, %248 : vector<1x56xi32>
    %c8_i32_72 = arith.constant 8 : i32
    %250 = vector.broadcast %c8_i32_72 : i32 to vector<1x56xi32>
    %251 = arith.cmpi slt, %16, %250 : vector<1x56xi32>
    %252 = arith.andi %249, %251 : vector<1x56xi1>
    %cst_73 = arith.constant 0xFF800000 : f32
    %253 = vector.broadcast %cst_73 : f32 to vector<1x56xf32>
    %254 = arith.select %252, %247, %253 : vector<1x56xi1>, vector<1x56xf32>
    %cst_74 = arith.constant dense<0xFF800000> : vector<1xf32>
    %255 = vector.multi_reduction <maximumf>, %254, %cst_74 [1] : vector<1x56xf32> to vector<1xf32>
    %256 = vector.shape_cast %255 : vector<1xf32> to vector<1x1xf32>
    %c14_i32 = arith.constant 14 : i32
    %257 = vector.broadcast %c14_i32 : i32 to vector<1x49xi32>
    %258 = arith.cmpi eq, %17, %257 : vector<1x49xi32>
    %259 = vector.shape_cast %256 : vector<1x1xf32> to vector<1x1xf32>
    %260 = vector.broadcast %259 : vector<1x1xf32> to vector<1x49xf32>
    %261 = arith.select %258, %260, %236 : vector<1x49xi1>, vector<1x49xf32>
    %c1_i32_75 = arith.constant 1 : i32
    %262 = vector.broadcast %c1_i32_75 : i32 to vector<1x56xi32>
    %263 = arith.cmpi sge, %16, %262 : vector<1x56xi32>
    %c16_i32_76 = arith.constant 16 : i32
    %264 = vector.broadcast %c16_i32_76 : i32 to vector<1x56xi32>
    %265 = arith.cmpi slt, %16, %264 : vector<1x56xi32>
    %266 = arith.andi %263, %265 : vector<1x56xi1>
    %cst_77 = arith.constant 0xFF800000 : f32
    %267 = vector.broadcast %cst_77 : f32 to vector<1x56xf32>
    %268 = arith.select %266, %247, %267 : vector<1x56xi1>, vector<1x56xf32>
    %cst_78 = arith.constant dense<0xFF800000> : vector<1xf32>
    %269 = vector.multi_reduction <maximumf>, %268, %cst_78 [1] : vector<1x56xf32> to vector<1xf32>
    %270 = vector.shape_cast %269 : vector<1xf32> to vector<1x1xf32>
    %c15_i32 = arith.constant 15 : i32
    %271 = vector.broadcast %c15_i32 : i32 to vector<1x49xi32>
    %272 = arith.cmpi eq, %17, %271 : vector<1x49xi32>
    %273 = vector.shape_cast %270 : vector<1x1xf32> to vector<1x1xf32>
    %274 = vector.broadcast %273 : vector<1x1xf32> to vector<1x49xf32>
    %275 = arith.select %272, %274, %261 : vector<1x49xi1>, vector<1x49xf32>
    %c9_i32_79 = arith.constant 9 : i32
    %276 = vector.broadcast %c9_i32_79 : i32 to vector<1x56xi32>
    %277 = arith.cmpi sge, %16, %276 : vector<1x56xi32>
    %c24_i32_80 = arith.constant 24 : i32
    %278 = vector.broadcast %c24_i32_80 : i32 to vector<1x56xi32>
    %279 = arith.cmpi slt, %16, %278 : vector<1x56xi32>
    %280 = arith.andi %277, %279 : vector<1x56xi1>
    %cst_81 = arith.constant 0xFF800000 : f32
    %281 = vector.broadcast %cst_81 : f32 to vector<1x56xf32>
    %282 = arith.select %280, %247, %281 : vector<1x56xi1>, vector<1x56xf32>
    %cst_82 = arith.constant dense<0xFF800000> : vector<1xf32>
    %283 = vector.multi_reduction <maximumf>, %282, %cst_82 [1] : vector<1x56xf32> to vector<1xf32>
    %284 = vector.shape_cast %283 : vector<1xf32> to vector<1x1xf32>
    %c16_i32_83 = arith.constant 16 : i32
    %285 = vector.broadcast %c16_i32_83 : i32 to vector<1x49xi32>
    %286 = arith.cmpi eq, %17, %285 : vector<1x49xi32>
    %287 = vector.shape_cast %284 : vector<1x1xf32> to vector<1x1xf32>
    %288 = vector.broadcast %287 : vector<1x1xf32> to vector<1x49xf32>
    %289 = arith.select %286, %288, %275 : vector<1x49xi1>, vector<1x49xf32>
    %c17_i32_84 = arith.constant 17 : i32
    %290 = vector.broadcast %c17_i32_84 : i32 to vector<1x56xi32>
    %291 = arith.cmpi sge, %16, %290 : vector<1x56xi32>
    %c32_i32_85 = arith.constant 32 : i32
    %292 = vector.broadcast %c32_i32_85 : i32 to vector<1x56xi32>
    %293 = arith.cmpi slt, %16, %292 : vector<1x56xi32>
    %294 = arith.andi %291, %293 : vector<1x56xi1>
    %cst_86 = arith.constant 0xFF800000 : f32
    %295 = vector.broadcast %cst_86 : f32 to vector<1x56xf32>
    %296 = arith.select %294, %247, %295 : vector<1x56xi1>, vector<1x56xf32>
    %cst_87 = arith.constant dense<0xFF800000> : vector<1xf32>
    %297 = vector.multi_reduction <maximumf>, %296, %cst_87 [1] : vector<1x56xf32> to vector<1xf32>
    %298 = vector.shape_cast %297 : vector<1xf32> to vector<1x1xf32>
    %c17_i32_88 = arith.constant 17 : i32
    %299 = vector.broadcast %c17_i32_88 : i32 to vector<1x49xi32>
    %300 = arith.cmpi eq, %17, %299 : vector<1x49xi32>
    %301 = vector.shape_cast %298 : vector<1x1xf32> to vector<1x1xf32>
    %302 = vector.broadcast %301 : vector<1x1xf32> to vector<1x49xf32>
    %303 = arith.select %300, %302, %289 : vector<1x49xi1>, vector<1x49xf32>
    %c25_i32_89 = arith.constant 25 : i32
    %304 = vector.broadcast %c25_i32_89 : i32 to vector<1x56xi32>
    %305 = arith.cmpi sge, %16, %304 : vector<1x56xi32>
    %c40_i32_90 = arith.constant 40 : i32
    %306 = vector.broadcast %c40_i32_90 : i32 to vector<1x56xi32>
    %307 = arith.cmpi slt, %16, %306 : vector<1x56xi32>
    %308 = arith.andi %305, %307 : vector<1x56xi1>
    %cst_91 = arith.constant 0xFF800000 : f32
    %309 = vector.broadcast %cst_91 : f32 to vector<1x56xf32>
    %310 = arith.select %308, %247, %309 : vector<1x56xi1>, vector<1x56xf32>
    %cst_92 = arith.constant dense<0xFF800000> : vector<1xf32>
    %311 = vector.multi_reduction <maximumf>, %310, %cst_92 [1] : vector<1x56xf32> to vector<1xf32>
    %312 = vector.shape_cast %311 : vector<1xf32> to vector<1x1xf32>
    %c18_i32 = arith.constant 18 : i32
    %313 = vector.broadcast %c18_i32 : i32 to vector<1x49xi32>
    %314 = arith.cmpi eq, %17, %313 : vector<1x49xi32>
    %315 = vector.shape_cast %312 : vector<1x1xf32> to vector<1x1xf32>
    %316 = vector.broadcast %315 : vector<1x1xf32> to vector<1x49xf32>
    %317 = arith.select %314, %316, %303 : vector<1x49xi1>, vector<1x49xf32>
    %c33_i32_93 = arith.constant 33 : i32
    %318 = vector.broadcast %c33_i32_93 : i32 to vector<1x56xi32>
    %319 = arith.cmpi sge, %16, %318 : vector<1x56xi32>
    %c48_i32_94 = arith.constant 48 : i32
    %320 = vector.broadcast %c48_i32_94 : i32 to vector<1x56xi32>
    %321 = arith.cmpi slt, %16, %320 : vector<1x56xi32>
    %322 = arith.andi %319, %321 : vector<1x56xi1>
    %cst_95 = arith.constant 0xFF800000 : f32
    %323 = vector.broadcast %cst_95 : f32 to vector<1x56xf32>
    %324 = arith.select %322, %247, %323 : vector<1x56xi1>, vector<1x56xf32>
    %cst_96 = arith.constant dense<0xFF800000> : vector<1xf32>
    %325 = vector.multi_reduction <maximumf>, %324, %cst_96 [1] : vector<1x56xf32> to vector<1xf32>
    %326 = vector.shape_cast %325 : vector<1xf32> to vector<1x1xf32>
    %c19_i32 = arith.constant 19 : i32
    %327 = vector.broadcast %c19_i32 : i32 to vector<1x49xi32>
    %328 = arith.cmpi eq, %17, %327 : vector<1x49xi32>
    %329 = vector.shape_cast %326 : vector<1x1xf32> to vector<1x1xf32>
    %330 = vector.broadcast %329 : vector<1x1xf32> to vector<1x49xf32>
    %331 = arith.select %328, %330, %317 : vector<1x49xi1>, vector<1x49xf32>
    %c41_i32_97 = arith.constant 41 : i32
    %332 = vector.broadcast %c41_i32_97 : i32 to vector<1x56xi32>
    %333 = arith.cmpi sge, %16, %332 : vector<1x56xi32>
    %c56_i32_98 = arith.constant 56 : i32
    %334 = vector.broadcast %c56_i32_98 : i32 to vector<1x56xi32>
    %335 = arith.cmpi slt, %16, %334 : vector<1x56xi32>
    %336 = arith.andi %333, %335 : vector<1x56xi1>
    %cst_99 = arith.constant 0xFF800000 : f32
    %337 = vector.broadcast %cst_99 : f32 to vector<1x56xf32>
    %338 = arith.select %336, %247, %337 : vector<1x56xi1>, vector<1x56xf32>
    %cst_100 = arith.constant dense<0xFF800000> : vector<1xf32>
    %339 = vector.multi_reduction <maximumf>, %338, %cst_100 [1] : vector<1x56xf32> to vector<1xf32>
    %340 = vector.shape_cast %339 : vector<1xf32> to vector<1x1xf32>
    %c20_i32 = arith.constant 20 : i32
    %341 = vector.broadcast %c20_i32 : i32 to vector<1x49xi32>
    %342 = arith.cmpi eq, %17, %341 : vector<1x49xi32>
    %343 = vector.shape_cast %340 : vector<1x1xf32> to vector<1x1xf32>
    %344 = vector.broadcast %343 : vector<1x1xf32> to vector<1x49xf32>
    %345 = arith.select %342, %344, %331 : vector<1x49xi1>, vector<1x49xf32>
    %c17_i32_101 = arith.constant 17 : i32
    %346 = vector.broadcast %c17_i32_101 : i32 to vector<56x1xi32>
    %347 = arith.cmpi sge, %15, %346 : vector<56x1xi32>
    %c32_i32_102 = arith.constant 32 : i32
    %348 = vector.broadcast %c32_i32_102 : i32 to vector<56x1xi32>
    %349 = arith.cmpi slt, %15, %348 : vector<56x1xi32>
    %350 = arith.andi %347, %349 : vector<56x1xi1>
    %cst_103 = arith.constant 0xFF800000 : f32
    %351 = vector.shape_cast %350 : vector<56x1xi1> to vector<56x1xi1>
    %352 = vector.broadcast %351 : vector<56x1xi1> to vector<56x56xi1>
    %353 = vector.broadcast %cst_103 : f32 to vector<56x56xf32>
    %354 = arith.select %352, %14, %353 : vector<56x56xi1>, vector<56x56xf32>
    %cst_104 = arith.constant dense<0xFF800000> : vector<56xf32>
    %355 = vector.multi_reduction <maximumf>, %354, %cst_104 [0] : vector<56x56xf32> to vector<56xf32>
    %356 = vector.shape_cast %355 : vector<56xf32> to vector<1x56xf32>
    %c0_i32_105 = arith.constant 0 : i32
    %357 = vector.broadcast %c0_i32_105 : i32 to vector<1x56xi32>
    %358 = arith.cmpi sge, %16, %357 : vector<1x56xi32>
    %c8_i32_106 = arith.constant 8 : i32
    %359 = vector.broadcast %c8_i32_106 : i32 to vector<1x56xi32>
    %360 = arith.cmpi slt, %16, %359 : vector<1x56xi32>
    %361 = arith.andi %358, %360 : vector<1x56xi1>
    %cst_107 = arith.constant 0xFF800000 : f32
    %362 = vector.broadcast %cst_107 : f32 to vector<1x56xf32>
    %363 = arith.select %361, %356, %362 : vector<1x56xi1>, vector<1x56xf32>
    %cst_108 = arith.constant dense<0xFF800000> : vector<1xf32>
    %364 = vector.multi_reduction <maximumf>, %363, %cst_108 [1] : vector<1x56xf32> to vector<1xf32>
    %365 = vector.shape_cast %364 : vector<1xf32> to vector<1x1xf32>
    %c21_i32 = arith.constant 21 : i32
    %366 = vector.broadcast %c21_i32 : i32 to vector<1x49xi32>
    %367 = arith.cmpi eq, %17, %366 : vector<1x49xi32>
    %368 = vector.shape_cast %365 : vector<1x1xf32> to vector<1x1xf32>
    %369 = vector.broadcast %368 : vector<1x1xf32> to vector<1x49xf32>
    %370 = arith.select %367, %369, %345 : vector<1x49xi1>, vector<1x49xf32>
    %c1_i32_109 = arith.constant 1 : i32
    %371 = vector.broadcast %c1_i32_109 : i32 to vector<1x56xi32>
    %372 = arith.cmpi sge, %16, %371 : vector<1x56xi32>
    %c16_i32_110 = arith.constant 16 : i32
    %373 = vector.broadcast %c16_i32_110 : i32 to vector<1x56xi32>
    %374 = arith.cmpi slt, %16, %373 : vector<1x56xi32>
    %375 = arith.andi %372, %374 : vector<1x56xi1>
    %cst_111 = arith.constant 0xFF800000 : f32
    %376 = vector.broadcast %cst_111 : f32 to vector<1x56xf32>
    %377 = arith.select %375, %356, %376 : vector<1x56xi1>, vector<1x56xf32>
    %cst_112 = arith.constant dense<0xFF800000> : vector<1xf32>
    %378 = vector.multi_reduction <maximumf>, %377, %cst_112 [1] : vector<1x56xf32> to vector<1xf32>
    %379 = vector.shape_cast %378 : vector<1xf32> to vector<1x1xf32>
    %c22_i32 = arith.constant 22 : i32
    %380 = vector.broadcast %c22_i32 : i32 to vector<1x49xi32>
    %381 = arith.cmpi eq, %17, %380 : vector<1x49xi32>
    %382 = vector.shape_cast %379 : vector<1x1xf32> to vector<1x1xf32>
    %383 = vector.broadcast %382 : vector<1x1xf32> to vector<1x49xf32>
    %384 = arith.select %381, %383, %370 : vector<1x49xi1>, vector<1x49xf32>
    %c9_i32_113 = arith.constant 9 : i32
    %385 = vector.broadcast %c9_i32_113 : i32 to vector<1x56xi32>
    %386 = arith.cmpi sge, %16, %385 : vector<1x56xi32>
    %c24_i32_114 = arith.constant 24 : i32
    %387 = vector.broadcast %c24_i32_114 : i32 to vector<1x56xi32>
    %388 = arith.cmpi slt, %16, %387 : vector<1x56xi32>
    %389 = arith.andi %386, %388 : vector<1x56xi1>
    %cst_115 = arith.constant 0xFF800000 : f32
    %390 = vector.broadcast %cst_115 : f32 to vector<1x56xf32>
    %391 = arith.select %389, %356, %390 : vector<1x56xi1>, vector<1x56xf32>
    %cst_116 = arith.constant dense<0xFF800000> : vector<1xf32>
    %392 = vector.multi_reduction <maximumf>, %391, %cst_116 [1] : vector<1x56xf32> to vector<1xf32>
    %393 = vector.shape_cast %392 : vector<1xf32> to vector<1x1xf32>
    %c23_i32 = arith.constant 23 : i32
    %394 = vector.broadcast %c23_i32 : i32 to vector<1x49xi32>
    %395 = arith.cmpi eq, %17, %394 : vector<1x49xi32>
    %396 = vector.shape_cast %393 : vector<1x1xf32> to vector<1x1xf32>
    %397 = vector.broadcast %396 : vector<1x1xf32> to vector<1x49xf32>
    %398 = arith.select %395, %397, %384 : vector<1x49xi1>, vector<1x49xf32>
    %c17_i32_117 = arith.constant 17 : i32
    %399 = vector.broadcast %c17_i32_117 : i32 to vector<1x56xi32>
    %400 = arith.cmpi sge, %16, %399 : vector<1x56xi32>
    %c32_i32_118 = arith.constant 32 : i32
    %401 = vector.broadcast %c32_i32_118 : i32 to vector<1x56xi32>
    %402 = arith.cmpi slt, %16, %401 : vector<1x56xi32>
    %403 = arith.andi %400, %402 : vector<1x56xi1>
    %cst_119 = arith.constant 0xFF800000 : f32
    %404 = vector.broadcast %cst_119 : f32 to vector<1x56xf32>
    %405 = arith.select %403, %356, %404 : vector<1x56xi1>, vector<1x56xf32>
    %cst_120 = arith.constant dense<0xFF800000> : vector<1xf32>
    %406 = vector.multi_reduction <maximumf>, %405, %cst_120 [1] : vector<1x56xf32> to vector<1xf32>
    %407 = vector.shape_cast %406 : vector<1xf32> to vector<1x1xf32>
    %c24_i32_121 = arith.constant 24 : i32
    %408 = vector.broadcast %c24_i32_121 : i32 to vector<1x49xi32>
    %409 = arith.cmpi eq, %17, %408 : vector<1x49xi32>
    %410 = vector.shape_cast %407 : vector<1x1xf32> to vector<1x1xf32>
    %411 = vector.broadcast %410 : vector<1x1xf32> to vector<1x49xf32>
    %412 = arith.select %409, %411, %398 : vector<1x49xi1>, vector<1x49xf32>
    %c25_i32_122 = arith.constant 25 : i32
    %413 = vector.broadcast %c25_i32_122 : i32 to vector<1x56xi32>
    %414 = arith.cmpi sge, %16, %413 : vector<1x56xi32>
    %c40_i32_123 = arith.constant 40 : i32
    %415 = vector.broadcast %c40_i32_123 : i32 to vector<1x56xi32>
    %416 = arith.cmpi slt, %16, %415 : vector<1x56xi32>
    %417 = arith.andi %414, %416 : vector<1x56xi1>
    %cst_124 = arith.constant 0xFF800000 : f32
    %418 = vector.broadcast %cst_124 : f32 to vector<1x56xf32>
    %419 = arith.select %417, %356, %418 : vector<1x56xi1>, vector<1x56xf32>
    %cst_125 = arith.constant dense<0xFF800000> : vector<1xf32>
    %420 = vector.multi_reduction <maximumf>, %419, %cst_125 [1] : vector<1x56xf32> to vector<1xf32>
    %421 = vector.shape_cast %420 : vector<1xf32> to vector<1x1xf32>
    %c25_i32_126 = arith.constant 25 : i32
    %422 = vector.broadcast %c25_i32_126 : i32 to vector<1x49xi32>
    %423 = arith.cmpi eq, %17, %422 : vector<1x49xi32>
    %424 = vector.shape_cast %421 : vector<1x1xf32> to vector<1x1xf32>
    %425 = vector.broadcast %424 : vector<1x1xf32> to vector<1x49xf32>
    %426 = arith.select %423, %425, %412 : vector<1x49xi1>, vector<1x49xf32>
    %c33_i32_127 = arith.constant 33 : i32
    %427 = vector.broadcast %c33_i32_127 : i32 to vector<1x56xi32>
    %428 = arith.cmpi sge, %16, %427 : vector<1x56xi32>
    %c48_i32_128 = arith.constant 48 : i32
    %429 = vector.broadcast %c48_i32_128 : i32 to vector<1x56xi32>
    %430 = arith.cmpi slt, %16, %429 : vector<1x56xi32>
    %431 = arith.andi %428, %430 : vector<1x56xi1>
    %cst_129 = arith.constant 0xFF800000 : f32
    %432 = vector.broadcast %cst_129 : f32 to vector<1x56xf32>
    %433 = arith.select %431, %356, %432 : vector<1x56xi1>, vector<1x56xf32>
    %cst_130 = arith.constant dense<0xFF800000> : vector<1xf32>
    %434 = vector.multi_reduction <maximumf>, %433, %cst_130 [1] : vector<1x56xf32> to vector<1xf32>
    %435 = vector.shape_cast %434 : vector<1xf32> to vector<1x1xf32>
    %c26_i32 = arith.constant 26 : i32
    %436 = vector.broadcast %c26_i32 : i32 to vector<1x49xi32>
    %437 = arith.cmpi eq, %17, %436 : vector<1x49xi32>
    %438 = vector.shape_cast %435 : vector<1x1xf32> to vector<1x1xf32>
    %439 = vector.broadcast %438 : vector<1x1xf32> to vector<1x49xf32>
    %440 = arith.select %437, %439, %426 : vector<1x49xi1>, vector<1x49xf32>
    %c41_i32_131 = arith.constant 41 : i32
    %441 = vector.broadcast %c41_i32_131 : i32 to vector<1x56xi32>
    %442 = arith.cmpi sge, %16, %441 : vector<1x56xi32>
    %c56_i32_132 = arith.constant 56 : i32
    %443 = vector.broadcast %c56_i32_132 : i32 to vector<1x56xi32>
    %444 = arith.cmpi slt, %16, %443 : vector<1x56xi32>
    %445 = arith.andi %442, %444 : vector<1x56xi1>
    %cst_133 = arith.constant 0xFF800000 : f32
    %446 = vector.broadcast %cst_133 : f32 to vector<1x56xf32>
    %447 = arith.select %445, %356, %446 : vector<1x56xi1>, vector<1x56xf32>
    %cst_134 = arith.constant dense<0xFF800000> : vector<1xf32>
    %448 = vector.multi_reduction <maximumf>, %447, %cst_134 [1] : vector<1x56xf32> to vector<1xf32>
    %449 = vector.shape_cast %448 : vector<1xf32> to vector<1x1xf32>
    %c27_i32 = arith.constant 27 : i32
    %450 = vector.broadcast %c27_i32 : i32 to vector<1x49xi32>
    %451 = arith.cmpi eq, %17, %450 : vector<1x49xi32>
    %452 = vector.shape_cast %449 : vector<1x1xf32> to vector<1x1xf32>
    %453 = vector.broadcast %452 : vector<1x1xf32> to vector<1x49xf32>
    %454 = arith.select %451, %453, %440 : vector<1x49xi1>, vector<1x49xf32>
    %c25_i32_135 = arith.constant 25 : i32
    %455 = vector.broadcast %c25_i32_135 : i32 to vector<56x1xi32>
    %456 = arith.cmpi sge, %15, %455 : vector<56x1xi32>
    %c40_i32_136 = arith.constant 40 : i32
    %457 = vector.broadcast %c40_i32_136 : i32 to vector<56x1xi32>
    %458 = arith.cmpi slt, %15, %457 : vector<56x1xi32>
    %459 = arith.andi %456, %458 : vector<56x1xi1>
    %cst_137 = arith.constant 0xFF800000 : f32
    %460 = vector.shape_cast %459 : vector<56x1xi1> to vector<56x1xi1>
    %461 = vector.broadcast %460 : vector<56x1xi1> to vector<56x56xi1>
    %462 = vector.broadcast %cst_137 : f32 to vector<56x56xf32>
    %463 = arith.select %461, %14, %462 : vector<56x56xi1>, vector<56x56xf32>
    %cst_138 = arith.constant dense<0xFF800000> : vector<56xf32>
    %464 = vector.multi_reduction <maximumf>, %463, %cst_138 [0] : vector<56x56xf32> to vector<56xf32>
    %465 = vector.shape_cast %464 : vector<56xf32> to vector<1x56xf32>
    %c0_i32_139 = arith.constant 0 : i32
    %466 = vector.broadcast %c0_i32_139 : i32 to vector<1x56xi32>
    %467 = arith.cmpi sge, %16, %466 : vector<1x56xi32>
    %c8_i32_140 = arith.constant 8 : i32
    %468 = vector.broadcast %c8_i32_140 : i32 to vector<1x56xi32>
    %469 = arith.cmpi slt, %16, %468 : vector<1x56xi32>
    %470 = arith.andi %467, %469 : vector<1x56xi1>
    %cst_141 = arith.constant 0xFF800000 : f32
    %471 = vector.broadcast %cst_141 : f32 to vector<1x56xf32>
    %472 = arith.select %470, %465, %471 : vector<1x56xi1>, vector<1x56xf32>
    %cst_142 = arith.constant dense<0xFF800000> : vector<1xf32>
    %473 = vector.multi_reduction <maximumf>, %472, %cst_142 [1] : vector<1x56xf32> to vector<1xf32>
    %474 = vector.shape_cast %473 : vector<1xf32> to vector<1x1xf32>
    %c28_i32 = arith.constant 28 : i32
    %475 = vector.broadcast %c28_i32 : i32 to vector<1x49xi32>
    %476 = arith.cmpi eq, %17, %475 : vector<1x49xi32>
    %477 = vector.shape_cast %474 : vector<1x1xf32> to vector<1x1xf32>
    %478 = vector.broadcast %477 : vector<1x1xf32> to vector<1x49xf32>
    %479 = arith.select %476, %478, %454 : vector<1x49xi1>, vector<1x49xf32>
    %c1_i32_143 = arith.constant 1 : i32
    %480 = vector.broadcast %c1_i32_143 : i32 to vector<1x56xi32>
    %481 = arith.cmpi sge, %16, %480 : vector<1x56xi32>
    %c16_i32_144 = arith.constant 16 : i32
    %482 = vector.broadcast %c16_i32_144 : i32 to vector<1x56xi32>
    %483 = arith.cmpi slt, %16, %482 : vector<1x56xi32>
    %484 = arith.andi %481, %483 : vector<1x56xi1>
    %cst_145 = arith.constant 0xFF800000 : f32
    %485 = vector.broadcast %cst_145 : f32 to vector<1x56xf32>
    %486 = arith.select %484, %465, %485 : vector<1x56xi1>, vector<1x56xf32>
    %cst_146 = arith.constant dense<0xFF800000> : vector<1xf32>
    %487 = vector.multi_reduction <maximumf>, %486, %cst_146 [1] : vector<1x56xf32> to vector<1xf32>
    %488 = vector.shape_cast %487 : vector<1xf32> to vector<1x1xf32>
    %c29_i32 = arith.constant 29 : i32
    %489 = vector.broadcast %c29_i32 : i32 to vector<1x49xi32>
    %490 = arith.cmpi eq, %17, %489 : vector<1x49xi32>
    %491 = vector.shape_cast %488 : vector<1x1xf32> to vector<1x1xf32>
    %492 = vector.broadcast %491 : vector<1x1xf32> to vector<1x49xf32>
    %493 = arith.select %490, %492, %479 : vector<1x49xi1>, vector<1x49xf32>
    %c9_i32_147 = arith.constant 9 : i32
    %494 = vector.broadcast %c9_i32_147 : i32 to vector<1x56xi32>
    %495 = arith.cmpi sge, %16, %494 : vector<1x56xi32>
    %c24_i32_148 = arith.constant 24 : i32
    %496 = vector.broadcast %c24_i32_148 : i32 to vector<1x56xi32>
    %497 = arith.cmpi slt, %16, %496 : vector<1x56xi32>
    %498 = arith.andi %495, %497 : vector<1x56xi1>
    %cst_149 = arith.constant 0xFF800000 : f32
    %499 = vector.broadcast %cst_149 : f32 to vector<1x56xf32>
    %500 = arith.select %498, %465, %499 : vector<1x56xi1>, vector<1x56xf32>
    %cst_150 = arith.constant dense<0xFF800000> : vector<1xf32>
    %501 = vector.multi_reduction <maximumf>, %500, %cst_150 [1] : vector<1x56xf32> to vector<1xf32>
    %502 = vector.shape_cast %501 : vector<1xf32> to vector<1x1xf32>
    %c30_i32 = arith.constant 30 : i32
    %503 = vector.broadcast %c30_i32 : i32 to vector<1x49xi32>
    %504 = arith.cmpi eq, %17, %503 : vector<1x49xi32>
    %505 = vector.shape_cast %502 : vector<1x1xf32> to vector<1x1xf32>
    %506 = vector.broadcast %505 : vector<1x1xf32> to vector<1x49xf32>
    %507 = arith.select %504, %506, %493 : vector<1x49xi1>, vector<1x49xf32>
    %c17_i32_151 = arith.constant 17 : i32
    %508 = vector.broadcast %c17_i32_151 : i32 to vector<1x56xi32>
    %509 = arith.cmpi sge, %16, %508 : vector<1x56xi32>
    %c32_i32_152 = arith.constant 32 : i32
    %510 = vector.broadcast %c32_i32_152 : i32 to vector<1x56xi32>
    %511 = arith.cmpi slt, %16, %510 : vector<1x56xi32>
    %512 = arith.andi %509, %511 : vector<1x56xi1>
    %cst_153 = arith.constant 0xFF800000 : f32
    %513 = vector.broadcast %cst_153 : f32 to vector<1x56xf32>
    %514 = arith.select %512, %465, %513 : vector<1x56xi1>, vector<1x56xf32>
    %cst_154 = arith.constant dense<0xFF800000> : vector<1xf32>
    %515 = vector.multi_reduction <maximumf>, %514, %cst_154 [1] : vector<1x56xf32> to vector<1xf32>
    %516 = vector.shape_cast %515 : vector<1xf32> to vector<1x1xf32>
    %c31_i32 = arith.constant 31 : i32
    %517 = vector.broadcast %c31_i32 : i32 to vector<1x49xi32>
    %518 = arith.cmpi eq, %17, %517 : vector<1x49xi32>
    %519 = vector.shape_cast %516 : vector<1x1xf32> to vector<1x1xf32>
    %520 = vector.broadcast %519 : vector<1x1xf32> to vector<1x49xf32>
    %521 = arith.select %518, %520, %507 : vector<1x49xi1>, vector<1x49xf32>
    %c25_i32_155 = arith.constant 25 : i32
    %522 = vector.broadcast %c25_i32_155 : i32 to vector<1x56xi32>
    %523 = arith.cmpi sge, %16, %522 : vector<1x56xi32>
    %c40_i32_156 = arith.constant 40 : i32
    %524 = vector.broadcast %c40_i32_156 : i32 to vector<1x56xi32>
    %525 = arith.cmpi slt, %16, %524 : vector<1x56xi32>
    %526 = arith.andi %523, %525 : vector<1x56xi1>
    %cst_157 = arith.constant 0xFF800000 : f32
    %527 = vector.broadcast %cst_157 : f32 to vector<1x56xf32>
    %528 = arith.select %526, %465, %527 : vector<1x56xi1>, vector<1x56xf32>
    %cst_158 = arith.constant dense<0xFF800000> : vector<1xf32>
    %529 = vector.multi_reduction <maximumf>, %528, %cst_158 [1] : vector<1x56xf32> to vector<1xf32>
    %530 = vector.shape_cast %529 : vector<1xf32> to vector<1x1xf32>
    %c32_i32_159 = arith.constant 32 : i32
    %531 = vector.broadcast %c32_i32_159 : i32 to vector<1x49xi32>
    %532 = arith.cmpi eq, %17, %531 : vector<1x49xi32>
    %533 = vector.shape_cast %530 : vector<1x1xf32> to vector<1x1xf32>
    %534 = vector.broadcast %533 : vector<1x1xf32> to vector<1x49xf32>
    %535 = arith.select %532, %534, %521 : vector<1x49xi1>, vector<1x49xf32>
    %c33_i32_160 = arith.constant 33 : i32
    %536 = vector.broadcast %c33_i32_160 : i32 to vector<1x56xi32>
    %537 = arith.cmpi sge, %16, %536 : vector<1x56xi32>
    %c48_i32_161 = arith.constant 48 : i32
    %538 = vector.broadcast %c48_i32_161 : i32 to vector<1x56xi32>
    %539 = arith.cmpi slt, %16, %538 : vector<1x56xi32>
    %540 = arith.andi %537, %539 : vector<1x56xi1>
    %cst_162 = arith.constant 0xFF800000 : f32
    %541 = vector.broadcast %cst_162 : f32 to vector<1x56xf32>
    %542 = arith.select %540, %465, %541 : vector<1x56xi1>, vector<1x56xf32>
    %cst_163 = arith.constant dense<0xFF800000> : vector<1xf32>
    %543 = vector.multi_reduction <maximumf>, %542, %cst_163 [1] : vector<1x56xf32> to vector<1xf32>
    %544 = vector.shape_cast %543 : vector<1xf32> to vector<1x1xf32>
    %c33_i32_164 = arith.constant 33 : i32
    %545 = vector.broadcast %c33_i32_164 : i32 to vector<1x49xi32>
    %546 = arith.cmpi eq, %17, %545 : vector<1x49xi32>
    %547 = vector.shape_cast %544 : vector<1x1xf32> to vector<1x1xf32>
    %548 = vector.broadcast %547 : vector<1x1xf32> to vector<1x49xf32>
    %549 = arith.select %546, %548, %535 : vector<1x49xi1>, vector<1x49xf32>
    %c41_i32_165 = arith.constant 41 : i32
    %550 = vector.broadcast %c41_i32_165 : i32 to vector<1x56xi32>
    %551 = arith.cmpi sge, %16, %550 : vector<1x56xi32>
    %c56_i32_166 = arith.constant 56 : i32
    %552 = vector.broadcast %c56_i32_166 : i32 to vector<1x56xi32>
    %553 = arith.cmpi slt, %16, %552 : vector<1x56xi32>
    %554 = arith.andi %551, %553 : vector<1x56xi1>
    %cst_167 = arith.constant 0xFF800000 : f32
    %555 = vector.broadcast %cst_167 : f32 to vector<1x56xf32>
    %556 = arith.select %554, %465, %555 : vector<1x56xi1>, vector<1x56xf32>
    %cst_168 = arith.constant dense<0xFF800000> : vector<1xf32>
    %557 = vector.multi_reduction <maximumf>, %556, %cst_168 [1] : vector<1x56xf32> to vector<1xf32>
    %558 = vector.shape_cast %557 : vector<1xf32> to vector<1x1xf32>
    %c34_i32 = arith.constant 34 : i32
    %559 = vector.broadcast %c34_i32 : i32 to vector<1x49xi32>
    %560 = arith.cmpi eq, %17, %559 : vector<1x49xi32>
    %561 = vector.shape_cast %558 : vector<1x1xf32> to vector<1x1xf32>
    %562 = vector.broadcast %561 : vector<1x1xf32> to vector<1x49xf32>
    %563 = arith.select %560, %562, %549 : vector<1x49xi1>, vector<1x49xf32>
    %c33_i32_169 = arith.constant 33 : i32
    %564 = vector.broadcast %c33_i32_169 : i32 to vector<56x1xi32>
    %565 = arith.cmpi sge, %15, %564 : vector<56x1xi32>
    %c48_i32_170 = arith.constant 48 : i32
    %566 = vector.broadcast %c48_i32_170 : i32 to vector<56x1xi32>
    %567 = arith.cmpi slt, %15, %566 : vector<56x1xi32>
    %568 = arith.andi %565, %567 : vector<56x1xi1>
    %cst_171 = arith.constant 0xFF800000 : f32
    %569 = vector.shape_cast %568 : vector<56x1xi1> to vector<56x1xi1>
    %570 = vector.broadcast %569 : vector<56x1xi1> to vector<56x56xi1>
    %571 = vector.broadcast %cst_171 : f32 to vector<56x56xf32>
    %572 = arith.select %570, %14, %571 : vector<56x56xi1>, vector<56x56xf32>
    %cst_172 = arith.constant dense<0xFF800000> : vector<56xf32>
    %573 = vector.multi_reduction <maximumf>, %572, %cst_172 [0] : vector<56x56xf32> to vector<56xf32>
    %574 = vector.shape_cast %573 : vector<56xf32> to vector<1x56xf32>
    %c0_i32_173 = arith.constant 0 : i32
    %575 = vector.broadcast %c0_i32_173 : i32 to vector<1x56xi32>
    %576 = arith.cmpi sge, %16, %575 : vector<1x56xi32>
    %c8_i32_174 = arith.constant 8 : i32
    %577 = vector.broadcast %c8_i32_174 : i32 to vector<1x56xi32>
    %578 = arith.cmpi slt, %16, %577 : vector<1x56xi32>
    %579 = arith.andi %576, %578 : vector<1x56xi1>
    %cst_175 = arith.constant 0xFF800000 : f32
    %580 = vector.broadcast %cst_175 : f32 to vector<1x56xf32>
    %581 = arith.select %579, %574, %580 : vector<1x56xi1>, vector<1x56xf32>
    %cst_176 = arith.constant dense<0xFF800000> : vector<1xf32>
    %582 = vector.multi_reduction <maximumf>, %581, %cst_176 [1] : vector<1x56xf32> to vector<1xf32>
    %583 = vector.shape_cast %582 : vector<1xf32> to vector<1x1xf32>
    %c35_i32 = arith.constant 35 : i32
    %584 = vector.broadcast %c35_i32 : i32 to vector<1x49xi32>
    %585 = arith.cmpi eq, %17, %584 : vector<1x49xi32>
    %586 = vector.shape_cast %583 : vector<1x1xf32> to vector<1x1xf32>
    %587 = vector.broadcast %586 : vector<1x1xf32> to vector<1x49xf32>
    %588 = arith.select %585, %587, %563 : vector<1x49xi1>, vector<1x49xf32>
    %c1_i32_177 = arith.constant 1 : i32
    %589 = vector.broadcast %c1_i32_177 : i32 to vector<1x56xi32>
    %590 = arith.cmpi sge, %16, %589 : vector<1x56xi32>
    %c16_i32_178 = arith.constant 16 : i32
    %591 = vector.broadcast %c16_i32_178 : i32 to vector<1x56xi32>
    %592 = arith.cmpi slt, %16, %591 : vector<1x56xi32>
    %593 = arith.andi %590, %592 : vector<1x56xi1>
    %cst_179 = arith.constant 0xFF800000 : f32
    %594 = vector.broadcast %cst_179 : f32 to vector<1x56xf32>
    %595 = arith.select %593, %574, %594 : vector<1x56xi1>, vector<1x56xf32>
    %cst_180 = arith.constant dense<0xFF800000> : vector<1xf32>
    %596 = vector.multi_reduction <maximumf>, %595, %cst_180 [1] : vector<1x56xf32> to vector<1xf32>
    %597 = vector.shape_cast %596 : vector<1xf32> to vector<1x1xf32>
    %c36_i32 = arith.constant 36 : i32
    %598 = vector.broadcast %c36_i32 : i32 to vector<1x49xi32>
    %599 = arith.cmpi eq, %17, %598 : vector<1x49xi32>
    %600 = vector.shape_cast %597 : vector<1x1xf32> to vector<1x1xf32>
    %601 = vector.broadcast %600 : vector<1x1xf32> to vector<1x49xf32>
    %602 = arith.select %599, %601, %588 : vector<1x49xi1>, vector<1x49xf32>
    %c9_i32_181 = arith.constant 9 : i32
    %603 = vector.broadcast %c9_i32_181 : i32 to vector<1x56xi32>
    %604 = arith.cmpi sge, %16, %603 : vector<1x56xi32>
    %c24_i32_182 = arith.constant 24 : i32
    %605 = vector.broadcast %c24_i32_182 : i32 to vector<1x56xi32>
    %606 = arith.cmpi slt, %16, %605 : vector<1x56xi32>
    %607 = arith.andi %604, %606 : vector<1x56xi1>
    %cst_183 = arith.constant 0xFF800000 : f32
    %608 = vector.broadcast %cst_183 : f32 to vector<1x56xf32>
    %609 = arith.select %607, %574, %608 : vector<1x56xi1>, vector<1x56xf32>
    %cst_184 = arith.constant dense<0xFF800000> : vector<1xf32>
    %610 = vector.multi_reduction <maximumf>, %609, %cst_184 [1] : vector<1x56xf32> to vector<1xf32>
    %611 = vector.shape_cast %610 : vector<1xf32> to vector<1x1xf32>
    %c37_i32 = arith.constant 37 : i32
    %612 = vector.broadcast %c37_i32 : i32 to vector<1x49xi32>
    %613 = arith.cmpi eq, %17, %612 : vector<1x49xi32>
    %614 = vector.shape_cast %611 : vector<1x1xf32> to vector<1x1xf32>
    %615 = vector.broadcast %614 : vector<1x1xf32> to vector<1x49xf32>
    %616 = arith.select %613, %615, %602 : vector<1x49xi1>, vector<1x49xf32>
    %c17_i32_185 = arith.constant 17 : i32
    %617 = vector.broadcast %c17_i32_185 : i32 to vector<1x56xi32>
    %618 = arith.cmpi sge, %16, %617 : vector<1x56xi32>
    %c32_i32_186 = arith.constant 32 : i32
    %619 = vector.broadcast %c32_i32_186 : i32 to vector<1x56xi32>
    %620 = arith.cmpi slt, %16, %619 : vector<1x56xi32>
    %621 = arith.andi %618, %620 : vector<1x56xi1>
    %cst_187 = arith.constant 0xFF800000 : f32
    %622 = vector.broadcast %cst_187 : f32 to vector<1x56xf32>
    %623 = arith.select %621, %574, %622 : vector<1x56xi1>, vector<1x56xf32>
    %cst_188 = arith.constant dense<0xFF800000> : vector<1xf32>
    %624 = vector.multi_reduction <maximumf>, %623, %cst_188 [1] : vector<1x56xf32> to vector<1xf32>
    %625 = vector.shape_cast %624 : vector<1xf32> to vector<1x1xf32>
    %c38_i32 = arith.constant 38 : i32
    %626 = vector.broadcast %c38_i32 : i32 to vector<1x49xi32>
    %627 = arith.cmpi eq, %17, %626 : vector<1x49xi32>
    %628 = vector.shape_cast %625 : vector<1x1xf32> to vector<1x1xf32>
    %629 = vector.broadcast %628 : vector<1x1xf32> to vector<1x49xf32>
    %630 = arith.select %627, %629, %616 : vector<1x49xi1>, vector<1x49xf32>
    %c25_i32_189 = arith.constant 25 : i32
    %631 = vector.broadcast %c25_i32_189 : i32 to vector<1x56xi32>
    %632 = arith.cmpi sge, %16, %631 : vector<1x56xi32>
    %c40_i32_190 = arith.constant 40 : i32
    %633 = vector.broadcast %c40_i32_190 : i32 to vector<1x56xi32>
    %634 = arith.cmpi slt, %16, %633 : vector<1x56xi32>
    %635 = arith.andi %632, %634 : vector<1x56xi1>
    %cst_191 = arith.constant 0xFF800000 : f32
    %636 = vector.broadcast %cst_191 : f32 to vector<1x56xf32>
    %637 = arith.select %635, %574, %636 : vector<1x56xi1>, vector<1x56xf32>
    %cst_192 = arith.constant dense<0xFF800000> : vector<1xf32>
    %638 = vector.multi_reduction <maximumf>, %637, %cst_192 [1] : vector<1x56xf32> to vector<1xf32>
    %639 = vector.shape_cast %638 : vector<1xf32> to vector<1x1xf32>
    %c39_i32 = arith.constant 39 : i32
    %640 = vector.broadcast %c39_i32 : i32 to vector<1x49xi32>
    %641 = arith.cmpi eq, %17, %640 : vector<1x49xi32>
    %642 = vector.shape_cast %639 : vector<1x1xf32> to vector<1x1xf32>
    %643 = vector.broadcast %642 : vector<1x1xf32> to vector<1x49xf32>
    %644 = arith.select %641, %643, %630 : vector<1x49xi1>, vector<1x49xf32>
    %c33_i32_193 = arith.constant 33 : i32
    %645 = vector.broadcast %c33_i32_193 : i32 to vector<1x56xi32>
    %646 = arith.cmpi sge, %16, %645 : vector<1x56xi32>
    %c48_i32_194 = arith.constant 48 : i32
    %647 = vector.broadcast %c48_i32_194 : i32 to vector<1x56xi32>
    %648 = arith.cmpi slt, %16, %647 : vector<1x56xi32>
    %649 = arith.andi %646, %648 : vector<1x56xi1>
    %cst_195 = arith.constant 0xFF800000 : f32
    %650 = vector.broadcast %cst_195 : f32 to vector<1x56xf32>
    %651 = arith.select %649, %574, %650 : vector<1x56xi1>, vector<1x56xf32>
    %cst_196 = arith.constant dense<0xFF800000> : vector<1xf32>
    %652 = vector.multi_reduction <maximumf>, %651, %cst_196 [1] : vector<1x56xf32> to vector<1xf32>
    %653 = vector.shape_cast %652 : vector<1xf32> to vector<1x1xf32>
    %c40_i32_197 = arith.constant 40 : i32
    %654 = vector.broadcast %c40_i32_197 : i32 to vector<1x49xi32>
    %655 = arith.cmpi eq, %17, %654 : vector<1x49xi32>
    %656 = vector.shape_cast %653 : vector<1x1xf32> to vector<1x1xf32>
    %657 = vector.broadcast %656 : vector<1x1xf32> to vector<1x49xf32>
    %658 = arith.select %655, %657, %644 : vector<1x49xi1>, vector<1x49xf32>
    %c41_i32_198 = arith.constant 41 : i32
    %659 = vector.broadcast %c41_i32_198 : i32 to vector<1x56xi32>
    %660 = arith.cmpi sge, %16, %659 : vector<1x56xi32>
    %c56_i32_199 = arith.constant 56 : i32
    %661 = vector.broadcast %c56_i32_199 : i32 to vector<1x56xi32>
    %662 = arith.cmpi slt, %16, %661 : vector<1x56xi32>
    %663 = arith.andi %660, %662 : vector<1x56xi1>
    %cst_200 = arith.constant 0xFF800000 : f32
    %664 = vector.broadcast %cst_200 : f32 to vector<1x56xf32>
    %665 = arith.select %663, %574, %664 : vector<1x56xi1>, vector<1x56xf32>
    %cst_201 = arith.constant dense<0xFF800000> : vector<1xf32>
    %666 = vector.multi_reduction <maximumf>, %665, %cst_201 [1] : vector<1x56xf32> to vector<1xf32>
    %667 = vector.shape_cast %666 : vector<1xf32> to vector<1x1xf32>
    %c41_i32_202 = arith.constant 41 : i32
    %668 = vector.broadcast %c41_i32_202 : i32 to vector<1x49xi32>
    %669 = arith.cmpi eq, %17, %668 : vector<1x49xi32>
    %670 = vector.shape_cast %667 : vector<1x1xf32> to vector<1x1xf32>
    %671 = vector.broadcast %670 : vector<1x1xf32> to vector<1x49xf32>
    %672 = arith.select %669, %671, %658 : vector<1x49xi1>, vector<1x49xf32>
    %c41_i32_203 = arith.constant 41 : i32
    %673 = vector.broadcast %c41_i32_203 : i32 to vector<56x1xi32>
    %674 = arith.cmpi sge, %15, %673 : vector<56x1xi32>
    %c56_i32_204 = arith.constant 56 : i32
    %675 = vector.broadcast %c56_i32_204 : i32 to vector<56x1xi32>
    %676 = arith.cmpi slt, %15, %675 : vector<56x1xi32>
    %677 = arith.andi %674, %676 : vector<56x1xi1>
    %cst_205 = arith.constant 0xFF800000 : f32
    %678 = vector.shape_cast %677 : vector<56x1xi1> to vector<56x1xi1>
    %679 = vector.broadcast %678 : vector<56x1xi1> to vector<56x56xi1>
    %680 = vector.broadcast %cst_205 : f32 to vector<56x56xf32>
    %681 = arith.select %679, %14, %680 : vector<56x56xi1>, vector<56x56xf32>
    %cst_206 = arith.constant dense<0xFF800000> : vector<56xf32>
    %682 = vector.multi_reduction <maximumf>, %681, %cst_206 [0] : vector<56x56xf32> to vector<56xf32>
    %683 = vector.shape_cast %682 : vector<56xf32> to vector<1x56xf32>
    %c0_i32_207 = arith.constant 0 : i32
    %684 = vector.broadcast %c0_i32_207 : i32 to vector<1x56xi32>
    %685 = arith.cmpi sge, %16, %684 : vector<1x56xi32>
    %c8_i32_208 = arith.constant 8 : i32
    %686 = vector.broadcast %c8_i32_208 : i32 to vector<1x56xi32>
    %687 = arith.cmpi slt, %16, %686 : vector<1x56xi32>
    %688 = arith.andi %685, %687 : vector<1x56xi1>
    %cst_209 = arith.constant 0xFF800000 : f32
    %689 = vector.broadcast %cst_209 : f32 to vector<1x56xf32>
    %690 = arith.select %688, %683, %689 : vector<1x56xi1>, vector<1x56xf32>
    %cst_210 = arith.constant dense<0xFF800000> : vector<1xf32>
    %691 = vector.multi_reduction <maximumf>, %690, %cst_210 [1] : vector<1x56xf32> to vector<1xf32>
    %692 = vector.shape_cast %691 : vector<1xf32> to vector<1x1xf32>
    %c42_i32 = arith.constant 42 : i32
    %693 = vector.broadcast %c42_i32 : i32 to vector<1x49xi32>
    %694 = arith.cmpi eq, %17, %693 : vector<1x49xi32>
    %695 = vector.shape_cast %692 : vector<1x1xf32> to vector<1x1xf32>
    %696 = vector.broadcast %695 : vector<1x1xf32> to vector<1x49xf32>
    %697 = arith.select %694, %696, %672 : vector<1x49xi1>, vector<1x49xf32>
    %c1_i32_211 = arith.constant 1 : i32
    %698 = vector.broadcast %c1_i32_211 : i32 to vector<1x56xi32>
    %699 = arith.cmpi sge, %16, %698 : vector<1x56xi32>
    %c16_i32_212 = arith.constant 16 : i32
    %700 = vector.broadcast %c16_i32_212 : i32 to vector<1x56xi32>
    %701 = arith.cmpi slt, %16, %700 : vector<1x56xi32>
    %702 = arith.andi %699, %701 : vector<1x56xi1>
    %cst_213 = arith.constant 0xFF800000 : f32
    %703 = vector.broadcast %cst_213 : f32 to vector<1x56xf32>
    %704 = arith.select %702, %683, %703 : vector<1x56xi1>, vector<1x56xf32>
    %cst_214 = arith.constant dense<0xFF800000> : vector<1xf32>
    %705 = vector.multi_reduction <maximumf>, %704, %cst_214 [1] : vector<1x56xf32> to vector<1xf32>
    %706 = vector.shape_cast %705 : vector<1xf32> to vector<1x1xf32>
    %c43_i32 = arith.constant 43 : i32
    %707 = vector.broadcast %c43_i32 : i32 to vector<1x49xi32>
    %708 = arith.cmpi eq, %17, %707 : vector<1x49xi32>
    %709 = vector.shape_cast %706 : vector<1x1xf32> to vector<1x1xf32>
    %710 = vector.broadcast %709 : vector<1x1xf32> to vector<1x49xf32>
    %711 = arith.select %708, %710, %697 : vector<1x49xi1>, vector<1x49xf32>
    %c9_i32_215 = arith.constant 9 : i32
    %712 = vector.broadcast %c9_i32_215 : i32 to vector<1x56xi32>
    %713 = arith.cmpi sge, %16, %712 : vector<1x56xi32>
    %c24_i32_216 = arith.constant 24 : i32
    %714 = vector.broadcast %c24_i32_216 : i32 to vector<1x56xi32>
    %715 = arith.cmpi slt, %16, %714 : vector<1x56xi32>
    %716 = arith.andi %713, %715 : vector<1x56xi1>
    %cst_217 = arith.constant 0xFF800000 : f32
    %717 = vector.broadcast %cst_217 : f32 to vector<1x56xf32>
    %718 = arith.select %716, %683, %717 : vector<1x56xi1>, vector<1x56xf32>
    %cst_218 = arith.constant dense<0xFF800000> : vector<1xf32>
    %719 = vector.multi_reduction <maximumf>, %718, %cst_218 [1] : vector<1x56xf32> to vector<1xf32>
    %720 = vector.shape_cast %719 : vector<1xf32> to vector<1x1xf32>
    %c44_i32 = arith.constant 44 : i32
    %721 = vector.broadcast %c44_i32 : i32 to vector<1x49xi32>
    %722 = arith.cmpi eq, %17, %721 : vector<1x49xi32>
    %723 = vector.shape_cast %720 : vector<1x1xf32> to vector<1x1xf32>
    %724 = vector.broadcast %723 : vector<1x1xf32> to vector<1x49xf32>
    %725 = arith.select %722, %724, %711 : vector<1x49xi1>, vector<1x49xf32>
    %c17_i32_219 = arith.constant 17 : i32
    %726 = vector.broadcast %c17_i32_219 : i32 to vector<1x56xi32>
    %727 = arith.cmpi sge, %16, %726 : vector<1x56xi32>
    %c32_i32_220 = arith.constant 32 : i32
    %728 = vector.broadcast %c32_i32_220 : i32 to vector<1x56xi32>
    %729 = arith.cmpi slt, %16, %728 : vector<1x56xi32>
    %730 = arith.andi %727, %729 : vector<1x56xi1>
    %cst_221 = arith.constant 0xFF800000 : f32
    %731 = vector.broadcast %cst_221 : f32 to vector<1x56xf32>
    %732 = arith.select %730, %683, %731 : vector<1x56xi1>, vector<1x56xf32>
    %cst_222 = arith.constant dense<0xFF800000> : vector<1xf32>
    %733 = vector.multi_reduction <maximumf>, %732, %cst_222 [1] : vector<1x56xf32> to vector<1xf32>
    %734 = vector.shape_cast %733 : vector<1xf32> to vector<1x1xf32>
    %c45_i32 = arith.constant 45 : i32
    %735 = vector.broadcast %c45_i32 : i32 to vector<1x49xi32>
    %736 = arith.cmpi eq, %17, %735 : vector<1x49xi32>
    %737 = vector.shape_cast %734 : vector<1x1xf32> to vector<1x1xf32>
    %738 = vector.broadcast %737 : vector<1x1xf32> to vector<1x49xf32>
    %739 = arith.select %736, %738, %725 : vector<1x49xi1>, vector<1x49xf32>
    %c25_i32_223 = arith.constant 25 : i32
    %740 = vector.broadcast %c25_i32_223 : i32 to vector<1x56xi32>
    %741 = arith.cmpi sge, %16, %740 : vector<1x56xi32>
    %c40_i32_224 = arith.constant 40 : i32
    %742 = vector.broadcast %c40_i32_224 : i32 to vector<1x56xi32>
    %743 = arith.cmpi slt, %16, %742 : vector<1x56xi32>
    %744 = arith.andi %741, %743 : vector<1x56xi1>
    %cst_225 = arith.constant 0xFF800000 : f32
    %745 = vector.broadcast %cst_225 : f32 to vector<1x56xf32>
    %746 = arith.select %744, %683, %745 : vector<1x56xi1>, vector<1x56xf32>
    %cst_226 = arith.constant dense<0xFF800000> : vector<1xf32>
    %747 = vector.multi_reduction <maximumf>, %746, %cst_226 [1] : vector<1x56xf32> to vector<1xf32>
    %748 = vector.shape_cast %747 : vector<1xf32> to vector<1x1xf32>
    %c46_i32 = arith.constant 46 : i32
    %749 = vector.broadcast %c46_i32 : i32 to vector<1x49xi32>
    %750 = arith.cmpi eq, %17, %749 : vector<1x49xi32>
    %751 = vector.shape_cast %748 : vector<1x1xf32> to vector<1x1xf32>
    %752 = vector.broadcast %751 : vector<1x1xf32> to vector<1x49xf32>
    %753 = arith.select %750, %752, %739 : vector<1x49xi1>, vector<1x49xf32>
    %c33_i32_227 = arith.constant 33 : i32
    %754 = vector.broadcast %c33_i32_227 : i32 to vector<1x56xi32>
    %755 = arith.cmpi sge, %16, %754 : vector<1x56xi32>
    %c48_i32_228 = arith.constant 48 : i32
    %756 = vector.broadcast %c48_i32_228 : i32 to vector<1x56xi32>
    %757 = arith.cmpi slt, %16, %756 : vector<1x56xi32>
    %758 = arith.andi %755, %757 : vector<1x56xi1>
    %cst_229 = arith.constant 0xFF800000 : f32
    %759 = vector.broadcast %cst_229 : f32 to vector<1x56xf32>
    %760 = arith.select %758, %683, %759 : vector<1x56xi1>, vector<1x56xf32>
    %cst_230 = arith.constant dense<0xFF800000> : vector<1xf32>
    %761 = vector.multi_reduction <maximumf>, %760, %cst_230 [1] : vector<1x56xf32> to vector<1xf32>
    %762 = vector.shape_cast %761 : vector<1xf32> to vector<1x1xf32>
    %c47_i32 = arith.constant 47 : i32
    %763 = vector.broadcast %c47_i32 : i32 to vector<1x49xi32>
    %764 = arith.cmpi eq, %17, %763 : vector<1x49xi32>
    %765 = vector.shape_cast %762 : vector<1x1xf32> to vector<1x1xf32>
    %766 = vector.broadcast %765 : vector<1x1xf32> to vector<1x49xf32>
    %767 = arith.select %764, %766, %753 : vector<1x49xi1>, vector<1x49xf32>
    %c41_i32_231 = arith.constant 41 : i32
    %768 = vector.broadcast %c41_i32_231 : i32 to vector<1x56xi32>
    %769 = arith.cmpi sge, %16, %768 : vector<1x56xi32>
    %c56_i32_232 = arith.constant 56 : i32
    %770 = vector.broadcast %c56_i32_232 : i32 to vector<1x56xi32>
    %771 = arith.cmpi slt, %16, %770 : vector<1x56xi32>
    %772 = arith.andi %769, %771 : vector<1x56xi1>
    %cst_233 = arith.constant 0xFF800000 : f32
    %773 = vector.broadcast %cst_233 : f32 to vector<1x56xf32>
    %774 = arith.select %772, %683, %773 : vector<1x56xi1>, vector<1x56xf32>
    %cst_234 = arith.constant dense<0xFF800000> : vector<1xf32>
    %775 = vector.multi_reduction <maximumf>, %774, %cst_234 [1] : vector<1x56xf32> to vector<1xf32>
    %776 = vector.shape_cast %775 : vector<1xf32> to vector<1x1xf32>
    %c48_i32_235 = arith.constant 48 : i32
    %777 = vector.broadcast %c48_i32_235 : i32 to vector<1x49xi32>
    %778 = arith.cmpi eq, %17, %777 : vector<1x49xi32>
    %779 = vector.shape_cast %776 : vector<1x1xf32> to vector<1x1xf32>
    %780 = vector.broadcast %779 : vector<1x1xf32> to vector<1x49xf32>
    %781 = arith.select %778, %780, %767 : vector<1x49xi1>, vector<1x49xf32>
    %c0_236 = arith.constant 0 : index
    %c0_237 = arith.constant 0 : index
    %782 = vector.load %arg20[%c0_236, %c0_237] : memref<64x49xf32, #tpu.memory_space<vmem>>, vector<64x49xf32>
    %cst_238 = arith.constant dense<0.000000e+00> : vector<1x49xf32>
    %783 = tpu.matmul %12, %782, %cst_238 {dimension_numbers = #tpu.dot_dimension_numbers<[1], [0], [0], [1], [0, 0, 1, 1], [], []>} : vector<1x64xf32>, vector<64x49xf32>, vector<1x49xf32> -> vector<1x49xf32>
    %c0_239 = arith.constant 0 : index
    %c0_240 = arith.constant 0 : index
    %784 = vector.load %arg21[%c0_239, %c0_240] : memref<49x49xf32, #tpu.memory_space<vmem>>, vector<49x49xf32>
    %cst_241 = arith.constant dense<0.000000e+00> : vector<1x49xf32>
    %785 = tpu.matmul %781, %784, %cst_241 {dimension_numbers = #tpu.dot_dimension_numbers<[1], [0], [0], [1], [0, 0, 1, 1], [], []>} : vector<1x49xf32>, vector<49x49xf32>, vector<1x49xf32> -> vector<1x49xf32>
    %786 = arith.addf %783, %785 : vector<1x49xf32>
    %c0_242 = arith.constant 0 : index
    %c0_243 = arith.constant 0 : index
    %787 = vector.load %arg22[%c0_242, %c0_243] : memref<1x49xf32, #tpu.memory_space<vmem>>, vector<1x49xf32>
    %788 = arith.addf %786, %787 : vector<1x49xf32>
    %cst_244 = arith.constant dense<0xFF800000> : vector<1xf32>
    %789 = vector.multi_reduction <maximumf>, %788, %cst_244 [1] : vector<1x49xf32> to vector<1xf32>
    %790 = vector.shape_cast %789 : vector<1xf32> to vector<1x1xf32>
    %791 = vector.broadcast %790 : vector<1x1xf32> to vector<1x49xf32>
    %792 = arith.subf %788, %791 : vector<1x49xf32>
    %793 = math.exp %792 : vector<1x49xf32>
    %cst_245 = arith.constant dense<0.000000e+00> : vector<1xf32>
    %794 = vector.multi_reduction <add>, %793, %cst_245 [1] : vector<1x49xf32> to vector<1xf32>
    %795 = vector.shape_cast %794 : vector<1xf32> to vector<1x1xf32>
    %796 = tpu.reciprocal %795 {approx = true} : vector<1x1xf32> -> vector<1x1xf32>
    %797 = vector.broadcast %796 : vector<1x1xf32> to vector<1x49xf32>
    %798 = arith.mulf %793, %797 : vector<1x49xf32>
    %799 = tpu.iota {dimensions = array<i32: 0>} : vector<49x49xi32>
    %800 = tpu.iota {dimensions = array<i32: 1>} : vector<49x49xi32>
    %801 = arith.cmpi eq, %799, %800 : vector<49x49xi32>
    %cst_246 = arith.constant 0.000000e+00 : f32
    %802 = vector.shape_cast %798 : vector<1x49xf32> to vector<1x49xf32>
    %803 = vector.broadcast %802 : vector<1x49xf32> to vector<49x49xf32>
    %804 = vector.broadcast %cst_246 : f32 to vector<49x49xf32>
    %805 = arith.select %801, %803, %804 : vector<49x49xi1>, vector<49x49xf32>
    %cst_247 = arith.constant dense<0.000000e+00> : vector<49xf32>
    %806 = vector.multi_reduction <add>, %805, %cst_247 [1] : vector<49x49xf32> to vector<49xf32>
    %807 = vector.shape_cast %806 : vector<49xf32> to vector<49x1xf32>
    %c0_248 = arith.constant 0 : index
    %c0_249 = arith.constant 0 : index
    %c0_250 = arith.constant 0 : index
    %808 = vector.load %arg3[%c0_248, %c0_249, %c0_250] : memref<1x49x64xf32, #tpu.memory_space<vmem>>, vector<1x49x64xf32>
    %809 = vector.shape_cast %808 : vector<1x49x64xf32> to vector<49x64xf32>
    %c0_251 = arith.constant 0 : index
    %c0_252 = arith.constant 0 : index
    %810 = vector.load %arg10[%c0_251, %c0_252] : memref<64x64xf32, #tpu.memory_space<vmem>>, vector<64x64xf32>
    %cst_253 = arith.constant dense<0.000000e+00> : vector<49x64xf32>
    %811 = tpu.matmul %809, %810, %cst_253 {dimension_numbers = #tpu.dot_dimension_numbers<[1], [0], [0], [1], [0, 0, 1, 1], [], []>} : vector<49x64xf32>, vector<64x64xf32>, vector<49x64xf32> -> vector<49x64xf32>
    %c0_254 = arith.constant 0 : index
    %c0_255 = arith.constant 0 : index
    %c0_256 = arith.constant 0 : index
    %812 = vector.load %arg4[%c0_254, %c0_255, %c0_256] : memref<1x49x64xf32, #tpu.memory_space<vmem>>, vector<1x49x64xf32>
    %813 = vector.shape_cast %812 : vector<1x49x64xf32> to vector<49x64xf32>
    %c0_257 = arith.constant 0 : index
    %c0_258 = arith.constant 0 : index
    %814 = vector.load %arg11[%c0_257, %c0_258] : memref<64x64xf32, #tpu.memory_space<vmem>>, vector<64x64xf32>
    %cst_259 = arith.constant dense<0.000000e+00> : vector<49x64xf32>
    %815 = tpu.matmul %813, %814, %cst_259 {dimension_numbers = #tpu.dot_dimension_numbers<[1], [0], [0], [1], [0, 0, 1, 1], [], []>} : vector<49x64xf32>, vector<64x64xf32>, vector<49x64xf32> -> vector<49x64xf32>
    %816 = arith.addf %811, %815 : vector<49x64xf32>
    %c0_260 = arith.constant 0 : index
    %c0_261 = arith.constant 0 : index
    %c0_262 = arith.constant 0 : index
    %817 = vector.load %arg5[%c0_260, %c0_261, %c0_262] : memref<1x49x64xf32, #tpu.memory_space<vmem>>, vector<1x49x64xf32>
    %818 = vector.shape_cast %817 : vector<1x49x64xf32> to vector<49x64xf32>
    %c0_263 = arith.constant 0 : index
    %c0_264 = arith.constant 0 : index
    %819 = vector.load %arg12[%c0_263, %c0_264] : memref<64x64xf32, #tpu.memory_space<vmem>>, vector<64x64xf32>
    %cst_265 = arith.constant dense<0.000000e+00> : vector<49x64xf32>
    %820 = tpu.matmul %818, %819, %cst_265 {dimension_numbers = #tpu.dot_dimension_numbers<[1], [0], [0], [1], [0, 0, 1, 1], [], []>} : vector<49x64xf32>, vector<64x64xf32>, vector<49x64xf32> -> vector<49x64xf32>
    %821 = arith.addf %816, %820 : vector<49x64xf32>
    %c0_266 = arith.constant 0 : index
    %c0_267 = arith.constant 0 : index
    %c0_268 = arith.constant 0 : index
    %822 = vector.load %arg2[%c0_266, %c0_267, %c0_268] : memref<1x49x192xf32, #tpu.memory_space<vmem>>, vector<1x49x192xf32>
    %823 = vector.shape_cast %822 : vector<1x49x192xf32> to vector<49x192xf32>
    %c0_269 = arith.constant 0 : index
    %c0_270 = arith.constant 0 : index
    %824 = vector.load %arg13[%c0_269, %c0_270] : memref<192x64xf32, #tpu.memory_space<vmem>>, vector<192x64xf32>
    %cst_271 = arith.constant dense<0.000000e+00> : vector<49x64xf32>
    %825 = tpu.matmul %823, %824, %cst_271 {dimension_numbers = #tpu.dot_dimension_numbers<[1], [0], [0], [1], [0, 0, 1, 1], [], []>} : vector<49x192xf32>, vector<192x64xf32>, vector<49x64xf32> -> vector<49x64xf32>
    %826 = arith.addf %821, %825 : vector<49x64xf32>
    %c0_272 = arith.constant 0 : index
    %c0_273 = arith.constant 0 : index
    %c0_274 = arith.constant 0 : index
    %827 = vector.load %arg7[%c0_272, %c0_273, %c0_274] : memref<1x49x64xf32, #tpu.memory_space<vmem>>, vector<1x49x64xf32>
    %828 = vector.shape_cast %827 : vector<1x49x64xf32> to vector<49x64xf32>
    %c0_275 = arith.constant 0 : index
    %c0_276 = arith.constant 0 : index
    %829 = vector.load %arg14[%c0_275, %c0_276] : memref<64x64xf32, #tpu.memory_space<vmem>>, vector<64x64xf32>
    %cst_277 = arith.constant dense<0.000000e+00> : vector<49x64xf32>
    %830 = tpu.matmul %828, %829, %cst_277 {dimension_numbers = #tpu.dot_dimension_numbers<[1], [0], [0], [1], [0, 0, 1, 1], [], []>} : vector<49x64xf32>, vector<64x64xf32>, vector<49x64xf32> -> vector<49x64xf32>
    %831 = arith.addf %826, %830 : vector<49x64xf32>
    %c0_278 = arith.constant 0 : index
    %c0_279 = arith.constant 0 : index
    %832 = vector.load %arg15[%c0_278, %c0_279] : memref<1x64xf32, #tpu.memory_space<vmem>>, vector<1x64xf32>
    %833 = vector.broadcast %832 : vector<1x64xf32> to vector<49x64xf32>
    %834 = arith.addf %831, %833 : vector<49x64xf32>
    %cst_280 = arith.constant 0.000000e+00 : f32
    %835 = vector.broadcast %cst_280 : f32 to vector<49x64xf32>
    %836 = arith.maximumf %834, %835 : vector<49x64xf32>
    %cst_281 = arith.constant dense<0.000000e+00> : vector<64xf32>
    %837 = vector.multi_reduction <add>, %836, %cst_281 [0] : vector<49x64xf32> to vector<64xf32>
    %838 = vector.shape_cast %837 : vector<64xf32> to vector<1x64xf32>
    %cst_282 = arith.constant 4.900000e+01 : f32
    %839 = vector.broadcast %cst_282 : f32 to vector<1x64xf32>
    %840 = arith.divf %838, %839 : vector<1x64xf32>
    %c0_283 = arith.constant 0 : index
    %c0_284 = arith.constant 0 : index
    %841 = vector.load %arg23[%c0_283, %c0_284] : memref<3x64xf32, #tpu.memory_space<vmem>>, vector<1x64xf32>
    %842 = arith.mulf %841, %840 : vector<1x64xf32>
    %cst_285 = arith.constant dense<0.000000e+00> : vector<1xf32>
    %843 = vector.multi_reduction <add>, %842, %cst_285 [1] : vector<1x64xf32> to vector<1xf32>
    %844 = vector.shape_cast %843 : vector<1xf32> to vector<1x1xf32>
    %c0_286 = arith.constant 0 : index
    %c0_287 = arith.constant 0 : index
    %845 = vector.load %arg24[%c0_286, %c0_287] : memref<3x1xf32, #tpu.memory_space<vmem>>, vector<1x1xf32>
    %846 = arith.addf %844, %845 : vector<1x1xf32>
    %c1 = arith.constant 1 : index
    %c0_288 = arith.constant 0 : index
    %847 = vector.load %arg23[%c1, %c0_288] : memref<3x64xf32, #tpu.memory_space<vmem>>, vector<1x64xf32>
    %848 = arith.mulf %847, %840 : vector<1x64xf32>
    %cst_289 = arith.constant dense<0.000000e+00> : vector<1xf32>
    %849 = vector.multi_reduction <add>, %848, %cst_289 [1] : vector<1x64xf32> to vector<1xf32>
    %850 = vector.shape_cast %849 : vector<1xf32> to vector<1x1xf32>
    %c1_290 = arith.constant 1 : index
    %c0_291 = arith.constant 0 : index
    %851 = vector.load %arg24[%c1_290, %c0_291] : memref<3x1xf32, #tpu.memory_space<vmem>>, vector<1x1xf32>
    %852 = arith.addf %850, %851 : vector<1x1xf32>
    %c2 = arith.constant 2 : index
    %c0_292 = arith.constant 0 : index
    %853 = vector.load %arg23[%c2, %c0_292] : memref<3x64xf32, #tpu.memory_space<vmem>>, vector<1x64xf32>
    %854 = arith.mulf %853, %840 : vector<1x64xf32>
    %cst_293 = arith.constant dense<0.000000e+00> : vector<1xf32>
    %855 = vector.multi_reduction <add>, %854, %cst_293 [1] : vector<1x64xf32> to vector<1xf32>
    %856 = vector.shape_cast %855 : vector<1xf32> to vector<1x1xf32>
    %c2_294 = arith.constant 2 : index
    %c0_295 = arith.constant 0 : index
    %857 = vector.load %arg24[%c2_294, %c0_295] : memref<3x1xf32, #tpu.memory_space<vmem>>, vector<1x1xf32>
    %858 = arith.addf %856, %857 : vector<1x1xf32>
    %c0_296 = arith.constant 0 : index
    %c0_297 = arith.constant 0 : index
    %c0_298 = arith.constant 0 : index
    %859 = vector.load %arg3[%c0_296, %c0_297, %c0_298] : memref<1x49x64xf32, #tpu.memory_space<vmem>>, vector<1x49x64xf32>
    %860 = vector.shape_cast %859 : vector<1x49x64xf32> to vector<49x64xf32>
    %861 = vector.broadcast %846 : vector<1x1xf32> to vector<49x64xf32>
    %862 = arith.mulf %861, %860 : vector<49x64xf32>
    %c0_299 = arith.constant 0 : index
    %c0_300 = arith.constant 0 : index
    %c0_301 = arith.constant 0 : index
    %863 = vector.load %arg4[%c0_299, %c0_300, %c0_301] : memref<1x49x64xf32, #tpu.memory_space<vmem>>, vector<1x49x64xf32>
    %864 = vector.shape_cast %863 : vector<1x49x64xf32> to vector<49x64xf32>
    %865 = vector.broadcast %852 : vector<1x1xf32> to vector<49x64xf32>
    %866 = arith.mulf %865, %864 : vector<49x64xf32>
    %867 = arith.addf %862, %866 : vector<49x64xf32>
    %c0_302 = arith.constant 0 : index
    %c0_303 = arith.constant 0 : index
    %c0_304 = arith.constant 0 : index
    %868 = vector.load %arg5[%c0_302, %c0_303, %c0_304] : memref<1x49x64xf32, #tpu.memory_space<vmem>>, vector<1x49x64xf32>
    %869 = vector.shape_cast %868 : vector<1x49x64xf32> to vector<49x64xf32>
    %870 = vector.broadcast %858 : vector<1x1xf32> to vector<49x64xf32>
    %871 = arith.mulf %870, %869 : vector<49x64xf32>
    %872 = arith.addf %867, %871 : vector<49x64xf32>
    %c0_305 = arith.constant 0 : index
    %c0_306 = arith.constant 0 : index
    %c0_307 = arith.constant 0 : index
    %873 = vector.load %arg6[%c0_305, %c0_306, %c0_307] : memref<1x49x192xf32, #tpu.memory_space<vmem>>, vector<1x49x192xf32>
    %874 = vector.shape_cast %873 : vector<1x49x192xf32> to vector<49x192xf32>
    %c0_308 = arith.constant 0 : index
    %c0_309 = arith.constant 0 : index
    %875 = vector.load %arg16[%c0_308, %c0_309] : memref<192x64xf32, #tpu.memory_space<vmem>>, vector<192x64xf32>
    %cst_310 = arith.constant dense<0.000000e+00> : vector<49x64xf32>
    %876 = tpu.matmul %874, %875, %cst_310 {dimension_numbers = #tpu.dot_dimension_numbers<[1], [0], [0], [1], [0, 0, 1, 1], [], []>} : vector<49x192xf32>, vector<192x64xf32>, vector<49x64xf32> -> vector<49x64xf32>
    %c0_311 = arith.constant 0 : index
    %c0_312 = arith.constant 0 : index
    %877 = vector.load %arg17[%c0_311, %c0_312] : memref<64x64xf32, #tpu.memory_space<vmem>>, vector<64x64xf32>
    %cst_313 = arith.constant dense<0.000000e+00> : vector<49x64xf32>
    %878 = tpu.matmul %872, %877, %cst_313 {dimension_numbers = #tpu.dot_dimension_numbers<[1], [0], [0], [1], [0, 0, 1, 1], [], []>} : vector<49x64xf32>, vector<64x64xf32>, vector<49x64xf32> -> vector<49x64xf32>
    %879 = arith.addf %876, %878 : vector<49x64xf32>
    %c0_314 = arith.constant 0 : index
    %c0_315 = arith.constant 0 : index
    %c0_316 = arith.constant 0 : index
    %880 = vector.load %arg7[%c0_314, %c0_315, %c0_316] : memref<1x49x64xf32, #tpu.memory_space<vmem>>, vector<1x49x64xf32>
    %881 = vector.shape_cast %880 : vector<1x49x64xf32> to vector<49x64xf32>
    %c0_317 = arith.constant 0 : index
    %c0_318 = arith.constant 0 : index
    %882 = vector.load %arg18[%c0_317, %c0_318] : memref<64x64xf32, #tpu.memory_space<vmem>>, vector<64x64xf32>
    %cst_319 = arith.constant dense<0.000000e+00> : vector<49x64xf32>
    %883 = tpu.matmul %881, %882, %cst_319 {dimension_numbers = #tpu.dot_dimension_numbers<[1], [0], [0], [1], [0, 0, 1, 1], [], []>} : vector<49x64xf32>, vector<64x64xf32>, vector<49x64xf32> -> vector<49x64xf32>
    %884 = arith.addf %879, %883 : vector<49x64xf32>
    %c0_320 = arith.constant 0 : index
    %c0_321 = arith.constant 0 : index
    %885 = vector.load %arg19[%c0_320, %c0_321] : memref<1x64xf32, #tpu.memory_space<vmem>>, vector<1x64xf32>
    %886 = vector.broadcast %885 : vector<1x64xf32> to vector<49x64xf32>
    %887 = arith.addf %884, %886 : vector<49x64xf32>
    %cst_322 = arith.constant 0.000000e+00 : f32
    %888 = vector.broadcast %cst_322 : f32 to vector<49x64xf32>
    %889 = arith.maximumf %887, %888 : vector<49x64xf32>
    %cst_323 = arith.constant dense<0.000000e+00> : vector<64xf32>
    %890 = vector.multi_reduction <add>, %889, %cst_323 [0] : vector<49x64xf32> to vector<64xf32>
    %891 = vector.shape_cast %890 : vector<64xf32> to vector<1x64xf32>
    %cst_324 = arith.constant 4.900000e+01 : f32
    %892 = vector.broadcast %cst_324 : f32 to vector<1x64xf32>
    %893 = arith.divf %891, %892 : vector<1x64xf32>
    %894 = vector.broadcast %807 : vector<49x1xf32> to vector<49x64xf32>
    %895 = arith.mulf %894, %889 : vector<49x64xf32>
    %c0_325 = arith.constant 0 : index
    %c0_326 = arith.constant 0 : index
    %896 = vector.load %arg29[%c0_325, %c0_326] : memref<1x64xf32, #tpu.memory_space<vmem>>, vector<1x64xf32>
    %897 = vector.broadcast %896 : vector<1x64xf32> to vector<49x64xf32>
    %898 = arith.mulf %895, %897 : vector<49x64xf32>
    %cst_327 = arith.constant dense<0.000000e+00> : vector<49xf32>
    %899 = vector.multi_reduction <add>, %898, %cst_327 [1] : vector<49x64xf32> to vector<49xf32>
    %900 = vector.shape_cast %899 : vector<49xf32> to vector<49x1xf32>
    %c0_328 = arith.constant 0 : index
    %c0_329 = arith.constant 0 : index
    %901 = vector.load %arg30[%c0_328, %c0_329] : memref<1x64xf32, #tpu.memory_space<vmem>>, vector<1x64xf32>
    %902 = vector.broadcast %901 : vector<1x64xf32> to vector<49x64xf32>
    %903 = arith.mulf %8, %902 : vector<49x64xf32>
    %cst_330 = arith.constant dense<0.000000e+00> : vector<49xf32>
    %904 = vector.multi_reduction <add>, %903, %cst_330 [1] : vector<49x64xf32> to vector<49xf32>
    %905 = vector.shape_cast %904 : vector<49xf32> to vector<49x1xf32>
    %906 = arith.addf %900, %905 : vector<49x1xf32>
    %c0_331 = arith.constant 0 : index
    %c0_332 = arith.constant 0 : index
    %907 = vector.load %arg31[%c0_331, %c0_332] : memref<1x1xf32, #tpu.memory_space<vmem>>, vector<1x1xf32>
    %908 = vector.broadcast %907 : vector<1x1xf32> to vector<49x1xf32>
    %909 = arith.addf %906, %908 : vector<49x1xf32>
    %cst_333 = arith.constant 0.000000e+00 : f32
    %910 = vector.shape_cast %909 : vector<49x1xf32> to vector<49x1xf32>
    %911 = vector.broadcast %910 : vector<49x1xf32> to vector<49x49xf32>
    %912 = vector.broadcast %cst_333 : f32 to vector<49x49xf32>
    %913 = arith.select %801, %911, %912 : vector<49x49xi1>, vector<49x49xf32>
    %cst_334 = arith.constant dense<0.000000e+00> : vector<49xf32>
    %914 = vector.multi_reduction <add>, %913, %cst_334 [0] : vector<49x49xf32> to vector<49xf32>
    %915 = vector.shape_cast %914 : vector<49xf32> to vector<1x49xf32>
    %c0_335 = arith.constant 0 : index
    %c0_336 = arith.constant 0 : index
    %c0_337 = arith.constant 0 : index
    %916 = vector.load %arg32[%c0_335, %c0_336, %c0_337] : memref<1x1x49xf32, #tpu.memory_space<vmem>>, vector<1x1x49xf32>
    %917 = vector.shape_cast %916 : vector<1x1x49xf32> to vector<1x49xf32>
    %918 = vector.shape_cast %915 : vector<1x49xf32> to vector<1x1x49xf32>
    tpu.vector_store %arg32[%c0_335, %c0_336, %c0_337], %918 {strides = array<i32>} : memref<1x1x49xf32, #tpu.memory_space<vmem>>, vector<1x1x49xf32>,
    %c0_338 = arith.constant 0 : index
    %c0_339 = arith.constant 0 : index
    %919 = vector.load %arg25[%c0_338, %c0_339] : memref<3x64xf32, #tpu.memory_space<vmem>>, vector<3x64xf32>
    %920 = vector.broadcast %893 : vector<1x64xf32> to vector<3x64xf32>
    %921 = arith.mulf %919, %920 : vector<3x64xf32>
    %cst_340 = arith.constant dense<0.000000e+00> : vector<3xf32>
    %922 = vector.multi_reduction <add>, %921, %cst_340 [1] : vector<3x64xf32> to vector<3xf32>
    %923 = vector.shape_cast %922 : vector<3xf32> to vector<3x1xf32>
    %c0_341 = arith.constant 0 : index
    %c0_342 = arith.constant 0 : index
    %924 = vector.load %arg26[%c0_341, %c0_342] : memref<3x64xf32, #tpu.memory_space<vmem>>, vector<3x64xf32>
    %925 = vector.broadcast %840 : vector<1x64xf32> to vector<3x64xf32>
    %926 = arith.mulf %924, %925 : vector<3x64xf32>
    %cst_343 = arith.constant dense<0.000000e+00> : vector<3xf32>
    %927 = vector.multi_reduction <add>, %926, %cst_343 [1] : vector<3x64xf32> to vector<3xf32>
    %928 = vector.shape_cast %927 : vector<3xf32> to vector<3x1xf32>
    %929 = arith.addf %923, %928 : vector<3x1xf32>
    %c0_344 = arith.constant 0 : index
    %c0_345 = arith.constant 0 : index
    %930 = vector.load %arg27[%c0_344, %c0_345] : memref<3x64xf32, #tpu.memory_space<vmem>>, vector<3x64xf32>
    %931 = vector.broadcast %12 : vector<1x64xf32> to vector<3x64xf32>
    %932 = arith.mulf %930, %931 : vector<3x64xf32>
    %cst_346 = arith.constant dense<0.000000e+00> : vector<3xf32>
    %933 = vector.multi_reduction <add>, %932, %cst_346 [1] : vector<3x64xf32> to vector<3xf32>
    %934 = vector.shape_cast %933 : vector<3xf32> to vector<3x1xf32>
    %935 = arith.addf %929, %934 : vector<3x1xf32>
    %c0_347 = arith.constant 0 : index
    %c0_348 = arith.constant 0 : index
    %936 = vector.load %arg28[%c0_347, %c0_348] : memref<3x1xf32, #tpu.memory_space<vmem>>, vector<3x1xf32>
    %937 = arith.addf %935, %936 : vector<3x1xf32>
    %c0_349 = arith.constant 0 : index
    %c0_350 = arith.constant 0 : index
    %c0_351 = arith.constant 0 : index
    %938 = vector.load %arg33[%c0_349, %c0_350, %c0_351] : memref<1x3x1xf32, #tpu.memory_space<vmem>>, vector<1x3x1xf32>
    %939 = vector.shape_cast %938 : vector<1x3x1xf32> to vector<3x1xf32>
    %940 = vector.shape_cast %937 : vector<3x1xf32> to vector<1x3x1xf32>
    tpu.vector_store %arg33[%c0_349, %c0_350, %c0_351], %940 {strides = array<i32>} : memref<1x3x1xf32, #tpu.memory_space<vmem>>, vector<1x3x1xf32>,
    return
  }
  func.func @transform_0(%arg0: i32) -> (i32, i32, i32) {
    %c0_i32 = arith.constant 0 : i32
    %c0_i32_0 = arith.constant 0 : i32
    %c0_i32_1 = arith.constant 0 : i32
    return %arg0, %c0_i32, %c0_i32_0 : i32, i32, i32
  }
  func.func @transform_1(%arg0: i32) -> (i32, i32, i32) {
    %c0_i32 = arith.constant 0 : i32
    %c0_i32_0 = arith.constant 0 : i32
    %c0_i32_1 = arith.constant 0 : i32
    return %arg0, %c0_i32, %c0_i32_0 : i32, i32, i32
  }
  func.func @transform_2(%arg0: i32) -> (i32, i32, i32) {
    %c0_i32 = arith.constant 0 : i32
    %c0_i32_0 = arith.constant 0 : i32
    %c0_i32_1 = arith.constant 0 : i32
    return %arg0, %c0_i32, %c0_i32_0 : i32, i32, i32
  }
  func.func @transform_3(%arg0: i32) -> (i32, i32, i32) {
    %c0_i32 = arith.constant 0 : i32
    %c0_i32_0 = arith.constant 0 : i32
    %c0_i32_1 = arith.constant 0 : i32
    return %arg0, %c0_i32, %c0_i32_0 : i32, i32, i32
  }
  func.func @transform_4(%arg0: i32) -> (i32, i32, i32) {
    %c0_i32 = arith.constant 0 : i32
    %c0_i32_0 = arith.constant 0 : i32
    %c0_i32_1 = arith.constant 0 : i32
    return %arg0, %c0_i32, %c0_i32_0 : i32, i32, i32
  }
  func.func @transform_5(%arg0: i32) -> (i32, i32, i32) {
    %c0_i32 = arith.constant 0 : i32
    %c0_i32_0 = arith.constant 0 : i32
    %c0_i32_1 = arith.constant 0 : i32
    return %arg0, %c0_i32, %c0_i32_0 : i32, i32, i32
  }
  func.func @transform_6(%arg0: i32) -> (i32, i32, i32) {
    %c0_i32 = arith.constant 0 : i32
    %c0_i32_0 = arith.constant 0 : i32
    %c0_i32_1 = arith.constant 0 : i32
    return %arg0, %c0_i32, %c0_i32_0 : i32, i32, i32
  }
  func.func @transform_7(%arg0: i32) -> (i32, i32) {
    %c0_i32 = arith.constant 0 : i32
    %c0_i32_0 = arith.constant 0 : i32
    %c0_i32_1 = arith.constant 0 : i32
    return %c0_i32, %c0_i32_0 : i32, i32
  }
  func.func @transform_8(%arg0: i32) -> (i32, i32) {
    %c0_i32 = arith.constant 0 : i32
    %c0_i32_0 = arith.constant 0 : i32
    %c0_i32_1 = arith.constant 0 : i32
    return %c0_i32, %c0_i32_0 : i32, i32
  }
  func.func @transform_9(%arg0: i32) -> (i32, i32) {
    %c0_i32 = arith.constant 0 : i32
    %c0_i32_0 = arith.constant 0 : i32
    %c0_i32_1 = arith.constant 0 : i32
    return %c0_i32, %c0_i32_0 : i32, i32
  }
  func.func @transform_10(%arg0: i32) -> (i32, i32) {
    %c0_i32 = arith.constant 0 : i32
    %c0_i32_0 = arith.constant 0 : i32
    %c0_i32_1 = arith.constant 0 : i32
    return %c0_i32, %c0_i32_0 : i32, i32
  }
  func.func @transform_11(%arg0: i32) -> (i32, i32) {
    %c0_i32 = arith.constant 0 : i32
    %c0_i32_0 = arith.constant 0 : i32
    %c0_i32_1 = arith.constant 0 : i32
    return %c0_i32, %c0_i32_0 : i32, i32
  }
  func.func @transform_12(%arg0: i32) -> (i32, i32) {
    %c0_i32 = arith.constant 0 : i32
    %c0_i32_0 = arith.constant 0 : i32
    %c0_i32_1 = arith.constant 0 : i32
    return %c0_i32, %c0_i32_0 : i32, i32
  }
  func.func @transform_13(%arg0: i32) -> (i32, i32) {
    %c0_i32 = arith.constant 0 : i32
    %c0_i32_0 = arith.constant 0 : i32
    %c0_i32_1 = arith.constant 0 : i32
    return %c0_i32, %c0_i32_0 : i32, i32
  }
  func.func @transform_14(%arg0: i32) -> (i32, i32) {
    %c0_i32 = arith.constant 0 : i32
    %c0_i32_0 = arith.constant 0 : i32
    %c0_i32_1 = arith.constant 0 : i32
    return %c0_i32, %c0_i32_0 : i32, i32
  }
  func.func @transform_15(%arg0: i32) -> (i32, i32) {
    %c0_i32 = arith.constant 0 : i32
    %c0_i32_0 = arith.constant 0 : i32
    %c0_i32_1 = arith.constant 0 : i32
    return %c0_i32, %c0_i32_0 : i32, i32
  }
  func.func @transform_16(%arg0: i32) -> (i32, i32) {
    %c0_i32 = arith.constant 0 : i32
    %c0_i32_0 = arith.constant 0 : i32
    %c0_i32_1 = arith.constant 0 : i32
    return %c0_i32, %c0_i32_0 : i32, i32
  }
  func.func @transform_17(%arg0: i32) -> (i32, i32) {
    %c0_i32 = arith.constant 0 : i32
    %c0_i32_0 = arith.constant 0 : i32
    %c0_i32_1 = arith.constant 0 : i32
    return %c0_i32, %c0_i32_0 : i32, i32
  }
  func.func @transform_18(%arg0: i32) -> (i32, i32) {
    %c0_i32 = arith.constant 0 : i32
    %c0_i32_0 = arith.constant 0 : i32
    %c0_i32_1 = arith.constant 0 : i32
    return %c0_i32, %c0_i32_0 : i32, i32
  }
  func.func @transform_19(%arg0: i32) -> (i32, i32) {
    %c0_i32 = arith.constant 0 : i32
    %c0_i32_0 = arith.constant 0 : i32
    %c0_i32_1 = arith.constant 0 : i32
    return %c0_i32, %c0_i32_0 : i32, i32
  }
  func.func @transform_20(%arg0: i32) -> (i32, i32) {
    %c0_i32 = arith.constant 0 : i32
    %c0_i32_0 = arith.constant 0 : i32
    %c0_i32_1 = arith.constant 0 : i32
    return %c0_i32, %c0_i32_0 : i32, i32
  }
  func.func @transform_21(%arg0: i32) -> (i32, i32) {
    %c0_i32 = arith.constant 0 : i32
    %c0_i32_0 = arith.constant 0 : i32
    %c0_i32_1 = arith.constant 0 : i32
    return %c0_i32, %c0_i32_0 : i32, i32
  }
  func.func @transform_22(%arg0: i32) -> (i32, i32) {
    %c0_i32 = arith.constant 0 : i32
    %c0_i32_0 = arith.constant 0 : i32
    %c0_i32_1 = arith.constant 0 : i32
    return %c0_i32, %c0_i32_0 : i32, i32
  }
  func.func @transform_23(%arg0: i32) -> (i32, i32) {
    %c0_i32 = arith.constant 0 : i32
    %c0_i32_0 = arith.constant 0 : i32
    %c0_i32_1 = arith.constant 0 : i32
    return %c0_i32, %c0_i32_0 : i32, i32
  }
  func.func @transform_24(%arg0: i32) -> (i32, i32) {
    %c0_i32 = arith.constant 0 : i32
    %c0_i32_0 = arith.constant 0 : i32
    %c0_i32_1 = arith.constant 0 : i32
    return %c0_i32, %c0_i32_0 : i32, i32
  }
  func.func @transform_25(%arg0: i32) -> (i32, i32) {
    %c0_i32 = arith.constant 0 : i32
    %c0_i32_0 = arith.constant 0 : i32
    %c0_i32_1 = arith.constant 0 : i32
    return %c0_i32, %c0_i32_0 : i32, i32
  }
  func.func @transform_26(%arg0: i32) -> (i32, i32) {
    %c0_i32 = arith.constant 0 : i32
    %c0_i32_0 = arith.constant 0 : i32
    %c0_i32_1 = arith.constant 0 : i32
    return %c0_i32, %c0_i32_0 : i32, i32
  }
  func.func @transform_27(%arg0: i32) -> (i32, i32) {
    %c0_i32 = arith.constant 0 : i32
    %c0_i32_0 = arith.constant 0 : i32
    %c0_i32_1 = arith.constant 0 : i32
    return %c0_i32, %c0_i32_0 : i32, i32
  }
  func.func @transform_28(%arg0: i32) -> (i32, i32) {
    %c0_i32 = arith.constant 0 : i32
    %c0_i32_0 = arith.constant 0 : i32
    %c0_i32_1 = arith.constant 0 : i32
    return %c0_i32, %c0_i32_0 : i32, i32
  }
  func.func @transform_29(%arg0: i32) -> (i32, i32) {
    %c0_i32 = arith.constant 0 : i32
    %c0_i32_0 = arith.constant 0 : i32
    %c0_i32_1 = arith.constant 0 : i32
    return %c0_i32, %c0_i32_0 : i32, i32
  }
  func.func @transform_30(%arg0: i32) -> (i32, i32) {
    %c0_i32 = arith.constant 0 : i32
    %c0_i32_0 = arith.constant 0 : i32
    %c0_i32_1 = arith.constant 0 : i32
    return %c0_i32, %c0_i32_0 : i32, i32
  }
  func.func @transform_31(%arg0: i32) -> (i32, i32, i32) {
    %c0_i32 = arith.constant 0 : i32
    %c0_i32_0 = arith.constant 0 : i32
    %c0_i32_1 = arith.constant 0 : i32
    return %arg0, %c0_i32, %c0_i32_0 : i32, i32, i32
  }
  func.func @transform_32(%arg0: i32) -> (i32, i32, i32) {
    %c0_i32 = arith.constant 0 : i32
    %c0_i32_0 = arith.constant 0 : i32
    %c0_i32_1 = arith.constant 0 : i32
    return %arg0, %c0_i32, %c0_i32_0 : i32, i32, i32
  }
}

</mosaic_0001>

<bundles_post_ra>
// kernel: gazenet_forward.1
= control target key start
LH: loop header
LB: loop body
LE: loop exit
PB: predicated region body
PF: predicated region fallthrough
CT: control target
= control target key end

     0   :  { %s4443_s6 = smov 1   ;;  %s4444_s10 = smov 2   ;;  %s5944_s0 = inlined_call_operand.smem [shape: u32[33], index: -1, kind: input, shape index: {}] }
   0x1   :  { %s4486_s5 = sld [smem:[%s5944_s0]]   ;;  %s4445_s14 = smov 3  }
   0x2   :  { %s4491_s9 = sld [smem:[%s5944_s0 + %s4443_s6]]   ;;  %s4446_s18 = smov 4  }
   0x3   :  { %s4496_s13 = sld [smem:[%s5944_s0 + %s4444_s10]]   ;;  %s4447_s22 = smov 5  }
   0x4   :  { %s4501_s17 = sld [smem:[%s5944_s0 + %s4445_s14]]   ;;  %s4448_s26 = smov 6  }
   0x5   :  { %s4506_s21 = sld [smem:[%s5944_s0 + %s4446_s18]]   ;;  %s4449_s30 = smov 7  }
   0x6   :  { %s4511_s25 = sld [smem:[%s5944_s0 + %s4447_s22]]   ;;  %s4450_s4 = smov 8  }
   0x7   :  { %s4516_s29 = sld [smem:[%s5944_s0 + %s4448_s26]]   ;;  %s4451_s10 = smov 9  }
   0x8   :  { %s4521_s3 = sld [smem:[%s5944_s0 + %s4449_s30]]   ;;  %s4452_s15 = smov 10  }
   0x9   :  { %s4526_s8 = sld [smem:[%s5944_s0 + %s4450_s4]]   ;;  %s4453_s20 = smov 11  }
   0xa   :  { %s4531_s14 = sld [smem:[%s5944_s0 + %s4451_s10]]   ;;  %s4454_s26 = smov 12  }
   0xb   :  { %s4536_s19 = sld [smem:[%s5944_s0 + %s4452_s15]]   ;;  %s4455_s1 = smov 13  }
   0xc   :  { %5968 = sst [smem:[#allocation3_spill]] %s4511_s25  ;;  %s4456_s7 = smov 14  }
   0xd   :  { %s4541_s24 = sld [smem:[%s5944_s0 + %s4453_s20]]   ;;  %s4457_s15 = smov 15  }
   0xe   :  { %s4546_s30 = sld [smem:[%s5944_s0 + %s4454_s26]]   ;;  %s4458_s22 = smov 16  }
   0xf   :  { %s4551_s6 = sld [smem:[%s5944_s0 + %s4455_s1]]   ;;  %s4459_s28 = smov 17  }
  0x10   :  { %s4556_s12 = sld [smem:[%s5944_s0 + %s4456_s7]]   ;;  %s4460_s7 = smov 18  }
  0x11   :  { %s4561_s20 = sld [smem:[%s5944_s0 + %s4457_s15]]   ;;  %s4461_s15 = smov 19  }
  0x12   :  { %s4566_s27 = sld [smem:[%s5944_s0 + %s4458_s22]]   ;;  %s4462_s22 = smov 20  }
  0x13   :  { %s4571_s4 = sld [smem:[%s5944_s0 + %s4459_s28]]   ;;  %s4463_s28 = smov 21  }
  0x14   :  { %5969 = sst [smem:[#allocation4_spill]] %s4546_s30  ;;  %s4473_s16 = smov 31  }
  0x15   :  { %s4576_s25 = sld [smem:[%s5944_s0 + %s4460_s7]]   ;;  %s4464_s7 = smov 22  }
  0x16   :  { %5970 = sst [smem:[#allocation5_spill]] %s4556_s12  ;;  %s4474_s23 = smov 32  }
  0x17   :  { %5971 = sst [smem:[#allocation6_spill]] %s4561_s20 }
  0x18   :  { %5972 = sst [smem:[#allocation7_spill]] %s4566_s27 }
  0x19   :  { %5973 = sst [smem:[#allocation8_spill]] %s4571_s4 }
  0x1a   :  { %s4581_s20 = sld [smem:[%s5944_s0 + %s4461_s15]]   ;;  %s4465_s15 = smov 23  }
  0x1b   :  { %5974 = sst [smem:[#allocation9_spill]] %s4576_s25 }
  0x1c   :  { %s4586_s27 = sld [smem:[%s5944_s0 + %s4462_s22]]   ;;  %s4466_s22 = smov 24  }
  0x1d   :  { %s4591_s4 = sld [smem:[%s5944_s0 + %s4463_s28]]   ;;  %s4467_s28 = smov 25  }
  0x1e   :  { %s4596_s25 = sld [smem:[%s5944_s0 + %s4464_s7]]   ;;  %s4468_s7 = smov 26  }
  0x1f   :  { %s4601_s12 = sld [smem:[%s5944_s0 + %s4465_s15]]   ;;  %s4469_s15 = smov 27  }
  0x20   :  { %s4606_s30 = sld [smem:[%s5944_s0 + %s4466_s22]]   ;;  %s4470_s22 = smov 28  }
  0x23   :  { %5975 = sst [smem:[#allocation10_spill]] %s4591_s4 }
  0x24   :  { %5976 = sst [smem:[#allocation11_spill]] %s4596_s25 }
  0x25   :  { %5977 = sst [smem:[#allocation12_spill]] %s4601_s12 }
  0x26   :  { %5978 = sst [smem:[#allocation13_spill]] %s4606_s30 }
  0x27   :  { %s4611_s4 = sld [smem:[%s5944_s0 + %s4467_s28]]   ;;  %s4471_s28 = smov 29  }
  0x28   :  { %s4616_s25 = sld [smem:[%s5944_s0 + %s4468_s7]]   ;;  %s4472_s7 = smov 30  }
  0x29   :  { %s4621_s12 = sld [smem:[%s5944_s0 + %s4469_s15]]  }
  0x2a   :  { %s4626_s30 = sld [smem:[%s5944_s0 + %s4470_s22]]  }
  0x2d   :  { %5979 = sst [smem:[#allocation14_spill]] %s4611_s4 }
  0x2e   :  { %5980 = sst [smem:[#allocation15_spill]] %s4616_s25 }
  0x2f   :  { %5981 = sst [smem:[#allocation16_spill]] %s4621_s12 }
  0x30   :  { %5982 = sst [smem:[#allocation17_spill]] %s4626_s30 }
  0x31   :  { %s4631_s4 = sld [smem:[%s5944_s0 + %s4471_s28]]   ;;  %s4646_s28 = smov 0  }
  0x32   :  { %s3894_s25 = sld [smem:[%s5944_s0 + %s4472_s7]]  }
  0x33   :  { %s4639_s12 = sld [smem:[%s5944_s0 + %s4473_s16]]  }
  0x34   :  { %s4644_s30 = sld [smem:[%s5944_s0 + %s4474_s23]]  }
  0x38   :  { %v71_v0 = vstv %s3894_s25 }
  0x39   :  { %72 = vst [vmem:[#allocation2] sm:$0x1] %v71_v0 }
  0x3a LB: > { %s3897_s1 = sadd.s32 4294967295, %s4441_s28   ;;  %p3901_p0 = scmp.ge.s32.totalorder %s4441_s28, 1  ;;  %s4441_s28 = sphi %s4646_s28, %s78_s28  }
  0x3b   : > { %p960_p1 = scmp.lt.s32.totalorder %s4441_s28, 3 }
  0x3d   : > { %p961_p2 = pnand %p3901_p0, %p960_p1 }
  0x3f   : > { %964 = sbr.rel (%p961_p2) target bundleno = 1495 (0x5d7), region = 144 }
  0x44   : > { %v1145_v1 = vld [vmem:[%s4521_s3 + $0x78] sm:$0xff]  ;;  %p1074_p3 = scmp.lt.s32.totalorder %s3897_s1, 1  ;;  %v1319_v2 = vlaneseq  ;;  %v5955_v3 = vmov 0.0   ;;  %v1144_v4 = vld [vmem:[%s4521_s3 + $0x70] sm:$0xff]  ;;  %v1143_v6 = vld [vmem:[%s4521_s3 + $0x68] sm:$0xff]  ;;  %vm1371_vm0 = vcmask 457728  }
  0x45   : > { %1183 = vmatprep.subr.mxu0 %v5955_v3  ;;  %4091 = vmatprep.subr.mxu1 %v5955_v3  ;;  %v1142_v7 = vld [vmem:[%s4521_s3 + $0x60] sm:$0xff]  ;;  %v1141_v8 = vld [vmem:[%s4521_s3 + $0x58] sm:$0xff]  ;;  %vm1161_vm2 = vcmask 523264   ;;  %v1140_v14 = vld [vmem:[%s4521_s3 + $0x50] sm:$0xff]  ;;  %s6006_s15 = sld [smem:[#allocation4_spill]] }
  0x46   : > { %1184 = vmatpush1.msra.mxu0 %v1145_v1  ;;  %s6038_s1 = smov (!%p1074_p3, %s3897_s1), 1  ;;  %v4660_v5 = vshrl.u32 %v1319_v2, 7  ;;  %v4693_v18 = vand.u32 127, %v1319_v2  ;;  %v1139_v21 = vld [vmem:[%s4521_s3 + $0x48] sm:$0xff]  ;;  %v1138_v26 = vld [vmem:[%s4521_s3 + $0x40] sm:$0xff]  ;;  %v1137_v32 = vld [vmem:[%s4521_s3 + $0x38] sm:$0xff] }
  0x47   : > { %1185 = vmatprep.subr.mxu0 %v5955_v3  ;;  %s4665_s0 = smul.u32 56, %s6038_s1  ;;  %v1136_v37 = vld [vmem:[%s4521_s3 + $0x30] sm:$0xff]  ;;  %v1135_v43 = vld [vmem:[%s4521_s3 + $0x28] sm:$0xff]  ;;  %v1134_v51 = vld [vmem:[%s4521_s3 + $0x20] sm:$0xff]  ;;  %s6007_s23 = sld [smem:[#allocation5_spill]] }
  0x48   : > { %1186 = vmatpush1.msra.mxu0 %v1144_v4  ;;  %vm1454_vm1 = vcmp.ge.s32.totalorder %v4660_v5, 1  ;;  %s4350_s2 = smul.u32 112, %s6038_s1  ;;  %v4679_v10 = vadd.s32 8, %v4660_v5  ;;  %v4705_v30 = vadd.s32 16, %v4660_v5  ;;  %vm1409_vm4 = vcmp.ge.s32.totalorder %v4693_v18, 9  ;;  %v1133_v61 = vld [vmem:[%s4521_s3 + $0x18] sm:$0xff] }
  0x49   : > { %1187 = vmatprep.subr.mxu0 %v5955_v3  ;;  %s4672_s25 = scalar_lea.vmem %s4486_s5, %s4665_s0  ;;  %vm1410_vm5 = vcmp.lt.s32.totalorder %v4693_v18, 24  ;;  %vm1400_vm6 = vcmp.ge.s32.totalorder %v4693_v18, 1  ;;  %vm1401_vm7 = vcmp.lt.s32.totalorder %v4693_v18, 16  ;;  %vm1418_vm8 = vcmp.ge.s32.totalorder %v4693_v18, 17  ;;  %v2086_v58 = vld [vmem:[%s4586_s27 + $0x30] sm:$0x1]  ;;  %s5147_s10 = scalar_lea.vmem %s4506_s21, %s4665_s0 }
  0x4a   : > { %1188 = vmatpush1.msra.mxu0 %v1143_v6  ;;  %v1312_v9 = vld [vmem:[%s4672_s25] sm:$0xff]  ;;  %v1313_v13 = vld [vmem:[%s4672_s25 + $0x8] sm:$0xff]  ;;  %s4690_s7 = scalar_lea.vmem %s4491_s9, %s4350_s2  ;;  %vm1558_vm3 = vcmp.ge.s32.totalorder %v4679_v10, 9  ;;  %v1314_v25 = vld [vmem:[%s4672_s25 + $0x10] sm:$0xff]  ;;  %5983 = vst [vmem:[#allocation18_spill] sm:$0xff] %v4705_v30  ;;  %vm1419_vm9 = vcmp.lt.s32.totalorder %v4693_v18, 32  ;;  %s5221_s11 = scalar_lea.vmem %s4516_s29, %s4665_s0 }
  0x4b   : > { %1189 = vmatprep.subr.mxu0 %v5955_v3  ;;  %v1372_v11 = vsel %vm1371_vm0, %v1312_v9, -inf  ;;  %v1489_v12 = vsel %vm1454_vm1, %v1312_v9, -inf  ;;  %v1497_v17 = vsel %vm1371_vm0, %v1313_v13, -inf  ;;  %v1593_v20 = vsel %vm1558_vm3, %v1313_v13, -inf  ;;  %v1117_v23 = vld [vmem:[%s4690_s7 + $0x8] sm:$0xff]  ;;  %vm4724_vm10 = vmand %vm1409_vm4, %vm1410_vm5  ;;  %v4761_v48 = vld [vmem:[%s4672_s25 + $0x18] sm:$0xff]  ;;  %s5335_s16 = scalar_lea.vmem %s4501_s17, %s4665_s0  ;;  %s5404_s18 = scalar_lea.vmem %s4496_s13, %s4665_s0 }
  0x4c   : > { %1190 = vmatpush1.msra.mxu0 %v1142_v7  ;;  %v1385_v15 = vrot.slane %v1372_v11, 4  ;;  %v1496_v16 = vsel %vm1371_vm0, %v1489_v12, -inf  ;;  %3911 = vmatprep.mubr.msk.f32.mxu0 %vm1161_vm2, %v1117_v23  ;;  %v1600_v28 = vsel %vm1371_vm0, %v1593_v20, -inf  ;;  %v1601_v29 = vsel %vm1371_vm0, %v1314_v25, -inf  ;;  %v4730_v40 = vld [vmem:[%s4672_s25 + $0x28] sm:$0xff]  ;;  %vm4737_vm13 = vmand %vm1400_vm6, %vm1401_vm7  ;;  %v4794_v60 = vld [vmem:[%s4672_s25 + $0x20] sm:$0xff] }
  0x4d   : > { %1191 = vmatprep.subr.mxu0 %v5955_v3  ;;  %v1506_v19 = vmax.f32 %v1496_v16, %v1497_v17  ;;  %v1611_v35 = vmax.f32 %v1600_v28, %v1601_v29  ;;  %v4716_v36 = vadd.s32 32, %v4660_v5  ;;  %vm1662_vm11 = vcmp.ge.s32.totalorder %v4705_v30, 17  ;;  %vm4751_vm1 = vmand %vm1418_vm8, %vm1419_vm9  ;;  %v1132_v6 = vld [vmem:[%s4521_s3 + $0x10] sm:$0xff]  ;;  %v2085_v62 = vld [vmem:[%s4586_s27 + $0x28] sm:$0xff]  ;;  %s6008_s22 = sld [smem:[#allocation11_spill]] }
  0x4e   : > { %1192 = vmatpush1.msra.mxu0 %v1141_v8  ;;  %v1386_v22 = vmax.f32 %v1372_v11, %v1385_v15  ;;  %vm1392_vm12 = vcmp.lt.s32.totalorder %v4693_v18, 8  ;;  %vm1427_vm14 = vcmp.ge.s32.totalorder %v4693_v18, 25  ;;  %vm1428_vm15 = vcmp.lt.s32.totalorder %v4693_v18, 40  ;;  %v1131_v15 = vld [vmem:[%s4521_s3 + $0x8] sm:$0xff]  ;;  %v1318_v16 = vld [vmem:[%s4672_s25 + $0x30] sm:$0xff]  ;;  %v2084_v11 = vld [vmem:[%s4586_s27 + $0x20] sm:$0xff] }
  0x4f   : > { %1193 = vmatprep.subr.mxu0 %v5955_v3  ;;  %v1509_v24 = vrot.slane %v1506_v19, 4  ;;  %5984 = vst [vmem:[#allocation19_spill] sm:$0xff] %v4716_v36  ;;  %vm1436_vm3 = vcmp.ge.s32.totalorder %v4693_v18, 33  ;;  %vm1437_vm4 = vcmp.lt.s32.totalorder %v4693_v18, 48  ;;  %v1914_v46 = vsel %vm1371_vm0, %v4730_v40, -inf  ;;  %vm4789_vm7 = vmand %vm1427_vm14, %vm1428_vm15  ;;  %s6009_s26 = sld [smem:[#allocation10_spill]] }
  0x50   : > { %1194 = vmatpush1.msra.mxu0 %v1140_v14  ;;  %v1387_v27 = vrot.slane %v1386_v22, 2  ;;  %vm1445_vm5 = vcmp.ge.s32.totalorder %v4693_v18, 41  ;;  %v1612_v47 = vrot.slane %v1611_v35, 4  ;;  %v1697_v49 = vsel %vm1662_vm11, %v1314_v25, -inf  ;;  %vm4802_vm8 = vmand %vm1436_vm3, %vm1437_vm4  ;;  %s6010_s0 = sld [smem:[#allocation6_spill]] }
  0x51   : > { %1195 = vmatprep.subr.mxu0 %v5955_v3  ;;  %v1510_v31 = vmax.f32 %v1506_v19, %v1509_v24  ;;  %vm1870_vm6 = vcmp.ge.s32.totalorder %v4716_v36, 33  ;;  %v4778_v54 = vadd.s32 40, %v4660_v5  ;;  %vm1446_vm9 = vcmp.lt.s32.totalorder %v4693_v18, 56  ;;  %s6012_s25 = sld [smem:[#allocation7_spill]] }
  0x52   : > { %1196 = vmatpush1.msra.mxu0 %v1139_v21  ;;  %v1388_v33 = vmax.f32 %v1386_v22, %v1387_v27  ;;  %v1704_v63 = vsel %vm1371_vm0, %v1697_v49, -inf  ;;  %v1705_v0 = vsel %vm1371_vm0, %v4761_v48, -inf  ;;  %v1905_v1 = vsel %vm1870_vm6, %v4794_v60, -inf  ;;  %vm4828_vm14 = vmand %vm1445_vm5, %vm1446_vm9  ;;  %v1130_v21 = vld [vmem:[%s4521_s3] sm:$0xff] }
  0x53   : > { %1197 = vmatprep.subr.mxu0 %v5955_v3  ;;  %v1511_v34 = vrot.slane %v1510_v31, 2  ;;  %5991 = vst [vmem:[#allocation20_spill] sm:$0xff] %v4778_v54  ;;  %v1613_v4 = vmax.f32 %v1611_v35, %v1612_v47  ;;  %vm1974_vm11 = vcmp.ge.s32.totalorder %v4778_v54, 41  ;;  %v1713_v13 = vmax.f32 %v1704_v63, %v1705_v0  ;;  %v1150_v49 = vld [vmem:[%s4521_s3 + $0xa0] sm:$0xff]  ;;  %v1148_v63 = vld [vmem:[%s4521_s3 + $0x90] sm:$0xff] }
  0x54   : > { %1198 = vmatpush1.msra.mxu0 %v1138_v26  ;;  %v1389_v38 = vrot.slane %v1388_v33, 1  ;;  %v1912_v14 = vsel %vm1371_vm0, %v1905_v1, -inf  ;;  %v4840_v20 = vadd.s32 24, %v4660_v5  ;;  %v2009_v25 = vsel %vm1974_vm11, %v4730_v40, -inf }
  0x55   : > { %1199 = vmatprep.subr.mxu0 %v5955_v3  ;;  %v1512_v42 = vmax.f32 %v1510_v31, %v1511_v34  ;;  %v1614_v19 = vrot.slane %v1613_v4, 2  ;;  %v1918_v24 = vmax.f32 %v1912_v14, %v1914_v46  ;;  %v1715_v27 = vrot.slane %v1713_v13, 4  ;;  %v1153_v31 = vld [vmem:[%s4521_s3 + $0xb8] sm:$0xff] }
  0x56   : > { %1200 = vmatpush1.msra.mxu0 %v1137_v32  ;;  %v4745_v44 = vmax.f32 %v1388_v33, %v1389_v38  ;;  %v2017_v28 = vsel %vm1371_vm0, %v2009_v25, -inf  ;;  %v2019_v29 = vsel %vm1371_vm0, %v1318_v16, -inf  ;;  %v1152_v33 = vld [vmem:[%s4521_s3 + $0xb0] sm:$0xff]  ;;  %vm1766_vm15 = vcmp.ge.s32.totalorder %v4840_v20, 25  ;;  %v1146_v16 = vld [vmem:[%s4521_s3 + $0x80] sm:$0xff] }
  0x57   : > { %1201 = vmatprep.subr.mxu0 %v5955_v3  ;;  %v1513_v59 = vrot.slane %v1512_v42, 1  ;;  %v1716_v40 = vmax.f32 %v1713_v13, %v1715_v27  ;;  %v1801_v46 = vsel %vm1766_vm15, %v4761_v48, -inf  ;;  %v1921_v47 = vrot.slane %v1918_v24, 4  ;;  %v1149_v48 = vld [vmem:[%s4521_s3 + $0x98] sm:$0xff] }
  0x58   : > { %1202 = vmatpush1.msra.mxu0 %v1136_v37  ;;  %v1394_v50 = vsel %vm1392_vm12, %v4745_v44, -inf  ;;  %v1412_v52 = vsel %vm4724_vm10, %v4745_v44, -inf  ;;  %v1403_v53 = vsel %vm4737_vm13, %v4745_v44, -inf  ;;  %v1421_v57 = vsel %vm4751_vm1, %v4745_v44, -inf }
  0x59   : > { %1203 = vmatprep.subr.mxu0 %v5955_v3  ;;  %v1395_v55 = vsel %vm1371_vm0, %v1394_v50, -inf  ;;  %v1413_v56 = vsel %vm1371_vm0, %v1412_v52, -inf  ;;  %v1404_v2 = vsel %vm1371_vm0, %v1403_v53, -inf  ;;  %v1422_v7 = vsel %vm1371_vm0, %v1421_v57, -inf }
  0x5a   : > { %1204 = vmatpush1.msra.mxu0 %v1135_v43  ;;  %1396 = vmax.xlane.f32.xlu0 %v1395_v55  ;;  %v1430_v8 = vsel %vm4789_vm7, %v4745_v44, -inf  ;;  %v1439_v9 = vsel %vm4802_vm8, %v4745_v44, -inf  ;;  %v4832_v12 = vmax.f32 %v1512_v42, %v1513_v59  ;;  %v1448_v23 = vsel %vm4828_vm14, %v4745_v44, -inf  ;;  %v1151_v42 = vld [vmem:[%s4521_s3 + $0xa8] sm:$0xff] }
  0x5b   : > { %1205 = vmatprep.subr.mxu0 %v5955_v3  ;;  %1414 = vmax.xlane.f32.xlu1 %v1413_v56  ;;  %v1431_v17 = vsel %vm1371_vm0, %v1430_v8, -inf  ;;  %v1440_v22 = vsel %vm1371_vm0, %v1439_v9, -inf  ;;  %v1449_v32 = vsel %vm1371_vm0, %v1448_v23, -inf  ;;  %v1615_v37 = vmax.f32 %v1613_v4, %v1614_v19  ;;  %v1147_v9 = vld [vmem:[%s4521_s3 + $0x88] sm:$0xff] }
  0x5c   : > { %1206 = vmatpush1.msra.mxu0 %v1134_v51  ;;  %v1515_v26 = vsel %vm1392_vm12, %v4832_v12, -inf  ;;  %v1521_v35 = vsel %vm4737_vm13, %v4832_v12, -inf  ;;  %v1527_v38 = vsel %vm4724_vm10, %v4832_v12, -inf  ;;  %v2023_v43 = vmax.f32 %v2017_v28, %v2019_v29 }
  0x5d   : > { %1207 = vmatprep.subr.mxu0 %v5955_v3  ;;  %v1516_v34 = vsel %vm1371_vm0, %v1515_v26, -inf  ;;  %v1522_v44 = vsel %vm1371_vm0, %v1521_v35, -inf  ;;  %v1528_v50 = vsel %vm1371_vm0, %v1527_v38, -inf  ;;  %v1533_v51 = vsel %vm4751_vm1, %v4832_v12, -inf  ;;  %v1119_v26 = vld [vmem:[%s4690_s7 + $0x18] sm:$0xff] }
  0x5e   : > { %1208 = vmatpush1.msra.mxu0 %v1133_v61  ;;  %1405 = vmax.xlane.f32.xlu0 %v1404_v2  ;;  %v1616_v52 = vrot.slane %v1615_v37, 1  ;;  %v1539_v53 = vsel %vm4789_vm7, %v4832_v12, -inf  ;;  %v1717_v55 = vrot.slane %v1716_v40, 2  ;;  %v1808_v56 = vsel %vm1371_vm0, %v1801_v46, -inf }
  0x5f   : > { %1209 = vmatprep.subr.mxu0 %v5955_v3  ;;  %1423 = vmax.xlane.f32.xlu1 %v1422_v7  ;;  %v1809_v57 = vsel %vm1371_vm0, %v4794_v60, -inf  ;;  %v1534_v59 = vsel %vm1371_vm0, %v1533_v51, -inf  ;;  %v1922_v61 = vmax.f32 %v1918_v24, %v1921_v47  ;;  %v1540_v0 = vsel %vm1371_vm0, %v1539_v53, -inf }
  0x60   : > { %1210 = vmatpush1.msra.mxu0 %v1132_v6  ;;  %v1545_v1 = vsel %vm4802_vm8, %v4832_v12, -inf  ;;  %v4894_v2 = vmax.f32 %v1615_v37, %v1616_v52  ;;  %v2024_v4 = vrot.slane %v2023_v43, 4  ;;  %v1551_v60 = vsel %vm4828_vm14, %v4832_v12, -inf  ;;  %v1118_v37 = vld [vmem:[%s4690_s7 + $0x10] sm:$0xff] }
  0x61   : > { %1211 = vmatprep.subr.mxu0 %v5955_v3  ;;  %v1718_v6 = vmax.f32 %v1716_v40, %v1717_v55  ;;  %v1817_v7 = vmax.f32 %v1809_v57, %v1808_v56  ;;  %v1923_v8 = vrot.slane %v1922_v61, 2  ;;  %v1546_v13 = vsel %vm1371_vm0, %v1545_v1, -inf }
  0x62   : > { %1212 = vmatpush1.msra.mxu0 %v1131_v15  ;;  %1432 = vmax.xlane.f32.xlu0 %v1431_v17  ;;  %v2025_v15 = vmax.f32 %v2023_v43, %v2024_v4  ;;  %v1552_v12 = vsel %vm1371_vm0, %v1551_v60, -inf  ;;  %v1618_v17 = vsel %vm1392_vm12, %v4894_v2, -inf  ;;  %v1624_v19 = vsel %vm4737_vm13, %v4894_v2, -inf  ;;  %v1123_v4 = vld [vmem:[%s4690_s7 + $0x38] sm:$0xff] }
  0x63   : > { %1213 = vmatprep.subr.mxu0 %v5955_v3  ;;  %1441 = vmax.xlane.f32.xlu1 %v1440_v22  ;;  %v1924_v14 = vmax.f32 %v1922_v61, %v1923_v8  ;;  %v1630_v22 = vsel %vm4724_vm10, %v4894_v2, -inf  ;;  %v1636_v23 = vsel %vm4751_vm1, %v4894_v2, -inf  ;;  %v1719_v24 = vrot.slane %v1718_v6, 1  ;;  %v1120_v61 = vld [vmem:[%s4690_s7 + $0x20] sm:$0xff] }
  0x64   : > { %1214 = vmatpush1.msra.mxu0 %v1130_v21  ;;  %v1116_v21 = vld [vmem:[%s4690_s7] sm:$0xff]  ;;  %v1818_v25 = vrot.slane %v1817_v7, 4  ;;  %v1619_v28 = vsel %vm1371_vm0, %v1618_v17, -inf  ;;  %v1625_v29 = vsel %vm1371_vm0, %v1624_v19, -inf  ;;  %v1648_v38 = vsel %vm4802_vm8, %v4894_v2, -inf }
  0x65   : > { %1231 = vmatprep.subr.mxu0 %v5955_v3  ;;  %v1925_v27 = vrot.slane %v1924_v14, 1  ;;  %v4933_v40 = vmax.f32 %v1718_v6, %v1719_v24  ;;  %v1654_v60 = vsel %vm4828_vm14, %v4894_v2, -inf  ;;  %v1649_v8 = vsel %vm1371_vm0, %v1648_v38, -inf  ;;  %v1127_v38 = vld [vmem:[%s4690_s7 + $0x58] sm:$0xff] }
  0x66   : > { %1232 = vmatpush2.msra.mxu0 %v1153_v31  ;;  %1450 = vmax.xlane.f32.xlu0 %v1449_v32  ;;  %v2026_v31 = vrot.slane %v2025_v15, 2  ;;  %v1631_v32 = vsel %vm1371_vm0, %v1630_v22, -inf  ;;  %vm1425_vm3 = vcmp.eq.s32.totalorder %v4693_v18, 3  ;;  %vm1434_vm4 = vcmp.eq.s32.totalorder %v4693_v18, 4 }
  0x67   : > { %1233 = vmatprep.subr.mxu0 %v5955_v3  ;;  %1517 = vmax.xlane.f32.xlu1 %v1516_v34  ;;  %v1642_v34 = vsel %vm4789_vm7, %v4894_v2, -inf  ;;  %v1926_v35 = vmax.f32 %v1924_v14, %v1925_v27  ;;  %v1655_v27 = vsel %vm1371_vm0, %v1654_v60, -inf  ;;  %vm1443_vm5 = vcmp.eq.s32.totalorder %v4693_v18, 5 }
  0x68   : > { %1234 = vmatpush2.msra.mxu0 %v1152_v33  ;;  %v1637_v33 = vsel %vm1371_vm0, %v1636_v23, -inf  ;;  %v2027_v43 = vmax.f32 %v2025_v15, %v2026_v31  ;;  %v1125_v23 = vld [vmem:[%s4690_s7 + $0x48] sm:$0xff]  ;;  %vm1452_vm6 = vcmp.eq.s32.totalorder %v4693_v18, 6  ;;  %vm1531_vm9 = vcmp.eq.s32.totalorder %v4693_v18, 9 }
  0x69   : > { %1235 = vmatprep.subr.mxu0 %v5955_v3  ;;  %v1927_v46 = vsel %vm1392_vm12, %v1926_v35, -inf  ;;  %v1933_v47 = vsel %vm4737_vm13, %v1926_v35, -inf  ;;  %v1957_v56 = vsel %vm4802_vm8, %v1926_v35, -inf  ;;  %v1963_v57 = vsel %vm4828_vm14, %v1926_v35, -inf }
  0x6a   : > { %1236 = vmatpush2.msra.mxu0 %v1151_v42  ;;  %1523 = vmax.xlane.f32.xlu0 %v1522_v44  ;;  %v1819_v42 = vmax.f32 %v1817_v7, %v1818_v25  ;;  %v1121_v44 = vld [vmem:[%s4690_s7 + $0x28] sm:$0xff]  ;;  %v4945_v51 = vsel %vm1371_vm0, %v1927_v46, -inf  ;;  %v4948_v52 = vsel %vm1371_vm0, %v1933_v47, -inf  ;;  %v4971_v1 = vsel %vm1371_vm0, %v1963_v57, -inf  ;;  %v1126_v47 = vld [vmem:[%s4690_s7 + $0x50] sm:$0xff] }
  0x6b   : > { %1237 = vmatprep.subr.mxu0 %v5955_v3  ;;  %1529 = vmax.xlane.f32.xlu1 %v1528_v50  ;;  %v1945_v50 = vsel %vm4751_vm1, %v1926_v35, -inf  ;;  %v1643_v7 = vsel %vm1371_vm0, %v1642_v34, -inf  ;;  %v1751_v57 = vsel %vm4802_vm8, %v4933_v40, -inf  ;;  %vm1537_vm11 = vcmp.eq.s32.totalorder %v4693_v18, 10 }
  0x6c   : > { %1238 = vmatpush2.msra.mxu0 %v1150_v49  ;;  %v1939_v49 = vsel %vm4724_vm10, %v1926_v35, -inf  ;;  %v4954_v55 = vsel %vm1371_vm0, %v1945_v50, -inf  ;;  %v1129_v50 = vld [vmem:[%s4690_s7 + $0x68] sm:$0x1]  ;;  %v1752_v60 = vsel %vm1371_vm0, %v1751_v57, -inf  ;;  %vm1549_vm15 = vcmp.eq.s32.totalorder %v4693_v18, 12 }
  0x6d   : > { %1239 = vmatprep.subr.mxu0 %v5955_v3  ;;  %v4951_v53 = vsel %vm1371_vm0, %v1939_v49, -inf  ;;  %v1745_v49 = vsel %vm4789_vm7, %v4933_v40, -inf  ;;  %v2577_v57 = vld [vmem:[%s4541_s24 + $0x38] sm:$0xff] }
  0x6e   : > { %1240 = vmatpush2.msra.mxu0 %v1149_v48  ;;  %1535 = vmax.xlane.f32.xlu0 %v1534_v59  ;;  %v1951_v48 = vsel %vm4789_vm7, %v1926_v35, -inf  ;;  %v2028_v59 = vrot.slane %v2027_v43, 1  ;;  %v1124_v35 = vld [vmem:[%s4690_s7 + $0x40] sm:$0xff] }
  0x6f   : > { %1241 = vmatprep.subr.mxu0 %v5955_v3  ;;  %1541 = vmax.xlane.f32.xlu1 %v1540_v0  ;;  %v4968_v0 = vsel %vm1371_vm0, %v1957_v56, -inf  ;;  %v1746_v56 = vsel %vm1371_vm0, %v1745_v49, -inf }
  0x70   : > { %1242 = vmatpush2.msra.mxu0 %v1148_v63  ;;  %v4965_v63 = vsel %vm1371_vm0, %v1951_v48, -inf  ;;  %v2029_v6 = vmax.f32 %v2027_v43, %v2028_v59 }
  0x71   : > { %1243 = vmatprep.subr.mxu0 %v5955_v3 }
  0x72   : > { %1244 = vmatpush2.msra.mxu0 %v1147_v9  ;;  %1547 = vmax.xlane.f32.xlu0 %v1546_v13  ;;  %v1721_v9 = vsel %vm1392_vm12, %v4933_v40, -inf  ;;  %v1820_v13 = vrot.slane %v1819_v42, 2  ;;  %v2030_v14 = vsel %vm1392_vm12, %v2029_v6, -inf  ;;  %v2036_v15 = vsel %vm4737_vm13, %v2029_v6, -inf }
  0x73   : > { %1245 = vmatprep.subr.mxu0 %v5955_v3  ;;  %1553 = vmax.xlane.f32.xlu1 %v1552_v12  ;;  %v2042_v2 = vsel %vm4724_vm10, %v2029_v6, -inf  ;;  %v1122_v12 = vld [vmem:[%s4690_s7 + $0x30] sm:$0xff]  ;;  %v4993_v17 = vsel %vm1371_vm0, %v2030_v14, -inf  ;;  %v4996_v19 = vsel %vm1371_vm0, %v2036_v15, -inf  ;;  %v2054_v24 = vsel %vm4789_vm7, %v2029_v6, -inf }
  0x74   : > { %1246 = vmatpush2.msra.mxu0 %v1146_v16  ;;  %v2048_v16 = vsel %vm4751_vm1, %v2029_v6, -inf  ;;  %v2060_v25 = vsel %vm4802_vm8, %v2029_v6, -inf  ;;  %v1821_v34 = vmax.f32 %v1819_v42, %v1820_v13  ;;  %v1739_v42 = vsel %vm4751_vm1, %v4933_v40, -inf }
  0x75   : > { %1248 = vmatmul.mubr.f32.vlgmr.msra.gmra.mxu0 %v1116_v21  ;;  %4201 = vmatprep.subr.mxu0 %v5955_v3  ;;  %v4999_v21 = vsel %vm1371_vm0, %v2042_v2, -inf  ;;  %v5002_v22 = vsel %vm1371_vm0, %v2048_v16, -inf  ;;  %v1740_v48 = vsel %vm1371_vm0, %v1739_v42, -inf }
  0x76   : > { %3912 = vmatprep.mubr.msk.f32.mxu0 %vm1161_vm2, %v1119_v26  ;;  %1620 = vmax.xlane.f32.xlu0 %v1619_v28  ;;  %v2066_v26 = vsel %vm4828_vm14, %v2029_v6, -inf  ;;  %v5013_v28 = vsel %vm1371_vm0, %v2054_v24, -inf  ;;  %v1822_v46 = vrot.slane %v1821_v34, 1 }
  0x77   : > { %1626 = vmax.xlane.f32.xlu1 %v1625_v29  ;;  %v5016_v29 = vsel %vm1371_vm0, %v2060_v25, -inf  ;;  %v5019_v31 = vsel %vm1371_vm0, %v2066_v26, -inf  ;;  %4202 = vmatpush3.msra.mxu0 %v2577_v57 }
  0x78   : > { %v1823_v59 = vmax.f32 %v1821_v34, %v1822_v46  ;;  %4203 = vmatprep.subr.mxu0 %v5955_v3 }
  0x79   : > { %1253 = vmatmul.mubr.f32.gmra.mxu0 %v1118_v37  ;;  %v1733_v37 = vsel %vm4724_vm10, %v4933_v40, -inf }
  0x7a   : > { %3913 = vmatprep.mubr.msk.f32.mxu0 %vm1161_vm2, %v1121_v44  ;;  %1632 = vmax.xlane.f32.xlu0 %v1631_v32  ;;  %v1722_v32 = vsel %vm1371_vm0, %v1721_v9, -inf  ;;  %v1734_v44 = vsel %vm1371_vm0, %v1733_v37, -inf  ;;  %v1842_v14 = vsel %vm4751_vm1, %v1823_v59, -inf  ;;  %v1848_v41 = vsel %vm4789_vm7, %v1823_v59, -inf }
  0x7b   : > { %1638 = vmax.xlane.f32.xlu1 %v1637_v33  ;;  %v1727_v33 = vsel %vm4737_vm13, %v4933_v40, -inf  ;;  %v1843_v2 = vsel %vm1371_vm0, %v1842_v14, -inf  ;;  %v1854_v16 = vsel %vm4802_vm8, %v1823_v59, -inf  ;;  %v1849_v39 = vsel %vm1371_vm0, %v1848_v41, -inf }
  0x7c   : > { %v1728_v43 = vsel %vm1371_vm0, %v1727_v33, -inf  ;;  %v1860_v45 = vsel %vm4828_vm14, %v1823_v59, -inf  ;;  %vm1416_vm1 = vcmp.eq.s32.totalorder %v4693_v18, 2  ;;  %vm1519_vm7 = vcmp.eq.s32.totalorder %v4693_v18, 7 }
  0x7d   : > { %1258 = vmatmul.mubr.f32.gmra.mxu0 %v1120_v61  ;;  %v1128_v61 = vld [vmem:[%s4690_s7 + $0x60] sm:$0x1]  ;;  %vm1525_vm8 = vcmp.eq.s32.totalorder %v4693_v18, 8 }
  0x7e   : > { %3914 = vmatprep.mubr.msk.f32.mxu0 %vm1161_vm2, %v1123_v4  ;;  %1644 = vmax.xlane.f32.xlu0 %v1643_v7  ;;  %v1757_v4 = vsel %vm4828_vm14, %v4933_v40, -inf  ;;  %v1824_v7 = vsel %vm1392_vm12, %v1823_v59, -inf  ;;  %v1836_v40 = vsel %vm4724_vm10, %v1823_v59, -inf  ;;  %vm4476_vm10 = vmmov 0  }
  0x7f   : > { %1650 = vmax.xlane.f32.xlu1 %v1649_v8  ;;  %v1758_v6 = vsel %vm1371_vm0, %v1757_v4, -inf  ;;  %v1830_v8 = vsel %vm4737_vm13, %v1823_v59, -inf  ;;  %v1825_v9 = vsel %vm1371_vm0, %v1824_v7, -inf  ;;  %v1837_v15 = vsel %vm1371_vm0, %v1836_v40, -inf  ;;  %4105 = vmatprep.mubr.msk.f32.mxu1 %vm4476_vm10, %v5955_v3  ;;  %v2576_v4 = vld [vmem:[%s4541_s24 + $0x30] sm:$0xff]  ;;  %v2575_v7 = vld [vmem:[%s4541_s24 + $0x28] sm:$0xff] }
  0x80   : > { %v1831_v13 = vsel %vm1371_vm0, %v1830_v8, -inf  ;;  %vm1398_vm12 = vcmp.eq.s32.totalorder %v4693_v18, 0  ;;  %vm1407_vm13 = vcmp.eq.s32.totalorder %v4693_v18, 1  ;;  %vm1543_vm14 = vcmp.eq.s32.totalorder %v4693_v18, 11  ;;  %4204 = vmatpush3.msra.mxu0 %v2576_v4 }
  0x81   : > { %1263 = vmatmul.mubr.f32.gmra.mxu0 %v1122_v12  ;;  %v1855_v12 = vsel %vm1371_vm0, %v1854_v16, -inf  ;;  %4205 = vmatprep.subr.mxu0 %v5955_v3  ;;  %v2572_v16 = vld [vmem:[%s4541_s24 + $0x10] sm:$0xff] }
  0x82   : > { %3915 = vmatprep.mubr.msk.f32.mxu0 %vm1161_vm2, %v1125_v23  ;;  %1656 = vmax.xlane.f32.xlu0 %v1655_v27  ;;  %v1861_v23 = vsel %vm1371_vm0, %v1860_v45, -inf  ;;  %vm2091_vm0 = vcmask 1040384   ;;  %v2571_v45 = vld [vmem:[%s4541_s24 + $0x8] sm:$0xff] }
  0x83   : > { %1723 = vmax.xlane.f32.xlu1 %v1722_v32  ;;  %4092 = vmatpush3.msk.msra.mxu1 %vm2091_vm0, %v2086_v58  ;;  %vm1555_vm0 = vcmp.eq.s32.totalorder %v4693_v18, 13 }
  0x84   : > { %4093 = vmatprep.subr.mxu1 %v5955_v3  ;;  %4206 = vmatpush3.msra.mxu0 %v2575_v7 }
  0x85   : > { %1268 = vmatmul.mubr.f32.gmra.mxu0 %v1124_v35  ;;  %4094 = vmatpush3.msra.mxu1 %v2085_v62 }
  0x86   : > { %3916 = vmatprep.mubr.msk.f32.mxu0 %vm1161_vm2, %v1127_v38  ;;  %1729 = vmax.xlane.f32.xlu0 %v1728_v43 }
  0x87   : > { %1735 = vmax.xlane.f32.xlu1 %v1734_v44  ;;  %4095 = vmatprep.subr.mxu1 %v5955_v3 }
  0x88   : > { %4096 = vmatpush3.msra.mxu1 %v2084_v11  ;;  %4207 = vmatprep.subr.mxu0 %v5955_v3 }
  0x89   : > { %1273 = vmatmul.mubr.f32.gmra.mxu0 %v1126_v47  ;;  %4097 = vmatprep.subr.mxu1 %v5955_v3 }
  0x8a   : > { %3917 = vmatprep.mubr.msk.f32.mxu0 %vm1161_vm2, %v1129_v50  ;;  %1741 = vmax.xlane.f32.xlu0 %v1740_v48 }
  0x8b   : > { %1747 = vmax.xlane.f32.xlu1 %v1746_v56 }
  0x8d   : > { %1278 = vmatmul.mubr.f32.gmra.mxu0 %v1128_v61 }
  0x8e   : > { %1753 = vmax.xlane.f32.xlu0 %v1752_v60  ;;  %4217 = vmatprep.mubr.msk.f32.mxu0 %vm4476_vm10, %v5955_v3 }
  0x8f   : > { %1759 = vmax.xlane.f32.xlu1 %v1758_v6 }
  0x92   : > { %1826 = vmax.xlane.f32.xlu0 %v1825_v9 }
  0x93   : > { %1832 = vmax.xlane.f32.xlu1 %v1831_v13  ;;  %v2574_v13 = vld [vmem:[%s4541_s24 + $0x20] sm:$0xff] }
  0x94   : > { %4208 = vmatpush3.msra.mxu0 %v2574_v13 }
  0x95   : > { %4209 = vmatprep.subr.mxu0 %v5955_v3 }
  0x96   : > { %1838 = vmax.xlane.f32.xlu0 %v1837_v15  ;;  %v2573_v15 = vld [vmem:[%s4541_s24 + $0x18] sm:$0xff] }
  0x97   : > { %1844 = vmax.xlane.f32.xlu1 %v1843_v2  ;;  %4210 = vmatpush3.msra.mxu0 %v2573_v15  ;;  %v2848_v15 = vld [vmem:[%s4551_s6 + $0x20] sm:$0xff] }
  0x98   : > { %4211 = vmatprep.subr.mxu0 %v5955_v3 }
  0x99   : > { %4212 = vmatpush3.msra.mxu0 %v2572_v16  ;;  %v2847_v16 = vld [vmem:[%s4551_s6 + $0x18] sm:$0xff] }
  0x9a   : > { %1850 = vmax.xlane.f32.xlu0 %v1849_v39  ;;  %4213 = vmatprep.subr.mxu0 %v5955_v3 }
  0x9b   : > { %1856 = vmax.xlane.f32.xlu1 %v1855_v12  ;;  %4214 = vmatpush3.msra.mxu0 %v2571_v45 }
  0x9c   : > { %4215 = vmatprep.subr.mxu0 %v5955_v3 }
  0x9e   : > { %1862 = vmax.xlane.f32.xlu0 %v1861_v23 }
  0x9f   : > { %1929 = vmax.xlane.f32.xlu1 %v4945_v51  ;;  %v2083_v51 = vld [vmem:[%s4586_s27 + $0x18] sm:$0xff] }
  0xa0   : > { %4098 = vmatpush3.msra.mxu1 %v2083_v51  ;;  %v2570_v51 = vld [vmem:[%s4541_s24] sm:$0xff] }
  0xa1   : > { %4099 = vmatprep.subr.mxu1 %v5955_v3  ;;  %4216 = vmatpush3.msra.mxu0 %v2570_v51 }
  0xa2   : > { %1935 = vmax.xlane.f32.xlu0 %v4948_v52  ;;  %v2082_v52 = vld [vmem:[%s4586_s27 + $0x10] sm:$0xff]  ;;  %4238 = vmatprep.subr.mxu0 %v5955_v3 }
  0xa3   : > { %1941 = vmax.xlane.f32.xlu1 %v4951_v53  ;;  %4100 = vmatpush3.msra.mxu1 %v2082_v52  ;;  %v2081_v53 = vld [vmem:[%s4586_s27 + $0x8] sm:$0xff] }
  0xa4   : > { %4101 = vmatprep.subr.mxu1 %v5955_v3 }
  0xa5   : > { %4102 = vmatpush3.msra.mxu1 %v2081_v53 }
  0xa6   : > { %1947 = vmax.xlane.f32.xlu0 %v4954_v55  ;;  %4103 = vmatprep.subr.mxu1 %v5955_v3  ;;  %v2080_v55 = vld [vmem:[%s4586_s27] sm:$0xff] }
  0xa7   : > { %1953 = vmax.xlane.f32.xlu1 %v4965_v63  ;;  %4104 = vmatpush3.msra.mxu1 %v2080_v55  ;;  %v2563_v55 = vld [vmem:[%s5147_s10] sm:$0xff] }
  0xa8   : > { %4108 = vmatprep.subr.mxu1 %v5955_v3  ;;  %4218 = vmatmul.mubr.msk.f32.vlgmr.msra.gmra.mxu0 %vm1161_vm2, %v2563_v55 }
  0xa9   : > { %4220 = vmatprep.mubr.msk.f32.mxu0 %vm4476_vm10, %v5955_v3 }
  0xaa   : > { %1959 = vmax.xlane.f32.xlu0 %v4968_v0 }
  0xab   : > { %1965 = vmax.xlane.f32.xlu1 %v4971_v1 }
  0xae   : > { %2032 = vmax.xlane.f32.xlu0 %v4993_v17 }
  0xaf   : > { %2038 = vmax.xlane.f32.xlu1 %v4996_v19 }
  0xb2   : > { %2044 = vmax.xlane.f32.xlu0 %v4999_v21 }
  0xb3   : > { %2050 = vmax.xlane.f32.xlu1 %v5002_v22 }
  0xb6   : > { %2056 = vmax.xlane.f32.xlu0 %v5013_v28 }
  0xb7   : > { %2062 = vmax.xlane.f32.xlu1 %v5016_v29 }
  0xba   : > { %2068 = vmax.xlane.f32.xlu0 %v5019_v31 }
  0xe3   : > { %v1397_v63 = vpop.xlane.xlu0 %1396 }
  0xe4   : > { %v1415_v0 = vpop.xlane.xlu1 %1414  ;;  %v1399_v1 = vsel %vm1398_vm12, %v1397_v63, 0.0  ;;  %vm1622_vm12 = vcmp.eq.s32.totalorder %v4693_v18, 14 }
  0xe7   : > { %v1406_v17 = vpop.xlane.xlu0 %1405 }
  0xe8   : > { %v1408_v19 = vsel %vm1407_vm13, %v1406_v17, %v1399_v1  ;;  %v1424_v21 = vpop.xlane.xlu1 %1423  ;;  %vm1628_vm13 = vcmp.eq.s32.totalorder %v4693_v18, 15 }
  0xe9   : > { %v1417_v22 = vsel %vm1416_vm1, %v1415_v0, %v1408_v19  ;;  %vm1634_vm1 = vcmp.eq.s32.totalorder %v4693_v18, 16  ;;  %v2564_v19 = vld [vmem:[%s5147_s10 + $0x8] sm:$0xff] }
  0xea   : > { %v1426_v24 = vsel %vm1425_vm3, %v1424_v21, %v1417_v22  ;;  %vm1640_vm3 = vcmp.eq.s32.totalorder %v4693_v18, 17  ;;  %4221 = vmatmul.mubr.msk.f32.gmra.mxu0 %vm1161_vm2, %v2564_v19 }
  0xeb   : > { %v1433_v25 = vpop.xlane.xlu0 %1432  ;;  %4223 = vmatprep.mubr.msk.f32.mxu0 %vm4476_vm10, %v5955_v3 }
  0xec   : > { %v1435_v26 = vsel %vm1434_vm4, %v1433_v25, %v1426_v24  ;;  %v1442_v27 = vpop.xlane.xlu1 %1441  ;;  %vm1646_vm4 = vcmp.eq.s32.totalorder %v4693_v18, 18 }
  0xed   : > { %v1444_v28 = vsel %vm1443_vm5, %v1442_v27, %v1435_v26  ;;  %vm1652_vm5 = vcmp.eq.s32.totalorder %v4693_v18, 19  ;;  %v2565_v26 = vld [vmem:[%s5147_s10 + $0x10] sm:$0xff] }
  0xee   : > { %4224 = vmatmul.mubr.msk.f32.gmra.mxu0 %vm1161_vm2, %v2565_v26  ;;  %v2837_v26 = vld [vmem:[%s5221_s11] sm:$0xff] }
  0xef   : > { %v1451_v29 = vpop.xlane.xlu0 %1450  ;;  %4226 = vmatprep.mubr.msk.f32.mxu0 %vm4476_vm10, %v5955_v3 }
  0xf0   : > { %v1453_v31 = vsel %vm1452_vm6, %v1451_v29, %v1444_v28  ;;  %v1518_v32 = vpop.xlane.xlu1 %1517  ;;  %vm1658_vm6 = vcmp.eq.s32.totalorder %v4693_v18, 20 }
  0xf1   : > { %v1520_v33 = vsel %vm1519_vm7, %v1518_v32, %v1453_v31  ;;  %vm1725_vm7 = vcmp.eq.s32.totalorder %v4693_v18, 21  ;;  %v2566_v32 = vld [vmem:[%s5147_s10 + $0x18] sm:$0xff] }
  0xf2   : > { %4227 = vmatmul.mubr.msk.f32.gmra.mxu0 %vm1161_vm2, %v2566_v32 }
  0xf3   : > { %v1524_v34 = vpop.xlane.xlu0 %1523  ;;  %4229 = vmatprep.mubr.msk.f32.mxu0 %vm4476_vm10, %v5955_v3 }
  0xf4   : > { %v1526_v35 = vsel %vm1525_vm8, %v1524_v34, %v1520_v33  ;;  %v1530_v37 = vpop.xlane.xlu1 %1529  ;;  %vm1731_vm8 = vcmp.eq.s32.totalorder %v4693_v18, 22 }
  0xf5   : > { %v1532_v38 = vsel %vm1531_vm9, %v1530_v37, %v1526_v35  ;;  %vm1737_vm9 = vcmp.eq.s32.totalorder %v4693_v18, 23 }
  0xf7   : > { %v1536_v43 = vpop.xlane.xlu0 %1535 }
  0xf8   : > { %v1538_v44 = vsel %vm1537_vm11, %v1536_v43, %v1532_v38  ;;  %v1542_v42 = vpop.xlane.xlu1 %1541  ;;  %vm1743_vm11 = vcmp.eq.s32.totalorder %v4693_v18, 24  ;;  %v2567_v38 = vld [vmem:[%s5147_s10 + $0x20] sm:$0xff] }
  0xf9   : > { %v1544_v46 = vsel %vm1543_vm14, %v1542_v42, %v1538_v44  ;;  %vm1749_vm14 = vcmp.eq.s32.totalorder %v4693_v18, 25  ;;  %4230 = vmatmul.mubr.msk.f32.gmra.mxu0 %vm1161_vm2, %v2567_v38 }
  0xfa   : > { %4232 = vmatprep.mubr.msk.f32.mxu0 %vm4476_vm10, %v5955_v3 }
  0xfb   : > { %v1548_v47 = vpop.xlane.xlu0 %1547 }
  0xfc   : > { %v1550_v49 = vsel %vm1549_vm15, %v1548_v47, %v1544_v46  ;;  %v1554_v50 = vpop.xlane.xlu1 %1553  ;;  %vm1755_vm15 = vcmp.eq.s32.totalorder %v4693_v18, 26  ;;  %v2568_v47 = vld [vmem:[%s5147_s10 + $0x28] sm:$0xff] }
  0xfd   : > { %v1556_v48 = vsel %vm1555_vm0, %v1554_v50, %v1550_v49  ;;  %vm1761_vm0 = vcmp.eq.s32.totalorder %v4693_v18, 27  ;;  %4233 = vmatmul.mubr.msk.f32.gmra.mxu0 %vm1161_vm2, %v2568_v47  ;;  %v2851_v49 = vld [vmem:[%s4551_s6 + $0x38] sm:$0xff] }
  0xfe   : > { %4239 = vmatpush3.msra.mxu0 %v2851_v49  ;;  %4235 = vmatprep.mubr.msk.f32.mxu0 %vm4476_vm10, %v5955_v3 }
  0xff   : > { %v1621_v56 = vpop.xlane.xlu0 %1620  ;;  %4240 = vmatprep.subr.mxu0 %v5955_v3 }
 0x100   : > { %v1623_v59 = vsel %vm1622_vm12, %v1621_v56, %v1556_v48  ;;  %v1627_v61 = vpop.xlane.xlu1 %1626  ;;  %vm1828_vm12 = vcmp.eq.s32.totalorder %v4693_v18, 28 }
 0x101   : > { %v1629_v60 = vsel %vm1628_vm13, %v1627_v61, %v1623_v59  ;;  %vm1834_vm13 = vcmp.eq.s32.totalorder %v4693_v18, 29  ;;  %v2569_v59 = vld [vmem:[%s5147_s10 + $0x30] sm:$0x1] }
 0x102   : > { %4236 = vmatmul.mubr.msk.f32.gmra.mxu0 %vm1161_vm2, %v2569_v59  ;;  %v2850_v61 = vld [vmem:[%s4551_s6 + $0x30] sm:$0xff] }
 0x103   : > { %v1633_v6 = vpop.xlane.xlu0 %1632  ;;  %4241 = vmatpush3.msra.mxu0 %v2850_v61  ;;  %4254 = vmatprep.mubr.msk.f32.mxu0 %vm4476_vm10, %v5955_v3 }
 0x104   : > { %v1635_v8 = vsel %vm1634_vm1, %v1633_v6, %v1629_v60  ;;  %v1639_v9 = vpop.xlane.xlu1 %1638  ;;  %vm1840_vm1 = vcmp.eq.s32.totalorder %v4693_v18, 30  ;;  %4242 = vmatprep.subr.mxu0 %v5955_v3 }
 0x105   : > { %v1641_v40 = vsel %vm1640_vm3, %v1639_v9, %v1635_v8  ;;  %vm1846_vm3 = vcmp.eq.s32.totalorder %v4693_v18, 31  ;;  %v2849_v8 = vld [vmem:[%s4551_s6 + $0x28] sm:$0xff] }
 0x106   : > { %4243 = vmatpush3.msra.mxu0 %v2849_v8 }
 0x107   : > { %v1645_v14 = vpop.xlane.xlu0 %1644  ;;  %4244 = vmatprep.subr.mxu0 %v5955_v3 }
 0x108   : > { %v1647_v2 = vsel %vm1646_vm4, %v1645_v14, %v1641_v40  ;;  %v1651_v41 = vpop.xlane.xlu1 %1650  ;;  %vm1852_vm4 = vcmp.eq.s32.totalorder %v4693_v18, 32  ;;  %4245 = vmatpush3.msra.mxu0 %v2848_v15  ;;  %v3980_v15 = vld [vmem:[%s4631_s4] ss:$0 sm:$0xff] }
 0x109   : > { %v1653_v39 = vsel %vm1652_vm5, %v1651_v41, %v1647_v2  ;;  %vm1858_vm5 = vcmp.eq.s32.totalorder %v4693_v18, 33  ;;  %4246 = vmatprep.subr.mxu0 %v5955_v3 }
 0x10a   : > { %4247 = vmatpush3.msra.mxu0 %v2847_v16  ;;  %v2076_v16 = vld [vmem:[%s4581_s20 + $0x20] sm:$0xff] }
 0x10b   : > { %v1657_v12 = vpop.xlane.xlu0 %1656  ;;  %4248 = vmatprep.subr.mxu0 %v5955_v3 }
 0x10c   : > { %v1659_v23 = vsel %vm1658_vm6, %v1657_v12, %v1653_v39  ;;  %v1724_v58 = vpop.xlane.xlu1 %1723  ;;  %vm1864_vm6 = vcmp.eq.s32.totalorder %v4693_v18, 34 }
 0x10d   : > { %v1726_v62 = vsel %vm1725_vm7, %v1724_v58, %v1659_v23  ;;  %vm1931_vm7 = vcmp.eq.s32.totalorder %v4693_v18, 35 }
 0x10f   : > { %v1730_v11 = vpop.xlane.xlu0 %1729 }
 0x110   : > { %v1732_v52 = vsel %vm1731_vm8, %v1730_v11, %v1726_v62  ;;  %v1736_v53 = vpop.xlane.xlu1 %1735  ;;  %vm1937_vm8 = vcmp.eq.s32.totalorder %v4693_v18, 36  ;;  %v2846_v11 = vld [vmem:[%s4551_s6 + $0x10] sm:$0xff] }
 0x111   : > { %v1738_v63 = vsel %vm1737_vm9, %v1736_v53, %v1732_v52  ;;  %vm1943_vm9 = vcmp.eq.s32.totalorder %v4693_v18, 37  ;;  %4249 = vmatpush3.msra.mxu0 %v2846_v11  ;;  %v2075_v11 = vld [vmem:[%s4581_s20 + $0x18] sm:$0xff] }
 0x112   : > { %4250 = vmatprep.subr.mxu0 %v5955_v3 }
 0x113   : > { %v1742_v0 = vpop.xlane.xlu0 %1741 }
 0x114   : > { %v1744_v1 = vsel %vm1743_vm11, %v1742_v0, %v1738_v63  ;;  %v1748_v17 = vpop.xlane.xlu1 %1747  ;;  %vm1949_vm11 = vcmp.eq.s32.totalorder %v4693_v18, 38  ;;  %v2845_v63 = vld [vmem:[%s4551_s6 + $0x8] sm:$0xff] }
 0x115   : > { %v1750_v21 = vsel %vm1749_vm14, %v1748_v17, %v1744_v1  ;;  %vm1955_vm14 = vcmp.eq.s32.totalorder %v4693_v18, 39  ;;  %4251 = vmatpush3.msra.mxu0 %v2845_v63  ;;  %v5214_v17 = vld [vmem:[%s4526_s8] ss:$0 sm:$0xff]  ;;  %v2074_v63 = vld [vmem:[%s4581_s20 + $0x10] sm:$0xff] }
 0x116   : > { %4252 = vmatprep.subr.mxu0 %v5955_v3 }
 0x117   : > { %v1754_v22 = vpop.xlane.xlu0 %1753 }
 0x118   : > { %v1756_v24 = vsel %vm1755_vm15, %v1754_v22, %v1750_v21  ;;  %v1760_v25 = vpop.xlane.xlu1 %1759  ;;  %vm1961_vm15 = vcmp.eq.s32.totalorder %v4693_v18, 40 }
 0x119   : > { %v1762_v27 = vsel %vm1761_vm0, %v1760_v25, %v1756_v24  ;;  %vm1967_vm0 = vcmp.eq.s32.totalorder %v4693_v18, 41  ;;  %v2844_v24 = vld [vmem:[%s4551_s6] sm:$0xff] }
 0x11a   : > { %4253 = vmatpush3.msra.mxu0 %v2844_v24  ;;  %v2073_v24 = vld [vmem:[%s4581_s20 + $0x8] sm:$0xff] }
 0x11b   : > { %v1827_v28 = vpop.xlane.xlu0 %1826  ;;  %4255 = vmatmul.mubr.msk.f32.vlgmr.msra.gmra.mxu0 %vm1161_vm2, %v2837_v26  ;;  %4275 = vmatprep.subr.mxu0 %v5955_v3 }
 0x11c   : > { %v1829_v29 = vsel %vm1828_vm12, %v1827_v28, %v1762_v27  ;;  %v1833_v31 = vpop.xlane.xlu1 %1832  ;;  %vm2034_vm12 = vcmp.eq.s32.totalorder %v4693_v18, 42  ;;  %4257 = vmatprep.mubr.msk.f32.mxu0 %vm4476_vm10, %v5955_v3 }
 0x11d   : > { %v1835_v33 = vsel %vm1834_vm13, %v1833_v31, %v1829_v29  ;;  %vm2040_vm13 = vcmp.eq.s32.totalorder %v4693_v18, 43 }
 0x11f   : > { %v1839_v34 = vpop.xlane.xlu0 %1838 }
 0x120   : > { %v1841_v35 = vsel %vm1840_vm1, %v1839_v34, %v1835_v33  ;;  %v1845_v37 = vpop.xlane.xlu1 %1844  ;;  %vm2046_vm1 = vcmp.eq.s32.totalorder %v4693_v18, 44 }
 0x121   : > { %v1847_v43 = vsel %vm1846_vm3, %v1845_v37, %v1841_v35  ;;  %vm2052_vm3 = vcmp.eq.s32.totalorder %v4693_v18, 45 }
 0x123   : > { %v1851_v44 = vpop.xlane.xlu0 %1850 }
 0x124   : > { %v1853_v42 = vsel %vm1852_vm4, %v1851_v44, %v1847_v43  ;;  %v1857_v46 = vpop.xlane.xlu1 %1856  ;;  %vm2058_vm4 = vcmp.eq.s32.totalorder %v4693_v18, 46  ;;  %v2838_v43 = vld [vmem:[%s5221_s11 + $0x8] sm:$0xff] }
 0x125   : > { %v1859_v50 = vsel %vm1858_vm5, %v1857_v46, %v1853_v42  ;;  %vm2064_vm5 = vcmp.eq.s32.totalorder %v4693_v18, 47  ;;  %4258 = vmatmul.mubr.msk.f32.gmra.mxu0 %vm1161_vm2, %v2838_v43 }
 0x126   : > { %4260 = vmatprep.mubr.msk.f32.mxu0 %vm4476_vm10, %v5955_v3 }
 0x127   : > { %v1863_v48 = vpop.xlane.xlu0 %1862 }
 0x128   : > { %v1865_v56 = vsel %vm1864_vm6, %v1863_v48, %v1859_v50  ;;  %v1930_v57 = vpop.xlane.xlu1 %1929  ;;  %vm2070_vm6 = vcmp.eq.s32.totalorder %v4693_v18, 48  ;;  %v2079_v50 = vld [vmem:[%s4581_s20 + $0x38] sm:$0xff] }
 0x129   : > { %v1932_v4 = vsel %vm1931_vm7, %v1930_v57, %v1865_v56  ;;  %vm2087_vm7 = vcmask 400384  }
 0x12b   : > { %v1936_v60 = vpop.xlane.xlu0 %1935 }
 0x12c   : > { %v1938_v6 = vsel %vm1937_vm8, %v1936_v60, %v1932_v4  ;;  %v1942_v7 = vpop.xlane.xlu1 %1941  ;;  %v2078_v4 = vld [vmem:[%s4581_s20 + $0x30] sm:$0xff]  ;;  %vm1301_vm8 = vcmask 516096  }
 0x12d   : > { %v1944_v9 = vsel %vm1943_vm9, %v1942_v7, %v1938_v6  ;;  %v2839_v60 = vld [vmem:[%s5221_s11 + $0x10] sm:$0xff]  ;;  %vm2240_vm9 = vcmask 393216  }
 0x12e   : > { %4261 = vmatmul.mubr.msk.f32.gmra.mxu0 %vm1161_vm2, %v2839_v60  ;;  %v2316_v60 = vld [vmem:[%s4536_s19 + $0x18] sm:$0xff] }
 0x12f   : > { %v1948_v13 = vpop.xlane.xlu0 %1947  ;;  %4263 = vmatprep.mubr.msk.f32.mxu0 %vm4476_vm10, %v5955_v3 }
 0x130   : > { %v1950_v40 = vsel %vm1949_vm11, %v1948_v13, %v1944_v9  ;;  %v1954_v14 = vpop.xlane.xlu1 %1953  ;;  %v2077_v13 = vld [vmem:[%s4581_s20 + $0x28] sm:$0xff]  ;;  %vm2252_vm11 = vcmp.eq.s32.totalorder %v4660_v5, %v4693_v18 }
 0x131   : > { %v1956_v2 = vsel %vm1955_vm14, %v1954_v14, %v1950_v40  ;;  %vm2255_vm14 = vcmp.eq.s32.totalorder %v4840_v20, %v4693_v18 }
 0x133   : > { %v1960_v41 = vpop.xlane.xlu0 %1959 }
 0x134   : > { %v1962_v39 = vsel %vm1961_vm15, %v1960_v41, %v1956_v2  ;;  %v1966_v45 = vpop.xlane.xlu1 %1965 }
 0x135   : > { %v1249_v12 = vpop.f32.mrf.mxu0  ;;  %v1968_v58 = vsel %vm1967_vm0, %v1966_v45, %v1962_v39  ;;  %v2840_v39 = vld [vmem:[%s5221_s11 + $0x18] sm:$0xff] }
 0x136   : > { %v5231_v28 = vadd.f32 %v5214_v17, %v1249_v12  ;;  %4264 = vmatmul.mubr.msk.f32.gmra.mxu0 %vm1161_vm2, %v2840_v39  ;;  %v2300_v39 = vld [vmem:[%s4531_s14 + $0x10] sm:$0xff] }
 0x137   : > { %v1251_v23 = vpop.f32.mrf.mxu0  ;;  %v2033_v62 = vpop.xlane.xlu0 %2032  ;;  %4266 = vmatprep.mubr.msk.f32.mxu0 %vm4476_vm10, %v5955_v3 }
 0x138   : > { %v2035_v51 = vsel %vm2034_vm12, %v2033_v62, %v1968_v58  ;;  %v2039_v53 = vpop.xlane.xlu1 %2038  ;;  %5999 = vst [vmem:[#allocation22_spill] sm:$0xff] %v5231_v28  ;;  %v5954_v42 = vmax.f32 %v5231_v28, 0.0 }
 0x139   : > { %v1254_v52 = vpop.f32.mrf.mxu0  ;;  %v2041_v0 = vsel %vm2040_vm13, %v2039_v53, %v2035_v51 }
 0x13a   : > { %v5224_v25 = vadd.f32 %v5214_v17, %v1254_v52  ;;  %v1290_v7 = vsel %vm1161_vm2, %v5954_v42, 0.0 }
 0x13b   : > { %v1256_v55 = vpop.f32.mrf.mxu0  ;;  %v2045_v1 = vpop.xlane.xlu0 %2044 }
 0x13c   : > { %v2047_v19 = vsel %vm2046_vm1, %v2045_v1, %v2041_v0  ;;  %v2051_v22 = vpop.xlane.xlu1 %2050  ;;  %5998 = vst [vmem:[#allocation21_spill] sm:$0xff] %v5224_v25  ;;  %v5953_v37 = vmax.f32 %v5224_v25, 0.0  ;;  %v2841_v0 = vld [vmem:[%s5221_s11 + $0x20] sm:$0xff]  ;;  %vm3695_vm1 = vcmask 518144  }
 0x13d   : > { %v1259_v21 = vpop.f32.mrf.mxu0  ;;  %v2053_v31 = vsel %vm2052_vm3, %v2051_v22, %v2047_v19  ;;  %4267 = vmatmul.mubr.msk.f32.gmra.mxu0 %vm1161_vm2, %v2841_v0  ;;  %v2719_v0 = vld [vmem:[%s6006_s15 + $0x68] sm:$0xff] }
 0x13e   : > { %v5234_v29 = vadd.f32 %v5214_v17, %v1259_v21  ;;  %v1291_v57 = vsel %vm1161_vm2, %v5953_v37, 0.0  ;;  %4269 = vmatprep.mubr.msk.f32.mxu0 %vm4476_vm10, %v5955_v3 }
 0x13f   : > { %v1261_v27 = vpop.f32.mrf.mxu0  ;;  %v2057_v32 = vpop.xlane.xlu0 %2056  ;;  %v1292_v40 = vadd.f32 %v1291_v57, %v1290_v7  ;;  %v2319_v57 = vld [vmem:[%s4536_s19 + $0x30] sm:$0xff]  ;;  %v2314_v7 = vld [vmem:[%s4536_s19 + $0x8] sm:$0xff] }
 0x140   : > { %6000 = vst [vmem:[#allocation23_spill] sm:$0xff] %v5234_v29  ;;  %v2059_v33 = vsel %vm2058_vm4, %v2057_v32, %v2053_v31  ;;  %v2063_v35 = vpop.xlane.xlu1 %2062  ;;  %v5952_v46 = vmax.f32 %v5234_v29, 0.0  ;;  %v2072_v27 = vld [vmem:[%s4581_s20] sm:$0xff]  ;;  %v2842_v31 = vld [vmem:[%s5221_s11 + $0x28] sm:$0xff] }
 0x141   : > { %v1264_v34 = vpop.f32.mrf.mxu0  ;;  %v2065_v47 = vsel %vm2064_vm5, %v2063_v35, %v2059_v33  ;;  %4270 = vmatmul.mubr.msk.f32.gmra.mxu0 %vm1161_vm2, %v2842_v31  ;;  %v2843_v35 = vld [vmem:[%s5221_s11 + $0x30] sm:$0x1]  ;;  %v5453_v31 = vld [vmem:[%s5404_s18 + $0x20] sm:$0xff] }
 0x142   : > { %v5241_v38 = vadd.f32 %v5214_v17, %v1264_v34  ;;  %v1293_v8 = vsel %vm1161_vm2, %v5952_v46, 0.0  ;;  %4272 = vmatprep.mubr.msk.f32.mxu0 %vm4476_vm10, %v5955_v3 }
 0x143   : > { %v1266_v44 = vpop.f32.mrf.mxu0  ;;  %v2069_v49 = vpop.xlane.xlu0 %2068  ;;  %v1294_v45 = vadd.f32 %v1293_v8, %v1292_v40  ;;  %v2313_v8 = vld [vmem:[%s4536_s19] sm:$0xff]  ;;  %v2304_v40 = vld [vmem:[%s4531_s14 + $0x30] sm:$0xff] }
 0x144   : > { %6001 = vst [vmem:[#allocation24_spill] sm:$0xff] %v5241_v38  ;;  %v2071_v48 = vsel %vm2070_vm6, %v2069_v49, %v2065_v47  ;;  %v5951_v59 = vmax.f32 %v5241_v38, 0.0 }
 0x145   : > { %v1269_v56 = vpop.f32.mrf.mxu0  ;;  %4106 = vmatmul.mubr.msk.f32.vlgmr.msra.gmra.mxu1 %vm2087_vm7, %v2071_v48  ;;  %4273 = vmatmul.mubr.msk.f32.gmra.mxu0 %vm1161_vm2, %v2843_v35  ;;  %v5464_v35 = vld [vmem:[%s5404_s18 + $0x28] sm:$0xff] }
 0x146   : > { %v1270_v61 = vadd.f32 %v5214_v17, %v1269_v56  ;;  %4109 = vmatpush3.msra.mxu1 %v2079_v50  ;;  %4124 = vmatprep.mubr.msk.f32.mxu1 %vm4476_vm10, %v5955_v3  ;;  %v1295_v2 = vsel %vm1161_vm2, %v5951_v59, 0.0  ;;  %v2320_v56 = vld [vmem:[%s4536_s19 + $0x38] sm:$0xff] }
 0x147   : > { %v1271_v6 = vpop.f32.mrf.mxu0  ;;  %4110 = vmatprep.subr.mxu1 %v5955_v3  ;;  %v1296_v51 = vadd.f32 %v1295_v2, %v1294_v45  ;;  %4291 = vmatprep.mubr.msk.f32.mxu0 %vm4476_vm10, %v5955_v3  ;;  %v2302_v2 = vld [vmem:[%s4531_s14 + $0x20] sm:$0xff]  ;;  %v5373_v45 = vld [vmem:[%s5335_s16 + $0x18] sm:$0xff] }
 0x148   : > { %v1287_v9 = vmax.f32 %v1270_v61, 0.0  ;;  %4111 = vmatpush3.msra.mxu1 %v2078_v4  ;;  %v2318_v61 = vld [vmem:[%s4536_s19 + $0x28] sm:$0xff]  ;;  %v2317_v4 = vld [vmem:[%s4536_s19 + $0x20] sm:$0xff]  ;;  %v2315_v6 = vld [vmem:[%s4536_s19 + $0x10] sm:$0xff] }
 0x149   : > { %v1274_v14 = vpop.f32.mrf.mxu0  ;;  %4112 = vmatprep.subr.mxu1 %v5955_v3 }
 0x14a   : > { %v1275_v41 = vadd.f32 %v5214_v17, %v1274_v14  ;;  %v5280_v12 = vmul.f32 %v3980_v15, %v1287_v9  ;;  %4113 = vmatpush3.msra.mxu1 %v2077_v13  ;;  %v1297_v58 = vsel %vm1161_vm2, %v1287_v9, 0.0  ;;  %v5340_v9 = vld [vmem:[%s5335_s16] sm:$0xff]  ;;  %v2305_v13 = vld [vmem:[%s4531_s14 + $0x38] sm:$0xff]  ;;  %v5351_v14 = vld [vmem:[%s5335_s16 + $0x8] sm:$0xff] }
 0x14b   : > { %v1276_v23 = vpop.f32.mrf.mxu0  ;;  %4114 = vmatprep.subr.mxu1 %v5955_v3  ;;  %v1298_v19 = vadd.f32 %v1297_v58, %v1296_v51  ;;  %v2298_v58 = vld [vmem:[%s4531_s14] sm:$0xff]  ;;  %v5400_v51 = vld [vmem:[%s5335_s16 + $0x30] sm:$0x1] }
 0x14c   : > { %6002 = vst [vmem:[#allocation25_spill] sm:$0xff] %v5280_v12  ;;  %v1288_v62 = vmax.f32 %v1275_v41, 0.0  ;;  %4115 = vmatpush3.msra.mxu1 %v2076_v16  ;;  %v5362_v41 = vld [vmem:[%s5335_s16 + $0x10] sm:$0xff]  ;;  %v2301_v16 = vld [vmem:[%s4531_s14 + $0x18] sm:$0xff]  ;;  %v2299_v23 = vld [vmem:[%s4531_s14 + $0x8] sm:$0xff] }
 0x14d   : > { %v1279_v52 = vpop.f32.mrf.mxu0  ;;  %4116 = vmatprep.subr.mxu1 %v5955_v3 }
 0x14e   : > { %v1299_v53 = vsel %vm1161_vm2, %v1288_v62, 0.0  ;;  %v1280_v55 = vadd.f32 %v5214_v17, %v1279_v52  ;;  %v5293_v1 = vmul.f32 %v3980_v15, %v1288_v62  ;;  %4117 = vmatpush3.msra.mxu1 %v2075_v11  ;;  %v5384_v62 = vld [vmem:[%s5335_s16 + $0x20] sm:$0xff]  ;;  %v5393_v11 = vld [vmem:[%s5335_s16 + $0x28] sm:$0xff] }
 0x14f   : > { %v1281_v21 = vpop.f32.mrf.mxu0  ;;  %4118 = vmatprep.subr.mxu1 %v5955_v3  ;;  %v1300_v26 = vadd.f32 %v1299_v53, %v1298_v19  ;;  %v5411_v52 = vld [vmem:[%s5404_s18] sm:$0xff]  ;;  %v2721_v53 = vld [vmem:[%s6006_s15 + $0x78] sm:$0xff] }
 0x150   : > { %6003 = vst [vmem:[#allocation26_spill] sm:$0xff] %v5293_v1  ;;  %v1289_v22 = vmax.f32 %v1280_v55, 0.0  ;;  %4119 = vmatpush3.msra.mxu1 %v2074_v63  ;;  %v2720_v55 = vld [vmem:[%s6006_s15 + $0x70] sm:$0xff]  ;;  %v5420_v63 = vld [vmem:[%s5404_s18 + $0x8] sm:$0xff]  ;;  %v2718_v19 = vld [vmem:[%s6006_s15 + $0x60] sm:$0xff] }
 0x151   : > { %4120 = vmatprep.subr.mxu1 %v5955_v3  ;;  %v5431_v21 = vld [vmem:[%s5404_s18 + $0x10] sm:$0xff] }
 0x152   : > { %v1302_v17 = vsel %vm1301_vm8, %v1289_v22, 0.0  ;;  %v5304_v32 = vmul.f32 %v3980_v15, %v1289_v22  ;;  %4121 = vmatpush3.msra.mxu1 %v2073_v24  ;;  %v2303_v15 = vld [vmem:[%s4531_s14 + $0x28] sm:$0xff]  ;;  %v2717_v22 = vld [vmem:[%s6006_s15 + $0x58] sm:$0xff]  ;;  %v2716_v24 = vld [vmem:[%s6006_s15 + $0x50] sm:$0xff] }
 0x153   : > { %v1303_v33 = vadd.f32 %v1302_v17, %v1300_v26  ;;  %4122 = vmatprep.subr.mxu1 %v5955_v3  ;;  %v5442_v26 = vld [vmem:[%s5404_s18 + $0x18] sm:$0xff]  ;;  %v2715_v17 = vld [vmem:[%s6006_s15 + $0x48] sm:$0xff] }
 0x154   : > { %6004 = vst [vmem:[#allocation27_spill] sm:$0xff] %v5304_v32  ;;  %4123 = vmatpush3.msra.mxu1 %v2072_v27  ;;  %v2714_v27 = vld [vmem:[%s6006_s15 + $0x40] sm:$0xff] }
 0x155   : > { %v1304_v34 = vrot.slane %v1303_v33, 4  ;;  %4127 = vmatprep.subr.mxu1 %v5955_v3 }
 0x157   : > { %v1305_v43 = vadd.f32 %v1304_v34, %v1303_v33  ;;  %v2713_v33 = vld [vmem:[%s6006_s15 + $0x38] sm:$0xff]  ;;  %v2712_v34 = vld [vmem:[%s6006_s15 + $0x30] sm:$0xff] }
 0x159   : > { %v1306_v44 = vrot.slane %v1305_v43, 2 }
 0x15b   : > { %v1307_v47 = vadd.f32 %v1306_v44, %v1305_v43  ;;  %v2711_v43 = vld [vmem:[%s6006_s15 + $0x28] sm:$0xff]  ;;  %v2710_v44 = vld [vmem:[%s6006_s15 + $0x20] sm:$0xff] }
 0x15d   : > { %v1308_v49 = vrot.slane %v1307_v47, 1 }
 0x15f   : > { %v1309_v50 = vadd.f32 %v1308_v49, %v1307_v47  ;;  %v5475_v47 = vld [vmem:[%s5404_s18 + $0x30] sm:$0x1]  ;;  %v2709_v49 = vld [vmem:[%s6006_s15 + $0x18] sm:$0xff] }
 0x161   : > { %v5315_v48 = vmul.f32 0.020408163, %v1309_v50  ;;  %v2708_v50 = vld [vmem:[%s6006_s15 + $0x10] sm:$0xff] }
 0x163   : > { %6005 = vst [vmem:[#allocation28_spill] sm:$0xff] %v5315_v48  ;;  %4125 = vmatmul.mubr.msk.f32.vlgmr.msra.gmra.mxu1 %vm1161_vm2, %v5315_v48 }
 0x164   : > { %4128 = vmatpush3.msra.mxu1 %v2320_v56  ;;  %4143 = vmatprep.mubr.msk.f32.mxu1 %vm4476_vm10, %v5955_v3  ;;  %v4406_v56 = vld [vmem:[%s4690_s7 + $0x8] sm:$0xff] }
 0x165   : > { %4129 = vmatprep.subr.mxu1 %v5955_v3 }
 0x166   : > { %4130 = vmatpush3.msra.mxu1 %v2319_v57  ;;  %v2707_v57 = vld [vmem:[%s6006_s15 + $0x8] sm:$0xff] }
 0x167   : > { %4131 = vmatprep.subr.mxu1 %v5955_v3 }
 0x168   : > { %4132 = vmatpush3.msra.mxu1 %v2318_v61  ;;  %v2706_v61 = vld [vmem:[%s6006_s15] sm:$0xff] }
 0x169   : > { %4133 = vmatprep.subr.mxu1 %v5955_v3 }
 0x16a   : > { %4134 = vmatpush3.msra.mxu1 %v2317_v4  ;;  %v2729_v4 = vld [vmem:[%s6006_s15 + $0xb8] sm:$0xff] }
 0x16b   : > { %4135 = vmatprep.subr.mxu1 %v5955_v3 }
 0x16c   : > { %4136 = vmatpush3.msra.mxu1 %v2316_v60  ;;  %v2728_v60 = vld [vmem:[%s6006_s15 + $0xb0] sm:$0xff] }
 0x16d   : > { %4137 = vmatprep.subr.mxu1 %v5955_v3 }
 0x16e   : > { %4138 = vmatpush3.msra.mxu1 %v2315_v6  ;;  %v2727_v6 = vld [vmem:[%s6006_s15 + $0xa8] sm:$0xff] }
 0x16f   : > { %4139 = vmatprep.subr.mxu1 %v5955_v3 }
 0x170   : > { %4140 = vmatpush3.msra.mxu1 %v2314_v7  ;;  %v2726_v7 = vld [vmem:[%s6006_s15 + $0xa0] sm:$0xff] }
 0x171   : > { %4141 = vmatprep.subr.mxu1 %v5955_v3 }
 0x172   : > { %4142 = vmatpush3.msra.mxu1 %v2313_v8  ;;  %v2725_v8 = vld [vmem:[%s6006_s15 + $0x98] sm:$0xff] }
 0x173   : > { %4144 = vmatmul.mubr.msk.f32.vlgmr.msra.gmra.mxu1 %vm1161_vm2, %v5340_v9  ;;  %4164 = vmatprep.subr.mxu1 %v5955_v3 }
 0x174   : > { %4165 = vmatpush3.msra.mxu1 %v2305_v13  ;;  %4146 = vmatprep.mubr.msk.f32.mxu1 %vm4476_vm10, %v5955_v3  ;;  %v2724_v13 = vld [vmem:[%s6006_s15 + $0x90] sm:$0xff] }
 0x175   : > { %4166 = vmatprep.subr.mxu1 %v5955_v3 }
 0x176   : > { %4167 = vmatpush3.msra.mxu1 %v2304_v40  ;;  %v2723_v40 = vld [vmem:[%s6006_s15 + $0x88] sm:$0xff] }
 0x177   : > { %4147 = vmatmul.mubr.msk.f32.gmra.mxu1 %vm1161_vm2, %v5351_v14  ;;  %4168 = vmatprep.subr.mxu1 %v5955_v3 }
 0x178   : > { %4149 = vmatprep.mubr.msk.f32.mxu1 %vm4476_vm10, %v5955_v3  ;;  %4169 = vmatpush3.msra.mxu1 %v2303_v15  ;;  %v2722_v15 = vld [vmem:[%s6006_s15 + $0x80] sm:$0xff] }
 0x179   : > { %4170 = vmatprep.subr.mxu1 %v5955_v3 }
 0x17a   : > { %4171 = vmatpush3.msra.mxu1 %v2302_v2  ;;  %v4407_v2 = vld [vmem:[%s4690_s7] sm:$0xff] }
 0x17b   : > { %4150 = vmatmul.mubr.msk.f32.gmra.mxu1 %vm1161_vm2, %v5362_v41  ;;  %4172 = vmatprep.subr.mxu1 %v5955_v3 }
 0x17c   : > { %4152 = vmatprep.mubr.msk.f32.mxu1 %vm4476_vm10, %v5955_v3  ;;  %4173 = vmatpush3.msra.mxu1 %v2301_v16  ;;  %v4408_v16 = vld [vmem:[%s4690_s7 + $0x18] sm:$0xff] }
 0x17d   : > { %4174 = vmatprep.subr.mxu1 %v5955_v3 }
 0x17e   : > { %4175 = vmatpush3.msra.mxu1 %v2300_v39  ;;  %v4409_v39 = vld [vmem:[%s4690_s7 + $0x10] sm:$0xff] }
 0x17f   : > { %4153 = vmatmul.mubr.msk.f32.gmra.mxu1 %vm1161_vm2, %v5373_v45  ;;  %4176 = vmatprep.subr.mxu1 %v5955_v3 }
 0x180   : > { %4155 = vmatprep.mubr.msk.f32.mxu1 %vm4476_vm10, %v5955_v3  ;;  %4177 = vmatpush3.msra.mxu1 %v2299_v23  ;;  %v4410_v23 = vld [vmem:[%s4690_s7 + $0x28] sm:$0xff] }
 0x181   : > { %4178 = vmatprep.subr.mxu1 %v5955_v3 }
 0x182   : > { %4179 = vmatpush3.msra.mxu1 %v2298_v58  ;;  %v4411_v58 = vld [vmem:[%s4690_s7 + $0x20] sm:$0xff] }
 0x183   : > { %4156 = vmatmul.mubr.msk.f32.gmra.mxu1 %vm1161_vm2, %v5384_v62  ;;  %2730 = vmatprep.subr.mxu1 %v5955_v3 }
 0x184   : > { %4158 = vmatprep.mubr.msk.f32.mxu1 %vm4476_vm10, %v5955_v3 }
 0x187   : > { %4159 = vmatmul.mubr.msk.f32.gmra.mxu1 %vm1161_vm2, %v5393_v11 }
 0x188   : > { %4161 = vmatprep.mubr.msk.f32.mxu1 %vm4476_vm10, %v5955_v3 }
 0x18b   : > { %4162 = vmatmul.mubr.msk.f32.gmra.mxu1 %vm1161_vm2, %v5400_v51 }
 0x18c   : > { %4180 = vmatprep.mubr.msk.f32.mxu1 %vm4476_vm10, %v5955_v3 }
 0x18f   : > { %4181 = vmatmul.mubr.msk.f32.vlgmr.msra.gmra.mxu1 %vm1161_vm2, %v5411_v52 }
 0x190   : > { %2731 = vmatpush1.msra.mxu1 %v2721_v53  ;;  %4183 = vmatprep.mubr.msk.f32.mxu1 %vm4476_vm10, %v5955_v3  ;;  %v4412_v53 = vld [vmem:[%s4690_s7 + $0x38] sm:$0xff] }
 0x191   : > { %2732 = vmatprep.subr.mxu1 %v5955_v3 }
 0x192   : > { %2733 = vmatpush1.msra.mxu1 %v2720_v55  ;;  %v4413_v55 = vld [vmem:[%s4690_s7 + $0x30] sm:$0xff] }
 0x193   : > { %2734 = vmatprep.subr.mxu1 %v5955_v3  ;;  %4184 = vmatmul.mubr.msk.f32.gmra.mxu1 %vm1161_vm2, %v5420_v63 }
 0x194   : > { %2735 = vmatpush1.msra.mxu1 %v2719_v0  ;;  %4186 = vmatprep.mubr.msk.f32.mxu1 %vm4476_vm10, %v5955_v3  ;;  %v4414_v0 = vld [vmem:[%s4690_s7 + $0x48] sm:$0xff] }
 0x195   : > { %2736 = vmatprep.subr.mxu1 %v5955_v3 }
 0x196   : > { %2737 = vmatpush1.msra.mxu1 %v2718_v19  ;;  %v4415_v19 = vld [vmem:[%s4690_s7 + $0x40] sm:$0xff] }
 0x197   : > { %2738 = vmatprep.subr.mxu1 %v5955_v3  ;;  %4187 = vmatmul.mubr.msk.f32.gmra.mxu1 %vm1161_vm2, %v5431_v21 }
 0x198   : > { %2739 = vmatpush1.msra.mxu1 %v2717_v22  ;;  %4189 = vmatprep.mubr.msk.f32.mxu1 %vm4476_vm10, %v5955_v3  ;;  %v4416_v22 = vld [vmem:[%s4690_s7 + $0x58] sm:$0xff] }
 0x199   : > { %2740 = vmatprep.subr.mxu1 %v5955_v3 }
 0x19a   : > { %2741 = vmatpush1.msra.mxu1 %v2716_v24  ;;  %v5522_v24 = vpop.f32.mrf.mxu0 }
 0x19b   : > { %2742 = vmatprep.subr.mxu1 %v5955_v3  ;;  %4190 = vmatmul.mubr.msk.f32.gmra.mxu1 %vm1161_vm2, %v5442_v26 }
 0x19c   : > { %2743 = vmatpush1.msra.mxu1 %v2715_v17  ;;  %4192 = vmatprep.mubr.msk.f32.mxu1 %vm4476_vm10, %v5955_v3  ;;  %v4417_v17 = vld [vmem:[%s4690_s7 + $0x50] sm:$0xff] }
 0x19d   : > { %2744 = vmatprep.subr.mxu1 %v5955_v3 }
 0x19e   : > { %2745 = vmatpush1.msra.mxu1 %v2714_v27  ;;  %v4418_v27 = vld [vmem:[%s4690_s7 + $0x68] sm:$0x1] }
 0x19f   : > { %2746 = vmatprep.subr.mxu1 %v5955_v3  ;;  %4193 = vmatmul.mubr.msk.f32.gmra.mxu1 %vm1161_vm2, %v5453_v31 }
 0x1a0   : > { %2747 = vmatpush1.msra.mxu1 %v2713_v33  ;;  %4195 = vmatprep.mubr.msk.f32.mxu1 %vm4476_vm10, %v5955_v3  ;;  %v4219_v33 = vpop.f32.mrf.mxu0 }
 0x1a1   : > { %2748 = vmatprep.subr.mxu1 %v5955_v3 }
 0x1a2   : > { %2749 = vmatpush1.msra.mxu1 %v2712_v34 }
 0x1a3   : > { %2750 = vmatprep.subr.mxu1 %v5955_v3  ;;  %4196 = vmatmul.mubr.msk.f32.gmra.mxu1 %vm1161_vm2, %v5464_v35 }
 0x1a4   : > { %2751 = vmatpush1.msra.mxu1 %v2711_v43  ;;  %4198 = vmatprep.mubr.msk.f32.mxu1 %vm4476_vm10, %v5955_v3  ;;  %v4419_v43 = vld [vmem:[%s4690_s7 + $0x60] sm:$0x1]  ;;  %s6013_s7 = sld [smem:[#allocation3_spill]] }
 0x1a5   : > { %2752 = vmatprep.subr.mxu1 %v5955_v3 }
 0x1a6   : > { %2753 = vmatpush1.msra.mxu1 %v2710_v44 }
 0x1a7   : > { %2754 = vmatprep.subr.mxu1 %v5955_v3  ;;  %4199 = vmatmul.mubr.msk.f32.gmra.mxu1 %vm1161_vm2, %v5475_v47 }
 0x1a8   : > { %2755 = vmatpush1.msra.mxu1 %v2709_v49  ;;  %3942 = vmatprep.mubr.msk.f32.mxu1 %vm1161_vm2, %v4406_v56 }
 0x1a9   : > { %2756 = vmatprep.subr.mxu1 %v5955_v3 }
 0x1aa   : > { %2757 = vmatpush1.msra.mxu1 %v2708_v50  ;;  %v5527_v34 = vpop.f32.mrf.mxu0  ;;  %s5652_s16 = scalar_lea.vmem %s6013_s7, %s4350_s2  ;;  %s6014_s2 = sld [smem:[#allocation12_spill]] }
 0x1ab   : > { %2758 = vmatprep.subr.mxu1 %v5955_v3 }
 0x1ac   : > { %2759 = vmatpush1.msra.mxu1 %v2707_v57  ;;  %v4222_v44 = vpop.f32.mrf.mxu0 }
 0x1ad   : > { %2760 = vmatprep.subr.mxu1 %v5955_v3 }
 0x1ae   : > { %2761 = vmatpush1.msra.mxu1 %v2706_v61  ;;  %v5530_v49 = vpop.f32.mrf.mxu0 }
 0x1af   : > { %2778 = vmatprep.subr.mxu1 %v5955_v3 }
 0x1b0   : > { %2779 = vmatpush2.msra.mxu1 %v2729_v4  ;;  %v4225_v50 = vpop.f32.mrf.mxu0 }
 0x1b1   : > { %2780 = vmatprep.subr.mxu1 %v5955_v3 }
 0x1b2   : > { %2781 = vmatpush2.msra.mxu1 %v2728_v60  ;;  %v5532_v56 = vpop.f32.mrf.mxu0 }
 0x1b3   : > { %2782 = vmatprep.subr.mxu1 %v5955_v3 }
 0x1b4   : > { %2783 = vmatpush2.msra.mxu1 %v2727_v6  ;;  %v4228_v57 = vpop.f32.mrf.mxu0 }
 0x1b5   : > { %2784 = vmatprep.subr.mxu1 %v5955_v3 }
 0x1b6   : > { %2785 = vmatpush2.msra.mxu1 %v2726_v7 }
 0x1b7   : > { %2786 = vmatprep.subr.mxu1 %v5955_v3 }
 0x1b8   : > { %2787 = vmatpush2.msra.mxu1 %v2725_v8 }
 0x1b9   : > { %2788 = vmatprep.subr.mxu1 %v5955_v3  ;;  %v5534_v61 = vpop.f32.mrf.mxu0 }
 0x1ba   : > { %2789 = vmatpush2.msra.mxu1 %v2724_v13 }
 0x1bb   : > { %2790 = vmatprep.subr.mxu1 %v5955_v3  ;;  %v4231_v4 = vpop.f32.mrf.mxu0 }
 0x1bc   : > { %2791 = vmatpush2.msra.mxu1 %v2723_v40 }
 0x1bd   : > { %2792 = vmatprep.subr.mxu1 %v5955_v3  ;;  %v5536_v60 = vpop.f32.mrf.mxu0 }
 0x1be   : > { %2793 = vmatpush2.msra.mxu1 %v2722_v15 }
 0x1bf   : > { %2795 = vmatmul.mubr.f32.vlgmr.msra.gmra.mxu1 %v4407_v2  ;;  %3277 = vmatprep.subr.mxu1 %v5955_v3  ;;  %v4234_v6 = vpop.f32.mrf.mxu0 }
 0x1c0   : > { %3943 = vmatprep.mubr.msk.f32.mxu1 %vm1161_vm2, %v4408_v16 }
 0x1c2   : > { %v5538_v7 = vpop.f32.mrf.mxu0 }
 0x1c3   : > { %2800 = vmatmul.mubr.f32.gmra.mxu1 %v4409_v39 }
 0x1c4   : > { %3944 = vmatprep.mubr.msk.f32.mxu1 %vm1161_vm2, %v4410_v23  ;;  %v4237_v8 = vpop.f32.mrf.mxu0 }
 0x1c7   : > { %2805 = vmatmul.mubr.f32.gmra.mxu1 %v4411_v58 }
 0x1c8   : > { %3945 = vmatprep.mubr.msk.f32.mxu1 %vm1161_vm2, %v4412_v53 }
 0x1cb   : > { %2810 = vmatmul.mubr.f32.gmra.mxu1 %v4413_v55 }
 0x1cc   : > { %3946 = vmatprep.mubr.msk.f32.mxu1 %vm1161_vm2, %v4414_v0 }
 0x1cf   : > { %2815 = vmatmul.mubr.f32.gmra.mxu1 %v4415_v19 }
 0x1d0   : > { %3947 = vmatprep.mubr.msk.f32.mxu1 %vm1161_vm2, %v4416_v22 }
 0x1d3   : > { %2820 = vmatmul.mubr.f32.gmra.mxu1 %v4417_v17 }
 0x1d4   : > { %3948 = vmatprep.mubr.msk.f32.mxu1 %vm1161_vm2, %v4418_v27 }
 0x1d7   : > { %2825 = vmatmul.mubr.f32.gmra.mxu1 %v4419_v43 }
 0x1db   : > { %v2939_v13 = vpop.f32.mrf.mxu0 }
 0x1dd   : > { %v4256_v40 = vpop.f32.mrf.mxu0 }
 0x1e5   : > { %v2944_v15 = vpop.f32.mrf.mxu0 }
 0x1e7   : > { %v4259_v2 = vpop.f32.mrf.mxu0 }
 0x1ee   : > { %v5540_v23 = vpop.f32.mrf.mxu0 }
 0x1f0   : > { %v4262_v58 = vpop.f32.mrf.mxu0 }
 0x1f6   : > { %v5542_v53 = vpop.f32.mrf.mxu0 }
 0x1f8   : > { %v4265_v55 = vpop.f32.mrf.mxu0 }
 0x1fd   : > { %v5544_v0 = vpop.f32.mrf.mxu0 }
 0x1ff   : > { %v4268_v19 = vpop.f32.mrf.mxu0 }
 0x201   : > { %v5546_v22 = vpop.f32.mrf.mxu0 }
 0x203   : > { %v4271_v17 = vpop.f32.mrf.mxu0 }
 0x205   : > { %v2161_v16 = vpop.f32.mrf.mxu1  ;;  %v5548_v27 = vpop.f32.mrf.mxu0 }
 0x207   : > { %v4107_v39 = vpop.f32.mrf.mxu1  ;;  %v4274_v33 = vpop.f32.mrf.mxu0 }
 0x223   : > { %v2234_v43 = vpop.f32.mrf.mxu1 }
 0x224   : > { %v5550_v44 = vadd.f32 %v2234_v43, %v2161_v16 }
 0x225   : > { %v4126_v50 = vpop.f32.mrf.mxu1 }
 0x233   : > { %v2408_v57 = vpop.f32.mrf.mxu1 }
 0x235   : > { %v4145_v4 = vpop.f32.mrf.mxu1 }
 0x237   : > { %v2413_v6 = vpop.f32.mrf.mxu1 }
 0x239   : > { %v4148_v8 = vpop.f32.mrf.mxu1 }
 0x23b   : > { %v2418_v40 = vpop.f32.mrf.mxu1 }
 0x23d   : > { %v4151_v2 = vpop.f32.mrf.mxu1 }
 0x23f   : > { %v2423_v39 = vpop.f32.mrf.mxu1 }
 0x241   : > { %v4154_v58 = vpop.f32.mrf.mxu1 }
 0x243   : > { %v2428_v55 = vpop.f32.mrf.mxu1 }
 0x245   : > { %v4157_v19 = vpop.f32.mrf.mxu1 }
 0x247   : > { %v2433_v59 = vpop.f32.mrf.mxu1 }
 0x249   : > { %v4160_v46 = vpop.f32.mrf.mxu1 }
 0x24b   : > { %v2438_v17 = vpop.f32.mrf.mxu1 }
 0x24d   : > { %v4163_v37 = vpop.f32.mrf.mxu1 }
 0x24f   : > { %v2529_v42 = vpop.f32.mrf.mxu1 }
 0x250   : > { %v2530_v19 = vadd.f32 %v2529_v42, %v2408_v57 }
 0x251   : > { %v4182_v33 = vpop.f32.mrf.mxu1 }
 0x252   : > { %v2699_v46 = vadd.f32 %v5522_v24, %v2530_v19  ;;  %v3956_v33 = vld [vmem:[%s6007_s23] ss:$0 sm:$0xff]  ;;  %s6015_s23 = sld [smem:[#allocation8_spill]] }
 0x253   : > { %v2534_v3 = vpop.f32.mrf.mxu1 }
 0x254   : > { %v2535_v38 = vadd.f32 %v2534_v3, %v2413_v6 }
 0x255   : > { %v4185_v16 = vpop.f32.mrf.mxu1 }
 0x256   : > { %v2700_v16 = vadd.f32 %v5527_v34, %v2535_v38 }
 0x257   : > { %v2539_v43 = vpop.f32.mrf.mxu1 }
 0x258   : > { %v2540_v28 = vadd.f32 %v2539_v43, %v2418_v40 }
 0x259   : > { %v4188_v50 = vpop.f32.mrf.mxu1 }
 0x25b   : > { %v2544_v4 = vpop.f32.mrf.mxu1 }
 0x25c   : > { %v2545_v30 = vadd.f32 %v2544_v4, %v2423_v39 }
 0x25d   : > { %v4191_v48 = vpop.f32.mrf.mxu1 }
 0x25e   : > { %v2702_v19 = vadd.f32 %v5532_v56, %v2545_v30 }
 0x25f   : > { %v2549_v8 = vpop.f32.mrf.mxu1 }
 0x261   : > { %v4194_v32 = vpop.f32.mrf.mxu1 }
 0x263   : > { %v2554_v2 = vpop.f32.mrf.mxu1 }
 0x264   : > { %v2555_v40 = vadd.f32 %v2554_v2, %v2433_v59 }
 0x265   : > { %v4197_v1 = vpop.f32.mrf.mxu1 }
 0x266   : > { %v2701_v1 = vadd.f32 %v5530_v49, %v2540_v28 }
 0x267   : > { %v2559_v58 = vpop.f32.mrf.mxu1 }
 0x269   : > { %v4200_v12 = vpop.f32.mrf.mxu1 }
 0x27f   : > { %v2796_v37 = vpop.f32.mrf.mxu1 }
 0x280   : > { %v2830_v29 = vadd.f32 %v2796_v37, %v2699_v46  ;;  %v2704_v37 = vadd.f32 %v5536_v60, %v2555_v40  ;;  %v3021_v40 = vld [vmem:[%s6008_s22] sm:$0x1] }
 0x281   : > { %v2798_v25 = vpop.f32.mrf.mxu1 }
 0x282   : > { %v2973_v50 = vadd.f32 %v2939_v13, %v2830_v29  ;;  %v2550_v25 = vadd.f32 %v2549_v8, %v2428_v55 }
 0x283   : > { %v2801_v36 = vpop.f32.mrf.mxu1 }
 0x284   : > { %v2987_v48 = vadd.f32 %v3956_v33, %v2973_v50  ;;  %v2831_v54 = vadd.f32 %v2801_v36, %v2700_v16  ;;  %v2560_v16 = vadd.f32 %v2559_v58, %v2438_v17 }
 0x285   : > { %v2803_v32 = vpop.f32.mrf.mxu1 }
 0x286   : > { %v2974_v12 = vadd.f32 %v2944_v15, %v2831_v54  ;;  %v2994_v57 = vmax.f32 %v2987_v48, 0.0  ;;  %v2703_v15 = vadd.f32 %v5534_v61, %v2550_v25 }
 0x287   : > { %v2806_v42 = vpop.f32.mrf.mxu1 }
 0x288   : > { %v2988_v24 = vadd.f32 %v3956_v33, %v2974_v12  ;;  %v2832_v3 = vadd.f32 %v2806_v42, %v2701_v1  ;;  %v3001_v34 = vsel %vm1161_vm2, %v2994_v57, 0.0  ;;  %v2705_v12 = vadd.f32 %v5538_v7, %v2560_v16  ;;  %v3118_v16 = vld [vmem:[%s6010_s0 + $0x78] sm:$0xff] }
 0x289   : > { %v2808_v6 = vpop.f32.mrf.mxu1  ;;  %3278 = vmatpush1.msra.mxu1 %v3118_v16  ;;  %v3099_v16 = vld [vmem:[%s5652_s16 + $0x50] sm:$0xff] }
 0x28a   : > { %v2995_v46 = vmax.f32 %v2988_v24, 0.0  ;;  %v2975_v38 = vadd.f32 %v5540_v23, %v2832_v3 }
 0x28b   : > { %v2811_v29 = vpop.f32.mrf.mxu1 }
 0x28c   : > { %v3002_v36 = vsel %vm1161_vm2, %v2995_v46, 0.0  ;;  %v2989_v13 = vadd.f32 %v3956_v33, %v2975_v38  ;;  %v2833_v28 = vadd.f32 %v2811_v29, %v2702_v19 }
 0x28d   : > { %v3003_v49 = vadd.f32 %v3002_v36, %v3001_v34  ;;  %v2813_v54 = vpop.f32.mrf.mxu1 }
 0x28e   : > { %v2996_v39 = vmax.f32 %v2989_v13, 0.0  ;;  %v2976_v43 = vadd.f32 %v5542_v53, %v2833_v28 }
 0x28f   : > { %v2816_v30 = vpop.f32.mrf.mxu1 }
 0x290   : > { %v3004_v56 = vsel %vm1161_vm2, %v2996_v39, 0.0  ;;  %v2990_v55 = vadd.f32 %v3956_v33, %v2976_v43  ;;  %v2834_v23 = vadd.f32 %v2816_v30, %v2703_v15  ;;  %v3028_v15 = vld [vmem:[%s6008_s22 + $0x1] sm:$0x1]  ;;  %v3035_v43 = vld [vmem:[%s6008_s22 + $0x2] sm:$0x1] }
 0x291   : > { %v3005_v4 = vadd.f32 %v3004_v56, %v3003_v49  ;;  %v2818_v8 = vpop.f32.mrf.mxu1 }
 0x292   : > { %v2997_v50 = vmax.f32 %v2990_v55, 0.0  ;;  %v2977_v48 = vadd.f32 %v5544_v0, %v2834_v23 }
 0x293   : > { %v2821_v32 = vpop.f32.mrf.mxu1 }
 0x294   : > { %v3006_v61 = vsel %vm1161_vm2, %v2997_v50, 0.0  ;;  %v2991_v59 = vadd.f32 %v3956_v33, %v2977_v48  ;;  %v2835_v2 = vadd.f32 %v2821_v32, %v2704_v37  ;;  %v3117_v50 = vld [vmem:[%s6010_s0 + $0x70] sm:$0xff]  ;;  %v3116_v48 = vld [vmem:[%s6010_s0 + $0x68] sm:$0xff]  ;;  %v3115_v32 = vld [vmem:[%s6010_s0 + $0x60] sm:$0xff] }
 0x295   : > { %v3007_v1 = vadd.f32 %v3006_v61, %v3005_v4  ;;  %v2823_v53 = vpop.f32.mrf.mxu1  ;;  %v3114_v61 = vld [vmem:[%s6010_s0 + $0x58] sm:$0xff] }
 0x296   : > { %v2998_v42 = vmax.f32 %v2991_v59, 0.0  ;;  %v2978_v57 = vadd.f32 %v5546_v22, %v2835_v2  ;;  %v3113_v59 = vld [vmem:[%s6010_s0 + $0x50] sm:$0xff]  ;;  %v3112_v2 = vld [vmem:[%s6010_s0 + $0x48] sm:$0xff]  ;;  %v3134_v53 = vld [vmem:[%s6012_s25 + $0x38] sm:$0xff] }
 0x297   : > { %v2826_v24 = vpop.f32.mrf.mxu1  ;;  %4276 = vmatpush3.msra.mxu0 %v3134_v53 }
 0x298   : > { %v3008_v3 = vsel %vm1161_vm2, %v2998_v42, 0.0  ;;  %v2992_v60 = vadd.f32 %v3956_v33, %v2978_v57  ;;  %v2836_v17 = vadd.f32 %v2826_v24, %v2705_v12  ;;  %v3110_v12 = vld [vmem:[%s6010_s0 + $0x38] sm:$0xff]  ;;  %v3133_v42 = vld [vmem:[%s6012_s25 + $0x30] sm:$0xff]  ;;  %v3132_v57 = vld [vmem:[%s6012_s25 + $0x28] sm:$0xff] }
 0x299   : > { %v3009_v58 = vadd.f32 %v3008_v3, %v3007_v1  ;;  %v2828_v0 = vpop.f32.mrf.mxu1  ;;  %v3111_v1 = vld [vmem:[%s6010_s0 + $0x40] sm:$0xff]  ;;  %v3109_v24 = vld [vmem:[%s6010_s0 + $0x30] sm:$0xff]  ;;  %v3108_v3 = vld [vmem:[%s6010_s0 + $0x28] sm:$0xff] }
 0x29a   : > { %v2999_v6 = vmax.f32 %v2992_v60, 0.0  ;;  %v2979_v19 = vadd.f32 %v5548_v27, %v2836_v17  ;;  %v2238_v27 = vld [vmem:[%s6009_s26] sm:$0x1]  ;;  %v3106_v17 = vld [vmem:[%s6010_s0 + $0x18] sm:$0xff]  ;;  %v3104_v0 = vld [vmem:[%s6010_s0 + $0x8] sm:$0xff] }
 0x29b   : > { %v5583_v23 = vadd.f32 %v2238_v27, %v5550_v44  ;;  %v6011_v44 = vmov 0.0   ;;  %v3107_v60 = vld [vmem:[%s6010_s0 + $0x20] sm:$0xff]  ;;  %v3092_v27 = vld [vmem:[%s5652_s16 + $0x18] sm:$0xff] }
 0x29c   : > { %v3010_v25 = vsel %vm1161_vm2, %v2999_v6, 0.0  ;;  %v2993_v7 = vadd.f32 %v3956_v33, %v2979_v19  ;;  %3279 = vmatprep.subr.mxu1 %v6011_v44  ;;  %4277 = vmatprep.subr.mxu0 %v6011_v44  ;;  %v3103_v6 = vld [vmem:[%s6010_s0] sm:$0xff]  ;;  %v3126_v19 = vld [vmem:[%s6010_s0 + $0xb8] sm:$0xff] }
 0x29d   : > { %v3011_v46 = vadd.f32 %v3010_v25, %v3009_v58  ;;  %v2241_v8 = vsel %vm2240_vm9, %v5583_v23, -inf  ;;  %3280 = vmatpush1.msra.mxu1 %v3117_v50  ;;  %4278 = vmatpush3.msra.mxu0 %v3133_v42  ;;  %v3105_v58 = vld [vmem:[%s6010_s0 + $0x10] sm:$0xff]  ;;  %v3102_v50 = vld [vmem:[%s5652_s16 + $0x68] sm:$0x1] }
 0x29e   : > { %v3000_v38 = vmax.f32 %v2993_v7, 0.0  ;;  %3281 = vmatprep.subr.mxu1 %v6011_v44  ;;  %4279 = vmatprep.subr.mxu0 %v6011_v44  ;;  %v3125_v25 = vld [vmem:[%s6010_s0 + $0xb0] sm:$0xff]  ;;  %v3124_v7 = vld [vmem:[%s6010_s0 + $0xa8] sm:$0xff] }
 0x29f   : > { %3282 = vmatpush1.msra.mxu1 %v3116_v48  ;;  %4280 = vmatpush3.msra.mxu0 %v3132_v57  ;;  %v3101_v48 = vld [vmem:[%s5652_s16 + $0x60] sm:$0x1] }
 0x2a0   : > { %v3012_v22 = vsel %vm1301_vm8, %v3000_v38, 0.0  ;;  %3283 = vmatprep.subr.mxu1 %v6011_v44  ;;  %4281 = vmatprep.subr.mxu0 %v6011_v44  ;;  %v3123_v38 = vld [vmem:[%s6010_s0 + $0xa0] sm:$0xff] }
 0x2a1   : > { %v3013_v29 = vadd.f32 %v3012_v22, %v3011_v46  ;;  %3284 = vmatpush1.msra.mxu1 %v3115_v32  ;;  %v3131_v46 = vld [vmem:[%s6012_s25 + $0x20] sm:$0xff]  ;;  %v3130_v22 = vld [vmem:[%s6012_s25 + $0x18] sm:$0xff] }
 0x2a2   : > { %3285 = vmatprep.subr.mxu1 %v6011_v44  ;;  %4282 = vmatpush3.msra.mxu0 %v3131_v46  ;;  %v3033_v32 = vld [vmem:[%s6014_s2 + $0x1] sm:$0x1] }
 0x2a3   : > { %v3014_v34 = vrot.slane %v3013_v29, 4  ;;  %3286 = vmatpush1.msra.mxu1 %v3114_v61  ;;  %4283 = vmatprep.subr.mxu0 %v6011_v44  ;;  %v3026_v61 = vld [vmem:[%s6014_s2] sm:$0x1] }
 0x2a4   : > { %3287 = vmatprep.subr.mxu1 %v6011_v44  ;;  %4284 = vmatpush3.msra.mxu0 %v3130_v22  ;;  %v4420_v46 = vld [vmem:[%s5147_s10] sm:$0xff] }
 0x2a5   : > { %v3015_v36 = vadd.f32 %v3014_v34, %v3013_v29  ;;  %3288 = vmatpush1.msra.mxu1 %v3113_v59  ;;  %v3122_v29 = vld [vmem:[%s6010_s0 + $0x98] sm:$0xff]  ;;  %4285 = vmatprep.subr.mxu0 %v6011_v44  ;;  %v3129_v34 = vld [vmem:[%s6012_s25 + $0x10] sm:$0xff] }
 0x2a6   : > { %3289 = vmatprep.subr.mxu1 %v6011_v44  ;;  %4286 = vmatpush3.msra.mxu0 %v3129_v34  ;;  %v4421_v34 = vld [vmem:[%s5147_s10 + $0x8] sm:$0xff] }
 0x2a7   : > { %v3016_v13 = vrot.slane %v3015_v36, 2  ;;  %3290 = vmatpush1.msra.mxu1 %v3112_v2  ;;  %4287 = vmatprep.subr.mxu0 %v6011_v44 }
 0x2a8   : > { %3291 = vmatprep.subr.mxu1 %v6011_v44 }
 0x2a9   : > { %v3017_v28 = vadd.f32 %v3016_v13, %v3015_v36  ;;  %3292 = vmatpush1.msra.mxu1 %v3111_v1  ;;  %v3121_v36 = vld [vmem:[%s6010_s0 + $0x90] sm:$0xff]  ;;  %v3128_v13 = vld [vmem:[%s6012_s25 + $0x8] sm:$0xff] }
 0x2aa   : > { %3293 = vmatprep.subr.mxu1 %v6011_v44  ;;  %4288 = vmatpush3.msra.mxu0 %v3128_v13 }
 0x2ab   : > { %v3018_v49 = vrot.slane %v3017_v28, 1  ;;  %3294 = vmatpush1.msra.mxu1 %v3110_v12  ;;  %4289 = vmatprep.subr.mxu0 %v6011_v44  ;;  %v3040_v12 = vld [vmem:[%s6014_s2 + $0x2] sm:$0x1] }
 0x2ac   : > { %3295 = vmatprep.subr.mxu1 %v6011_v44 }
 0x2ad   : > { %v3019_v54 = vadd.f32 %v3018_v49, %v3017_v28  ;;  %3296 = vmatpush1.msra.mxu1 %v3109_v24  ;;  %v3120_v28 = vld [vmem:[%s6010_s0 + $0x88] sm:$0xff]  ;;  %v3127_v49 = vld [vmem:[%s6012_s25] sm:$0xff] }
 0x2ae   : > { %3297 = vmatprep.subr.mxu1 %v6011_v44  ;;  %4290 = vmatpush3.msra.mxu0 %v3127_v49 }
 0x2af   : > { %v5574_v39 = vmul.f32 0.020408163, %v3019_v54  ;;  %3298 = vmatpush1.msra.mxu1 %v3108_v3  ;;  %v3119_v54 = vld [vmem:[%s6010_s0 + $0x80] sm:$0xff]  ;;  %4312 = vmatprep.subr.mxu0 %v6011_v44 }
 0x2b0   : > { %3299 = vmatprep.subr.mxu1 %v6011_v44 }
 0x2b1   : > { %v3029_v33 = vmul.f32 %v3028_v15, %v5574_v39  ;;  %v3022_v30 = vmul.f32 %v3021_v40, %v5574_v39  ;;  %v3036_v4 = vmul.f32 %v3035_v43, %v5574_v39  ;;  %3300 = vmatpush1.msra.mxu1 %v3107_v60  ;;  %v3090_v15 = vld [vmem:[%s5652_s16 + $0x8] sm:$0xff]  ;;  %v3089_v40 = vld [vmem:[%s5652_s16] sm:$0xff]  ;;  %v3091_v43 = vld [vmem:[%s5652_s16 + $0x10] sm:$0xff] }
 0x2b2   : > { %3301 = vmatprep.subr.mxu1 %v6011_v44  ;;  %3964 = vmatprep.mubr.msk.f32.mxu1 %vm1161_vm2, %v3090_v15 }
 0x2b3   : > { %v3030_v56 = vsel %vm1301_vm8, %v3029_v33, 0.0  ;;  %v3023_v55 = vsel %vm1301_vm8, %v3022_v30, 0.0  ;;  %v3037_v37 = vsel %vm1301_vm8, %v3036_v4, 0.0  ;;  %3302 = vmatpush1.msra.mxu1 %v3106_v17  ;;  %v3094_v33 = vld [vmem:[%s5652_s16 + $0x28] sm:$0xff]  ;;  %v3093_v30 = vld [vmem:[%s5652_s16 + $0x20] sm:$0xff] }
 0x2b4   : > { %3031 = vadd.xlane.f32.xlu0 %v3030_v56  ;;  %3024 = vadd.xlane.f32.xlu1 %v3023_v55  ;;  %v3096_v56 = vld [vmem:[%s5652_s16 + $0x38] sm:$0xff]  ;;  %v3095_v55 = vld [vmem:[%s5652_s16 + $0x30] sm:$0xff]  ;;  %v3098_v4 = vld [vmem:[%s5652_s16 + $0x48] sm:$0xff] }
 0x2b5   : > { %3303 = vmatprep.subr.mxu1 %v6011_v44 }
 0x2b6   : > { %3304 = vmatpush1.msra.mxu1 %v3105_v58 }
 0x2b7   : > { %3305 = vmatprep.subr.mxu1 %v6011_v44 }
 0x2b8   : > { %2242 = vmax.xlane.f32.xlu0 %v2241_v8  ;;  %3038 = vadd.xlane.f32.xlu1 %v3037_v37  ;;  %v3097_v8 = vld [vmem:[%s5652_s16 + $0x40] sm:$0xff]  ;;  %v3100_v37 = vld [vmem:[%s5652_s16 + $0x58] sm:$0xff]  ;;  %s6031_s16 = sld [smem:[#allocation13_spill]] }
 0x2b9   : > { %3306 = vmatpush1.msra.mxu1 %v3104_v0 }
 0x2ba   : > { %3307 = vmatprep.subr.mxu1 %v6011_v44 }
 0x2bb   : > { %3308 = vmatpush1.msra.mxu1 %v3103_v6 }
 0x2bc   : > { %3325 = vmatprep.subr.mxu1 %v6011_v44 }
 0x2bd   : > { %3326 = vmatpush2.msra.mxu1 %v3126_v19 }
 0x2be   : > { %3327 = vmatprep.subr.mxu1 %v6011_v44 }
 0x2bf   : > { %3328 = vmatpush2.msra.mxu1 %v3125_v25 }
 0x2c0   : > { %3329 = vmatprep.subr.mxu1 %v6011_v44 }
 0x2c1   : > { %3330 = vmatpush2.msra.mxu1 %v3124_v7 }
 0x2c2   : > { %3331 = vmatprep.subr.mxu1 %v6011_v44 }
 0x2c3   : > { %3332 = vmatpush2.msra.mxu1 %v3123_v38 }
 0x2c4   : > { %3333 = vmatprep.subr.mxu1 %v6011_v44 }
 0x2c5   : > { %3334 = vmatpush2.msra.mxu1 %v3122_v29 }
 0x2c6   : > { %3335 = vmatprep.subr.mxu1 %v6011_v44 }
 0x2c7   : > { %3336 = vmatpush2.msra.mxu1 %v3121_v36  ;;  %v3384_v36 = vld [vmem:[%s6015_s23 + $0x38] sm:$0xff] }
 0x2c8   : > { %3337 = vmatprep.subr.mxu1 %v6011_v44 }
 0x2c9   : > { %3338 = vmatpush2.msra.mxu1 %v3120_v28 }
 0x2ca   : > { %3339 = vmatprep.subr.mxu1 %v6011_v44 }
 0x2cb   : > { %3340 = vmatpush2.msra.mxu1 %v3119_v54  ;;  %v4422_v54 = vld [vmem:[%s5147_s10 + $0x10] sm:$0xff] }
 0x2cc   : > { %3342 = vmatmul.mubr.f32.vlgmr.msra.gmra.mxu1 %v3089_v40  ;;  %v3382_v40 = vld [vmem:[%s6015_s23 + $0x28] sm:$0xff] }
 0x2cd   : > { %3965 = vmatprep.mubr.msk.f32.mxu1 %vm1161_vm2, %v3092_v27 }
 0x2d0   : > { %3347 = vmatmul.mubr.f32.gmra.mxu1 %v3091_v43  ;;  %v3381_v43 = vld [vmem:[%s6015_s23 + $0x20] sm:$0xff] }
 0x2d1   : > { %3966 = vmatprep.mubr.msk.f32.mxu1 %vm1161_vm2, %v3094_v33 }
 0x2d4   : > { %3352 = vmatmul.mubr.f32.gmra.mxu1 %v3093_v30  ;;  %v4423_v30 = vld [vmem:[%s5147_s10 + $0x18] sm:$0xff] }
 0x2d5   : > { %3967 = vmatprep.mubr.msk.f32.mxu1 %vm1161_vm2, %v3096_v56 }
 0x2d8   : > { %3357 = vmatmul.mubr.f32.gmra.mxu1 %v3095_v55 }
 0x2d9   : > { %3968 = vmatprep.mubr.msk.f32.mxu1 %vm1161_vm2, %v3098_v4 }
 0x2dc   : > { %3362 = vmatmul.mubr.f32.gmra.mxu1 %v3097_v8  ;;  %v3379_v8 = vld [vmem:[%s6015_s23 + $0x10] sm:$0xff] }
 0x2dd   : > { %3969 = vmatprep.mubr.msk.f32.mxu1 %vm1161_vm2, %v3100_v37 }
 0x2e0   : > { %3367 = vmatmul.mubr.f32.gmra.mxu1 %v3099_v16  ;;  %v4424_v16 = vld [vmem:[%s5147_s10 + $0x20] sm:$0xff] }
 0x2e1   : > { %3970 = vmatprep.mubr.msk.f32.mxu1 %vm1161_vm2, %v3102_v50 }
 0x2e4   : > { %3372 = vmatmul.mubr.f32.gmra.mxu1 %v3101_v48  ;;  %v3378_v48 = vld [vmem:[%s6015_s23 + $0x8] sm:$0xff] }
 0x33d   : > { %v3032_v59 = vpop.xlane.xlu0 %3031  ;;  %v3025_v2 = vpop.xlane.xlu1 %3024 }
 0x33e   : > { %v3034_v1 = vadd.f32 %v3033_v32, %v3032_v59  ;;  %v3027_v53 = vadd.f32 %v3026_v61, %v3025_v2  ;;  %v3377_v61 = vld [vmem:[%s6015_s23] sm:$0xff]  ;;  %v4425_v2 = vld [vmem:[%s5147_s10 + $0x28] sm:$0xff] }
 0x340   : > { %4351 = vpush %v3027_v53 }
 0x341   : > { %4353 = vpush %v3034_v1  ;;  %v2243_v42 = vpop.xlane.xlu0 %2242  ;;  %v3039_v57 = vpop.xlane.xlu1 %3038 }
 0x342   : > { %v2244_v24 = vsub.f32 %v5583_v23, %v2243_v42  ;;  %v3041_v3 = vadd.f32 %v3040_v12, %v3039_v57  ;;  %v4426_v42 = vld [vmem:[%s5147_s10 + $0x30] sm:$0x1]  ;;  %s6027_s10 = sld [smem:[#allocation9_spill]] }
 0x344   : > { %v2245_v60 = vmul.f32 1.442695, %v2244_v24  ;;  %4355 = vpush %v3041_v3  ;;  %v4428_v3 = vld [vmem:[%s5221_s11 + $0x8] sm:$0xff] }
 0x346   : > { %4402 = vpow2.f32 %v2245_v60  ;;  %v4429_v60 = vld [vmem:[%s5221_s11 + $0x10] sm:$0xff] }
 0x353   : > { %v5682_v17 = vpop.eup %4402 }
 0x354   : > { %v2247_v58 = vsel %vm2240_vm9, %v5682_v17, 0.0 }
 0x355   : > { %2248 = vadd.xlane.f32.xlu1 %v2247_v58  ;;  %v4430_v58 = vld [vmem:[%s5221_s11 + $0x18] sm:$0xff] }
 0x371   : > { %s4352_s18 = spop %4351 }
 0x372   : > { %v5686_v0 = vstv %s4352_s18  ;;  %s4354_s26 = spop %4353  ;;  %s6033_s18 = sld [smem:[#allocation14_spill]] }
 0x373   : > { %v3046_v23 = vmul.f32 %v5686_v0, %v5411_v52  ;;  %v5690_v6 = vstv %s4354_s26  ;;  %v3047_v22 = vmul.f32 %v5686_v0, %v5420_v63  ;;  %v3048_v28 = vmul.f32 %v5686_v0, %v5431_v21  ;;  %v3383_v63 = vld [vmem:[%s6015_s23 + $0x30] sm:$0xff]  ;;  %s6034_s26 = sld [smem:[#allocation15_spill]] }
 0x374   : > { %v3057_v19 = vmul.f32 %v5690_v6, %v5340_v9  ;;  %v3058_v52 = vmul.f32 %v5690_v6, %v5351_v14  ;;  %v3059_v49 = vmul.f32 %v5690_v6, %v5362_v41  ;;  %v3049_v41 = vmul.f32 %v5686_v0, %v5442_v26  ;;  %v3380_v26 = vld [vmem:[%s6015_s23 + $0x18] sm:$0xff] }
 0x375   : > { %s4356_s7 = spop %4355  ;;  %v3060_v27 = vmul.f32 %v5690_v6, %v5373_v45  ;;  %v3050_v55 = vmul.f32 %v5686_v0, %v5453_v31  ;;  %v3061_v4 = vmul.f32 %v5690_v6, %v5384_v62  ;;  %v3051_v31 = vmul.f32 %v5686_v0, %v5464_v35 }
 0x376   : > { %v5694_v25 = vstv %s4356_s7  ;;  %v3064_v7 = vadd.f32 %v3057_v19, %v3046_v23  ;;  %v3065_v13 = vadd.f32 %v3058_v52, %v3047_v22  ;;  %v3066_v21 = vadd.f32 %v3059_v49, %v3048_v28  ;;  %v4432_v23 = vld [vmem:[%s5221_s11 + $0x28] sm:$0xff]  ;;  %s6036_s7 = sld [smem:[#allocation16_spill]] }
 0x377   : > { %v3075_v38 = vmul.f32 %v4420_v46, %v5694_v25  ;;  %v3076_v9 = vmul.f32 %v4421_v34, %v5694_v25  ;;  %v3077_v15 = vmul.f32 %v4422_v54, %v5694_v25  ;;  %v3078_v56 = vmul.f32 %v4423_v30, %v5694_v25  ;;  %v6017_v30 = vld [vmem:[#allocation20_spill] sm:$0xff] }
 0x378   : > { %v3067_v45 = vadd.f32 %v3060_v27, %v3049_v41  ;;  %v3079_v50 = vmul.f32 %v4424_v16, %v5694_v25  ;;  %v3068_v62 = vadd.f32 %v3061_v4, %v3050_v55  ;;  %v3062_v32 = vmul.f32 %v5690_v6, %v5393_v11 }
 0x379   : > { %v3082_v29 = vadd.f32 %v3075_v38, %v3064_v7  ;;  %v3083_v14 = vadd.f32 %v3076_v9, %v3065_v13  ;;  %v3084_v33 = vadd.f32 %v3077_v15, %v3066_v21  ;;  %v3080_v1 = vmul.f32 %v4425_v2, %v5694_v25  ;;  %v6021_v2 = vld [vmem:[#allocation21_spill] sm:$0xff] }
 0x37a   : > { %v3085_v37 = vadd.f32 %v3078_v56, %v3067_v45  ;;  %v3086_v59 = vadd.f32 %v3079_v50, %v3068_v62  ;;  %v3069_v35 = vadd.f32 %v3062_v32, %v3051_v31  ;;  %v3052_v11 = vmul.f32 %v5686_v0, %v5475_v47  ;;  %v4431_v0 = vld [vmem:[%s5221_s11 + $0x20] sm:$0xff]  ;;  %v6018_v56 = vld [vmem:[#allocation19_spill] sm:$0xff] }
 0x37b   : > { %4292 = vmatmul.mubr.msk.f32.vlgmr.msra.gmra.mxu0 %vm1161_vm2, %v3082_v29  ;;  %v3063_v53 = vmul.f32 %v5690_v6, %v5400_v51  ;;  %v3081_v57 = vmul.f32 %v4426_v42, %v5694_v25  ;;  %v4427_v51 = vld [vmem:[%s5221_s11] sm:$0xff]  ;;  %v4433_v6 = vld [vmem:[%s5221_s11 + $0x30] sm:$0x1]  ;;  %vm2257_vm0 = vcmp.eq.s32.totalorder %v6017_v30, %v4693_v18  ;;  %vm2256_vm12 = vcmp.eq.s32.totalorder %v6018_v56, %v4693_v18  ;;  %s6028_s11 = sld [smem:[#allocation17_spill]] }
 0x37c   : > { %4294 = vmatprep.mubr.msk.f32.mxu0 %vm4476_vm10, %v6011_v44  ;;  %4313 = vmatpush3.msra.mxu0 %v3384_v36  ;;  %v3087_v12 = vadd.f32 %v3080_v1, %v3069_v35  ;;  %v4434_v50 = vld [vmem:[%s4631_s4] ss:$0 sm:$0xff]  ;;  %v6022_v1 = vmax.f32 %v6021_v2, 0.0 }
 0x37d   : > { %4314 = vmatprep.subr.mxu0 %v6011_v44  ;;  %v3070_v24 = vadd.f32 %v3063_v53, %v3052_v11  ;;  %v6023_v53 = vld [vmem:[#allocation23_spill] sm:$0xff] }
 0x37e   : > { %4315 = vmatpush3.msra.mxu0 %v3383_v63  ;;  %v2261_v63 = vsub.s32 0, %v4660_v5  ;;  %v3583_v35 = vmul.f32 %v4434_v50, %v6022_v1 }
 0x37f   : > { %4295 = vmatmul.mubr.msk.f32.gmra.mxu0 %vm1161_vm2, %v3083_v14  ;;  %4316 = vmatprep.subr.mxu0 %v6011_v44  ;;  %v3088_v47 = vadd.f32 %v3081_v57, %v3070_v24  ;;  %v6025_v24 = vld [vmem:[#allocation24_spill] sm:$0xff] }
 0x380   : > { %4297 = vmatprep.mubr.msk.f32.mxu0 %vm4476_vm10, %v6011_v44  ;;  %4317 = vmatpush3.msra.mxu0 %v3382_v40  ;;  %v6016_v40 = vld [vmem:[#allocation18_spill] sm:$0xff]  ;;  %v3592_v11 = vsel %vm1161_vm2, %v3583_v35, 0.0 }
 0x381   : > { %4318 = vmatprep.subr.mxu0 %v6011_v44  ;;  %vm2254_vm15 = vcmp.eq.s32.totalorder %v6016_v40, %v4693_v18 }
 0x382   : > { %4319 = vmatpush3.msra.mxu0 %v3381_v43 }
 0x383   : > { %4298 = vmatmul.mubr.msk.f32.gmra.mxu0 %vm1161_vm2, %v3084_v33  ;;  %4320 = vmatprep.subr.mxu0 %v6011_v44 }
 0x384   : > { %4300 = vmatprep.mubr.msk.f32.mxu0 %vm4476_vm10, %v6011_v44  ;;  %4321 = vmatpush3.msra.mxu0 %v3380_v26  ;;  %v5839_v26 = vadd.s32 48, %v4660_v5 }
 0x385   : > { %4322 = vmatprep.subr.mxu0 %v6011_v44 }
 0x386   : > { %4323 = vmatpush3.msra.mxu0 %v3379_v8  ;;  %vm2258_vm13 = vcmp.eq.s32.totalorder %v5839_v26, %v4693_v18 }
 0x387   : > { %4301 = vmatmul.mubr.msk.f32.gmra.mxu0 %vm1161_vm2, %v3085_v37  ;;  %4324 = vmatprep.subr.mxu0 %v6011_v44 }
 0x388   : > { %4303 = vmatprep.mubr.msk.f32.mxu0 %vm4476_vm10, %v6011_v44  ;;  %4325 = vmatpush3.msra.mxu0 %v3378_v48  ;;  %v6019_v48 = vld [vmem:[#allocation22_spill] sm:$0xff] }
 0x389   : > { %4326 = vmatprep.subr.mxu0 %v6011_v44  ;;  %v6020_v62 = vmax.f32 %v6019_v48, 0.0 }
 0x38a   : > { %4327 = vmatpush3.msra.mxu0 %v3377_v61 }
 0x38b   : > { %4304 = vmatmul.mubr.msk.f32.gmra.mxu0 %vm1161_vm2, %v3086_v59  ;;  %v3582_v31 = vmul.f32 %v4434_v50, %v6020_v62 }
 0x38c   : > { %4306 = vmatprep.mubr.msk.f32.mxu0 %vm4476_vm10, %v6011_v44  ;;  %v5796_v19 = vpop.f32.mrf.mxu1 }
 0x38d   : > { %v3589_v61 = vsel %vm1161_vm2, %v3582_v31, 0.0 }
 0x38e   : > { %v3345_v25 = vpop.f32.mrf.mxu1 }
 0x38f   : > { %4307 = vmatmul.mubr.msk.f32.gmra.mxu0 %vm1161_vm2, %v3087_v12  ;;  %v6024_v12 = vmax.f32 %v6023_v53, 0.0 }
 0x390   : > { %4309 = vmatprep.mubr.msk.f32.mxu0 %vm4476_vm10, %v6011_v44  ;;  %v5798_v7 = vpop.f32.mrf.mxu1 }
 0x391   : > { %v3584_v42 = vmul.f32 %v4434_v50, %v6024_v12 }
 0x392   : > { %v3350_v46 = vpop.f32.mrf.mxu1 }
 0x393   : > { %4310 = vmatmul.mubr.msk.f32.gmra.mxu0 %vm1161_vm2, %v3088_v47  ;;  %v3595_v57 = vsel %vm1161_vm2, %v3584_v42, 0.0  ;;  %v6026_v47 = vmax.f32 %v6025_v24, 0.0 }
 0x394   : > { %4328 = vmatprep.mubr.msk.f32.mxu0 %vm4476_vm10, %v6011_v44  ;;  %v5800_v38 = vpop.f32.mrf.mxu1 }
 0x396   : > { %v3355_v22 = vpop.f32.mrf.mxu1 }
 0x397   : > { %4329 = vmatmul.mubr.msk.f32.vlgmr.msra.gmra.mxu0 %vm1161_vm2, %v4427_v51  ;;  %v3585_v51 = vmul.f32 %v4434_v50, %v6026_v47 }
 0x398   : > { %4331 = vmatprep.mubr.msk.f32.mxu0 %vm4476_vm10, %v6011_v44  ;;  %v5802_v52 = vpop.f32.mrf.mxu1 }
 0x39a   : > { %v3360_v29 = vpop.f32.mrf.mxu1 }
 0x39b   : > { %4332 = vmatmul.mubr.msk.f32.gmra.mxu0 %vm1161_vm2, %v4428_v3  ;;  %v3598_v3 = vsel %vm1161_vm2, %v3585_v51, 0.0 }
 0x39c   : > { %4334 = vmatprep.mubr.msk.f32.mxu0 %vm4476_vm10, %v6011_v44  ;;  %v5804_v34 = vpop.f32.mrf.mxu1 }
 0x39e   : > { %v3365_v9 = vpop.f32.mrf.mxu1 }
 0x39f   : > { %4335 = vmatmul.mubr.msk.f32.gmra.mxu0 %vm1161_vm2, %v4429_v60 }
 0x3a0   : > { %4337 = vmatprep.mubr.msk.f32.mxu0 %vm4476_vm10, %v6011_v44  ;;  %v5806_v36 = vpop.f32.mrf.mxu1 }
 0x3a3   : > { %4338 = vmatmul.mubr.msk.f32.gmra.mxu0 %vm1161_vm2, %v4430_v58 }
 0x3a4   : > { %4340 = vmatprep.mubr.msk.f32.mxu0 %vm4476_vm10, %v6011_v44 }
 0x3a7   : > { %4341 = vmatmul.mubr.msk.f32.gmra.mxu0 %vm1161_vm2, %v4431_v0 }
 0x3a8   : > { %4343 = vmatprep.mubr.msk.f32.mxu0 %vm4476_vm10, %v6011_v44 }
 0x3ab   : > { %4344 = vmatmul.mubr.msk.f32.gmra.mxu0 %vm1161_vm2, %v4432_v23 }
 0x3ac   : > { %4346 = vmatprep.mubr.msk.f32.mxu0 %vm4476_vm10, %v6011_v44  ;;  %v3370_v44 = vpop.f32.mrf.mxu1  ;;  %vm2253_vm10 = vcmp.eq.s32.totalorder %v4679_v10, %v4693_v18 }
 0x3ae   : > { %v5808_v13 = vpop.f32.mrf.mxu1 }
 0x3af   : > { %4347 = vmatmul.mubr.msk.f32.gmra.mxu0 %vm1161_vm2, %v4433_v6 }
 0x3b0   : > { %v3375_v28 = vpop.f32.mrf.mxu1 }
 0x3de   : > { %v2249_v49 = vpop.xlane.xlu1 %2248 }
 0x3df   : > { %4404 = vrcp.f32 %v2249_v49 }
 0x3ec   : > { %v4405_v14 = vpop.eup %4404 }
 0x3ed   : > { %v2251_v54 = vmul.f32 %v4405_v14, %v5682_v17 }
 0x3ef   : > { %v2262_v15 = vrot.slane %v2251_v54, %v2261_v63 }
 0x3f1   : > { %v2264_v21 = vsel %vm2253_vm10, %v2262_v15, 0.0  ;;  %v2263_v17 = vsel %vm2252_vm11, %v2262_v15, 0.0  ;;  %v2266_v43 = vsel %vm2255_vm14, %v2262_v15, 0.0  ;;  %v2265_v33 = vsel %vm2254_vm15, %v2262_v15, 0.0 }
 0x3f2   : > { %v2273_v41 = vsel %vm2087_vm7, %v2264_v21, 0.0  ;;  %v2270_v27 = vsel %vm2087_vm7, %v2263_v17, 0.0  ;;  %v2279_v45 = vsel %vm2087_vm7, %v2266_v43, 0.0  ;;  %v2276_v55 = vsel %vm2087_vm7, %v2265_v33, 0.0 }
 0x3f3   : > { %2274 = vadd.xlane.f32.xlu1 %v2273_v41  ;;  %2271 = vadd.xlane.f32.xlu0 %v2270_v27  ;;  %v2268_v4 = vsel %vm2257_vm0, %v2262_v15, 0.0  ;;  %v2267_v8 = vsel %vm2256_vm12, %v2262_v15, 0.0  ;;  %v2269_v32 = vsel %vm2258_vm13, %v2262_v15, 0.0 }
 0x3f4   : > { %v2285_v37 = vsel %vm2087_vm7, %v2268_v4, 0.0  ;;  %v2282_v16 = vsel %vm2087_vm7, %v2267_v8, 0.0  ;;  %v2288_v59 = vsel %vm2240_vm9, %v2269_v32, 0.0  ;;  %v3978_v4 = vld [vmem:[%s6027_s10] ss:$0 sm:$0xff]  ;;  %s1111_s10 = scalar_lea.vmem %s4639_s12, %s6038_s1 }
 0x3f7   : > { %2280 = vadd.xlane.f32.xlu1 %v2279_v45  ;;  %2277 = vadd.xlane.f32.xlu0 %v2276_v55 }
 0x3fb   : > { %2286 = vadd.xlane.f32.xlu1 %v2285_v37  ;;  %2283 = vadd.xlane.f32.xlu0 %v2282_v16 }
 0x3ff   : > { %3590 = vadd.xlane.f32.xlu1 %v3589_v61  ;;  %2289 = vadd.xlane.f32.xlu0 %v2288_v59 }
 0x403   : > { %3593 = vadd.xlane.f32.xlu0 %v3592_v11 }
 0x407   : > { %3596 = vadd.xlane.f32.xlu0 %v3595_v57 }
 0x40b   : > { %3599 = vadd.xlane.f32.xlu0 %v3598_v3 }
 0x43b   : > { %v3222_v60 = vpop.f32.mrf.mxu0 }
 0x43c   : > { %v3344_v41 = vadd.f32 %v5796_v19, %v3222_v60 }
 0x43d   : > { %v4293_v58 = vpop.f32.mrf.mxu0 }
 0x43f   : > { %v3227_v0 = vpop.f32.mrf.mxu0 }
 0x440   : > { %v3349_v21 = vadd.f32 %v5798_v7, %v3227_v0 }
 0x441   : > { %v4296_v23 = vpop.f32.mrf.mxu0 }
 0x443   : > { %v3232_v6 = vpop.f32.mrf.mxu0 }
 0x444   : > { %v3354_v27 = vadd.f32 %v5800_v38, %v3232_v6 }
 0x445   : > { %v4299_v25 = vpop.f32.mrf.mxu0 }
 0x447   : > { %v3237_v46 = vpop.f32.mrf.mxu0 }
 0x448   : > { %v3359_v37 = vadd.f32 %v5802_v52, %v3237_v46 }
 0x449   : > { %v4302_v22 = vpop.f32.mrf.mxu0 }
 0x44b   : > { %v3242_v29 = vpop.f32.mrf.mxu0 }
 0x44c   : > { %v3364_v7 = vadd.f32 %v5804_v34, %v3242_v29 }
 0x44d   : > { %v4305_v9 = vpop.f32.mrf.mxu0 }
 0x44f   : > { %v3247_v44 = vpop.f32.mrf.mxu0 }
 0x450   : > { %v3369_v11 = vadd.f32 %v5806_v36, %v3247_v44 }
 0x451   : > { %v4308_v28 = vpop.f32.mrf.mxu0 }
 0x453   : > { %v3252_v49 = vpop.f32.mrf.mxu0 }
 0x454   : > { %v3374_v60 = vadd.f32 %v5808_v13, %v3252_v49 }
 0x455   : > { %v4311_v63 = vpop.f32.mrf.mxu0 }
 0x457   : > { %v3451_v14 = vpop.f32.mrf.mxu0 }
 0x458   : > { %v3485_v45 = vadd.f32 %v3451_v14, %v3344_v41 }
 0x459   : > { %v4330_v54 = vpop.f32.mrf.mxu0 }
 0x45a   : > { %v3499_v48 = vadd.f32 %v3978_v4, %v3485_v45 }
 0x45b   : > { %v3456_v15 = vpop.f32.mrf.mxu0 }
 0x45c   : > { %v3486_v43 = vadd.f32 %v3456_v15, %v3349_v21  ;;  %v3506_v2 = vmax.f32 %v3499_v48, 0.0 }
 0x45d   : > { %v4333_v17 = vpop.f32.mrf.mxu0 }
 0x45e   : > { %v3500_v16 = vadd.f32 %v3978_v4, %v3486_v43  ;;  %v3513_v24 = vsel %vm1161_vm2, %v3506_v2, 0.0  ;;  %v3979_v17 = vld [vmem:[%s6028_s11] ss:$0 sm:$0xff]  ;;  %s3909_s11 = sshll.u32 %s6038_s1, 2 }
 0x45f   : > { %v3461_v33 = vpop.f32.mrf.mxu0 }
 0x460   : > { %v3487_v55 = vadd.f32 %v3461_v33, %v3354_v27  ;;  %v3507_v19 = vmax.f32 %v3500_v16, 0.0 }
 0x461   : > { %v4336_v8 = vpop.f32.mrf.mxu0 }
 0x462   : > { %v3501_v62 = vadd.f32 %v3978_v4, %v3487_v55  ;;  %v3514_v52 = vsel %vm1161_vm2, %v3507_v19, 0.0 }
 0x463   : > { %v3466_v50 = vpop.f32.mrf.mxu0  ;;  %v3515_v3 = vadd.f32 %v3514_v52, %v3513_v24 }
 0x464   : > { %v3488_v31 = vadd.f32 %v3466_v50, %v3359_v37  ;;  %v3508_v1 = vmax.f32 %v3501_v62, 0.0 }
 0x465   : > { %v4339_v32 = vpop.f32.mrf.mxu0 }
 0x466   : > { %v3502_v61 = vadd.f32 %v3978_v4, %v3488_v31  ;;  %v3516_v47 = vsel %vm1161_vm2, %v3508_v1, 0.0  ;;  %v6029_v32 = vld [vmem:[#allocation25_spill] sm:$0xff] }
 0x467   : > { %v3471_v59 = vpop.f32.mrf.mxu0  ;;  %v3517_v36 = vadd.f32 %v3516_v47, %v3515_v3 }
 0x468   : > { %v3489_v38 = vadd.f32 %v3471_v59, %v3364_v7  ;;  %v3509_v12 = vmax.f32 %v3502_v61, 0.0  ;;  %v3601_v7 = vsel %vm1161_vm2, %v6029_v32, 0.0 }
 0x469   : > { %v4342_v35 = vpop.f32.mrf.mxu0 }
 0x46a   : > { %v3503_v53 = vadd.f32 %v3978_v4, %v3489_v38  ;;  %v3518_v0 = vsel %vm1161_vm2, %v3509_v12, 0.0 }
 0x46b   : > { %v3476_v42 = vpop.f32.mrf.mxu0  ;;  %v3519_v22 = vadd.f32 %v3518_v0, %v3517_v36  ;;  %v3693_v36 = vld [vmem:[%s6031_s16] sm:$0x7]  ;;  %s1115_s16 = scalar_lea.vmem %s4644_s30, %s3909_s11 }
 0x46c   : > { %v3490_v57 = vadd.f32 %v3476_v42, %v3369_v11  ;;  %v3510_v34 = vmax.f32 %v3503_v53, 0.0 }
 0x46d   : > { %v4345_v51 = vpop.f32.mrf.mxu0 }
 0x46e   : > { %v3504_v58 = vadd.f32 %v3978_v4, %v3490_v57  ;;  %v3520_v46 = vsel %vm1161_vm2, %v3510_v34, 0.0  ;;  %v6032_v57 = vld [vmem:[#allocation27_spill] sm:$0xff] }
 0x46f   : > { %v3481_v23 = vpop.f32.mrf.mxu0  ;;  %v3521_v28 = vadd.f32 %v3520_v46, %v3519_v22  ;;  %v3607_v24 = vsel %vm1301_vm8, %v6032_v57, 0.0 }
 0x470   : > { %v3491_v6 = vadd.f32 %v3481_v23, %v3374_v60  ;;  %v3511_v25 = vmax.f32 %v3504_v58, 0.0  ;;  %v4477_v60 = vmov 0  }
 0x471   : > { %v4348_v29 = vpop.f32.mrf.mxu0  ;;  %4401 = vset.pattern.permute.xlu0 %v4477_v60  ;;  %4400 = vset.pattern.permute.xlu1 %v4477_v60 }
 0x472   : > { %v3505_v9 = vadd.f32 %v3978_v4, %v3491_v6  ;;  %v3522_v44 = vsel %vm1161_vm2, %v3511_v25, 0.0 }
 0x473   : > { %v3523_v14 = vadd.f32 %v3522_v44, %v3521_v28  ;;  %v3981_v28 = vld [vmem:[#allocation2] ss:$0 sm:$0xff] }
 0x474   : > { %v3512_v63 = vmax.f32 %v3505_v9, 0.0 }
 0x476   : > { %v3524_v13 = vsel %vm1301_vm8, %v3512_v63, 0.0 }
 0x477   : > { %v3525_v49 = vadd.f32 %v3524_v13, %v3523_v14 }
 0x479   : > { %v3526_v54 = vrot.slane %v3525_v49, 4 }
 0x47b   : > { %v3527_v41 = vadd.f32 %v3526_v54, %v3525_v49 }
 0x47c   : > { %v2275_v15 = vpop.xlane.xlu1 %2274  ;;  %v2272_v21 = vpop.xlane.xlu0 %2271 }
 0x47d   : > { %v3534_v27 = vmul.f32 %v3507_v19, %v2275_v15  ;;  %v3533_v43 = vmul.f32 %v3506_v2, %v2272_v21  ;;  %v3528_v4 = vrot.slane %v3527_v41, 2 }
 0x47f   : > { %v3548_v33 = vmul.f32 %v3979_v17, %v3534_v27  ;;  %v3547_v45 = vmul.f32 %v3979_v17, %v3533_v43  ;;  %v3529_v38 = vadd.f32 %v3528_v4, %v3527_v41 }
 0x480   : > { %v2281_v55 = vpop.xlane.xlu1 %2280  ;;  %v2278_v8 = vpop.xlane.xlu0 %2277 }
 0x481   : > { %v3536_v37 = vmul.f32 %v3509_v12, %v2281_v55  ;;  %v3535_v16 = vmul.f32 %v3508_v1, %v2278_v8  ;;  %v3557_v50 = vsel %vm1161_vm2, %v3548_v33, 0.0  ;;  %v3554_v48 = vsel %vm1161_vm2, %v3547_v45, 0.0  ;;  %v6030_v1 = vld [vmem:[#allocation26_spill] sm:$0xff] }
 0x482   : > { %3558 = vadd.xlane.f32.xlu0 %v3557_v50  ;;  %3555 = vadd.xlane.f32.xlu1 %v3554_v48  ;;  %v3604_v35 = vsel %vm1161_vm2, %v6030_v1, 0.0  ;;  %v3530_v12 = vrot.slane %v3529_v38, 1 }
 0x483   : > { %v3549_v62 = vmul.f32 %v3979_v17, %v3535_v16  ;;  %v3550_v59 = vmul.f32 %v3979_v17, %v3536_v37 }
 0x484   : > { %v2284_v31 = vpop.xlane.xlu0 %2283  ;;  %v2287_v2 = vpop.xlane.xlu1 %2286  ;;  %v3531_v3 = vadd.f32 %v3530_v12, %v3529_v38  ;;  %v3705_v38 = vld [vmem:[%s6034_s26] sm:$0x7] }
 0x485   : > { %v3537_v61 = vmul.f32 %v3510_v34, %v2284_v31  ;;  %v3560_v19 = vsel %vm1161_vm2, %v3549_v62, 0.0  ;;  %v3538_v11 = vmul.f32 %v3511_v25, %v2287_v2  ;;  %v3563_v53 = vsel %vm1161_vm2, %v3550_v59, 0.0  ;;  %v6035_v2 = vld [vmem:[#allocation28_spill] sm:$0xff] }
 0x486   : > { %3602 = vadd.xlane.f32.xlu0 %v3601_v7  ;;  %3561 = vadd.xlane.f32.xlu1 %v3560_v19  ;;  %v3532_v23 = vmul.f32 0.020408163, %v3531_v3  ;;  %v3706_v1 = vmul.f32 %v3705_v38, %v6035_v2 }
 0x487   : > { %v3551_v52 = vmul.f32 %v3979_v17, %v3537_v61  ;;  %v3552_v51 = vmul.f32 %v3979_v17, %v3538_v11  ;;  %v3699_v61 = vld [vmem:[%s6033_s18] sm:$0x7] }
 0x488   : > { %v2290_v42 = vpop.xlane.xlu0 %2289  ;;  %v3694_v25 = vmul.f32 %v3693_v36, %v3532_v23  ;;  %v3591_v9 = vpop.xlane.xlu1 %3590  ;;  %v3700_v19 = vmul.f32 %v3699_v61, %v5574_v39 }
 0x489   : > { %v3539_v47 = vmul.f32 %v3512_v63, %v2290_v42  ;;  %v3566_v34 = vsel %vm1161_vm2, %v3551_v52, 0.0  ;;  %v3569_v58 = vsel %vm1161_vm2, %v3552_v51, 0.0  ;;  %vm3713_vm2 = vcmask 2048  }
 0x48a   : > { %3605 = vadd.xlane.f32.xlu0 %v3604_v35  ;;  %3564 = vadd.xlane.f32.xlu1 %v3563_v53  ;;  %v3696_v46 = vsel %vm3695_vm1, %v3694_v25, 0.0  ;;  %v3701_v59 = vsel %vm3695_vm1, %v3700_v19, 0.0  ;;  %v3707_v35 = vsel %vm3695_vm1, %v3706_v1, 0.0 }
 0x48b   : > { %v3553_v0 = vmul.f32 %v3979_v17, %v3539_v47 }
 0x48c   : > { %v3594_v22 = vpop.xlane.xlu0 %3593 }
 0x48d   : > { %v3572_v6 = vsel %vm1301_vm8, %v3553_v0, 0.0 }
 0x48e   : > { %3608 = vadd.xlane.f32.xlu0 %v3607_v24  ;;  %3567 = vadd.xlane.f32.xlu1 %v3566_v34 }
 0x490   : > { %v3597_v29 = vpop.xlane.xlu0 %3596 }
 0x492   : > { %3570 = vadd.xlane.f32.xlu1 %v3569_v58 }
 0x494   : > { %v3600_v44 = vpop.xlane.xlu0 %3599 }
 0x496   : > { %3573 = vadd.xlane.f32.xlu1 %v3572_v6 }
 0x49a   : > { %3697 = vadd.xlane.f32.xlu1 %v3696_v46 }
 0x50b   : > { %v3559_v63 = vpop.xlane.xlu0 %3558  ;;  %v3556_v14 = vpop.xlane.xlu1 %3555 }
 0x50c   : > { %v3611_v13 = vadd.f32 %v3594_v22, %v3559_v63  ;;  %v3610_v49 = vadd.f32 %v3591_v9, %v3556_v14 }
 0x50e   : > { %v3625_v54 = vadd.f32 %v3981_v28, %v3611_v13  ;;  %v3624_v15 = vadd.f32 %v3981_v28, %v3610_v49 }
 0x50f   : > { %v3562_v21 = vpop.xlane.xlu1 %3561  ;;  %v3603_v27 = vpop.xlane.xlu0 %3602 }
 0x510   : > { %v3612_v17 = vadd.f32 %v3597_v29, %v3562_v21  ;;  %3638 = vperm.xlu0 %4401, %v3625_v54   ;;  %3633 = vperm.xlu1 %4400, %v3624_v15   ;;  %v3711_v15 = vld [vmem:[%s6036_s7] sm:$0x7] }
 0x512   : > { %v3626_v41 = vadd.f32 %v3981_v28, %v3612_v17 }
 0x513   : > { %v3565_v43 = vpop.xlane.xlu1 %3564  ;;  %v3606_v4 = vpop.xlane.xlu0 %3605 }
 0x514   : > { %v3613_v33 = vadd.f32 %v3600_v44, %v3565_v43  ;;  %3643 = vperm.xlu1 %4400, %v3626_v41  }
 0x516   : > { %v3627_v45 = vadd.f32 %v3981_v28, %v3613_v33 }
 0x517   : > { %v3568_v55 = vpop.xlane.xlu1 %3567  ;;  %v3609_v62 = vpop.xlane.xlu0 %3608 }
 0x518   : > { %v3614_v8 = vadd.f32 %v3603_v27, %v3568_v55  ;;  %3648 = vperm.xlu1 %4400, %v3627_v45  }
 0x51a   : > { %v3628_v37 = vadd.f32 %v3981_v28, %v3614_v8 }
 0x51b   : > { %v3571_v16 = vpop.xlane.xlu1 %3570 }
 0x51c   : > { %v3615_v50 = vadd.f32 %v3606_v4, %v3571_v16  ;;  %3653 = vperm.xlu1 %4400, %v3628_v37  }
 0x51e   : > { %v3629_v48 = vadd.f32 %v3981_v28, %v3615_v50 }
 0x51f   : > { %v3574_v31 = vpop.xlane.xlu1 %3573 }
 0x520   : > { %v3616_v32 = vadd.f32 %v3609_v62, %v3574_v31  ;;  %3658 = vperm.xlu1 %4400, %v3629_v48  }
 0x522   : > { %v3630_v7 = vadd.f32 %v3981_v28, %v3616_v32 }
 0x523   : > { %v3698_v11 = vpop.xlane.xlu1 %3697 }
 0x524   : > { %3663 = vperm.xlu1 %4400, %v3630_v7  }
 0x52f   : > { %3702 = vadd.xlane.f32.xlu0 %v3701_v59 }
 0x548   : > { %3708 = vadd.xlane.f32.xlu1 %v3707_v35 }
 0x58b   : > { %v3634_v53 = vpop.permute.xlu1 %3633  ;;  %v3639_v52 = vpop.permute.xlu0 %3638 }
 0x58c   : > { %v3667_v42 = vsel %vm2253_vm10, %v3639_v52, 0.0  ;;  %v3666_v39 = vsel %vm2252_vm11, %v3634_v53, 0.0 }
 0x58d   : > { %v3674_v47 = vsel %vm2087_vm7, %v3667_v42, 0.0  ;;  %v3673_v34 = vsel %vm2087_vm7, %v3666_v39, 0.0 }
 0x58e   : > { %v3675_v60 = vadd.f32 %v3674_v47, %v3673_v34 }
 0x58f   : > { %v3644_v12 = vpop.permute.xlu1 %3643 }
 0x590   : > { %v3668_v24 = vsel %vm2254_vm15, %v3644_v12, 0.0 }
 0x591   : > { %v3676_v10 = vsel %vm2087_vm7, %v3668_v24, 0.0 }
 0x592   : > { %v3677_v40 = vadd.f32 %v3676_v10, %v3675_v60 }
 0x593   : > { %v3649_v57 = vpop.permute.xlu1 %3648 }
 0x594   : > { %v3669_v51 = vsel %vm2255_vm14, %v3649_v57, 0.0 }
 0x595   : > { %v3678_v58 = vsel %vm2087_vm7, %v3669_v51, 0.0 }
 0x596   : > { %v3679_v36 = vadd.f32 %v3678_v58, %v3677_v40 }
 0x597   : > { %v3654_v3 = vpop.permute.xlu1 %3653 }
 0x598   : > { %v3670_v5 = vsel %vm2256_vm12, %v3654_v3, 0.0 }
 0x599   : > { %v3680_v0 = vsel %vm2087_vm7, %v3670_v5, 0.0 }
 0x59a   : > { %v3681_v25 = vadd.f32 %v3680_v0, %v3679_v36 }
 0x59b   : > { %v3659_v23 = vpop.permute.xlu1 %3658 }
 0x59c   : > { %v3671_v20 = vsel %vm2257_vm0, %v3659_v23, 0.0 }
 0x59d   : > { %v3682_v6 = vsel %vm2087_vm7, %v3671_v20, 0.0 }
 0x59e   : > { %v3683_v56 = vadd.f32 %v3682_v6, %v3681_v25 }
 0x59f   : > { %v3664_v46 = vpop.permute.xlu1 %3663 }
 0x5a0   : > { %v3672_v22 = vsel %vm2258_vm13, %v3664_v46, 0.0 }
 0x5a1   : > { %v3684_v29 = vsel %vm2240_vm9, %v3672_v22, 0.0 }
 0x5a2   : > { %v3685_v9 = vadd.f32 %v3684_v29, %v3683_v56 }
 0x5a4   : > { %v3686_v44 = vrot.slane %v3685_v9, 4 }
 0x5a6   : > { %v3687_v28 = vadd.f32 %v3686_v44, %v3685_v9 }
 0x5a8   : > { %v3688_v63 = vrot.slane %v3687_v28, 2 }
 0x5aa   : > { %v3689_v30 = vadd.f32 %v3688_v63, %v3687_v28 }
 0x5ac   : > { %v3690_v14 = vrot.slane %v3689_v30, 1 }
 0x5ae   : > { %v3691_v13 = vadd.f32 %v3690_v14, %v3689_v30 }
 0x5b0   : > { %3692 = vst.msk [vmem:[%s1111_s10] sm:$0x1] %vm2240_vm9, %v3691_v13 }
 0x5b8   : > { %v3703_v49 = vpop.xlane.xlu0 %3702 }
 0x5b9   : > { %v3704_v54 = vadd.f32 %v3703_v49, %v3698_v11 }
 0x5d1   : > { %v3709_v21 = vpop.xlane.xlu1 %3708 }
 0x5d2   : > { %v3710_v18 = vadd.f32 %v3709_v21, %v3704_v54 }
 0x5d4   : > { %v3712_v26 = vadd.f32 %v3711_v15, %v3710_v18 }
 0x5d6   : > { %3714 = vst.msk [vmem:[%s1115_s16] sm:$0x7] %vm3713_vm2, %v3712_v26 }
 0x5d7 PF: > { %s78_s28 = sadd.s32 1, %s4441_s28  }
 0x5d8   : > { %p75_p4 = scmp.ge.s32.totalorder %s78_s28, 4  }
 0x5da   :  { %77 = sbr.rel (!%p75_p4) target bundleno = 58 (0x3a), region = 236 }

</bundles_post_ra>
